<compile_context>
chip_gen: v5e
topology: v5e:2x2
jax: 0.10.0
libtpu: 0.0.40
codegen_flags: <defaults>
</compile_context>

<pallas_src>
import functools

import jax
import jax.numpy as jnp
from jax import lax
from jax.experimental import pallas as pl
from jax.experimental.pallas import tpu as pltpu


def _pick_tile_n(n):
    if n % 256 == 0:
        return 256
    if n % 128 == 0:
        return 128
    return 256 if n > 128 else 128


def _three_nn_weights(x1, x2t, m):
    """x1: (T, 3) query xyz; x2t: (3, M) source xyz.
    Returns the dense (T, M) interpolation-weight matrix (3 nonzeros per row),
    matching torch: dist = sqrt(d2); dist = clamp_min(dist, 1e-10); w = (1/dist)/sum."""
    t = x1.shape[0]
    n1 = jnp.sum(x1 * x1, axis=-1, keepdims=True)                  # (T, 1)
    n2 = jnp.sum(x2t * x2t, axis=0, keepdims=True)                 # (1, M)
    cross = jnp.dot(x1, x2t, preferred_element_type=jnp.float32)   # (T, M) MXU, K=3
    d2 = jnp.maximum(n1 + n2 - 2.0 * cross, 0.0)                   # clamp cancellation

    iota_m = lax.broadcasted_iota(jnp.int32, (t, m), 1)
    d = d2
    idxs, recips = [], []
    for k in range(3):                                             # 3 nearest, on d^2
        dmin2 = jnp.min(d, axis=-1, keepdims=True)                 # (T, 1)
        amin = jnp.min(jnp.where(d <= dmin2, iota_m, m),
                       axis=-1, keepdims=True)                     # first occurrence
        dist = jnp.maximum(jnp.sqrt(dmin2), 1e-10)                 # sqrt on (T,1) only
        idxs.append(amin)
        recips.append(1.0 / dist)
        if k < 2:                                                  # last mask is dead
            d = jnp.where(iota_m == amin, jnp.inf, d)              # mask winner

    inv_norm = 1.0 / (recips[0] + recips[1] + recips[2])           # (T, 1)
    w = (jnp.where(iota_m == idxs[0], recips[0] * inv_norm, 0.0)
         + jnp.where(iota_m == idxs[1], recips[1] * inv_norm, 0.0)
         + jnp.where(iota_m == idxs[2], recips[2] * inv_norm, 0.0))
    return w                                                       # (T, M) f32


def _tile_stats(h, tile_n, n_valid):
    """Masked per-tile sum / sum-of-squares (f32) over the (lane) point axis."""
    col = (lax.broadcasted_iota(jnp.int32, (1, tile_n), 1)
           + pl.program_id(1) * tile_n)
    hm = jnp.where(col < n_valid, h, 0.0)                          # zero padded points
    tsum = jnp.sum(hm, axis=1, keepdims=True)                      # (C, 1)
    tsq = jnp.sum(hm * hm, axis=1, keepdims=True)                  # (C, 1)
    return tsum, tsq


def _interp_layer0_kernel(*refs, use_points1, tile_n, n_valid, mxu_dtype):
    it = iter(refs)
    xyz1_ref = next(it)                     # (1, T, 3)
    xyz2_ref = next(it)                     # (1, 3, M)
    points2_ref = next(it)                  # (1, C2, M)
    points1_ref = next(it) if use_points1 else None   # (1, C1, T)
    w_a_ref = next(it)                      # (C0, C2)
    w_b_ref = next(it) if use_points1 else None        # (C0, C1)
    b_ref = next(it)                        # (C0, 1)
    h_ref = next(it)                        # out (1, C0, T)  [mxu_dtype]
    sum_ref = next(it)                      # out (1, 1, C0, 1)
    sq_ref = next(it)                       # out (1, 1, C0, 1)

    x1 = xyz1_ref[0]                        # (T, 3)
    x2t = xyz2_ref[0]                       # (3, M)
    p2 = points2_ref[0]                     # (C2, M)
    m = x2t.shape[1]

    w_dense = _three_nn_weights(x1, x2t, m)                        # (T, M) f32

    # three_interpolate, channel-major: contract M of points2 with M of w_dense.
    interp = lax.dot_general(p2, w_dense.astype(p2.dtype),
                             (((1,), (1,)), ((), ())),
                             preferred_element_type=jnp.float32)   # (C2, T)

    # layer-0 1x1 conv; concat([interp, points1], channel) folded into split weights.
    h = jnp.dot(w_a_ref[...], interp.astype(mxu_dtype),
                preferred_element_type=jnp.float32)                # (C0, T)
    if use_points1:
        h = h + jnp.dot(w_b_ref[...], points1_ref[0],
                        preferred_element_type=jnp.float32)
    h = h + b_ref[...]                                             # (C0,1) bcast
    h_ref[0] = h.astype(h_ref.dtype)

    tsum, tsq = _tile_stats(h, tile_n, n_valid)                    # stats on f32 h
    sum_ref[0, 0] = tsum
    sq_ref[0, 0] = tsq


def _bn_relu_conv_kernel(h_in_ref, scale_ref, shift_ref, w_ref, b_ref,
                         h_out_ref, sum_ref, sq_ref, *, tile_n, n_valid, mxu_dtype):
    x = h_in_ref[0].astype(jnp.float32)                            # (C_in, T)
    x = jnp.maximum(x * scale_ref[...] + shift_ref[...], 0.0)      # BN affine + ReLU
    h = jnp.dot(w_ref[...], x.astype(mxu_dtype),
                preferred_element_type=jnp.float32) + b_ref[...]   # (C_out, T)
    h_out_ref[0] = h.astype(h_out_ref.dtype)
    tsum, tsq = _tile_stats(h, tile_n, n_valid)
    sum_ref[0, 0] = tsum
    sq_ref[0, 0] = tsq


def _bn_relu_kernel(h_in_ref, scale_ref, shift_ref, out_ref):
    x = h_in_ref[0].astype(jnp.float32)                            # (C_last, T)
    out_ref[0] = jnp.maximum(x * scale_ref[...] + shift_ref[...], 0.0)


@functools.partial(jax.jit, static_argnames=("use_points1", "bn_eps", "mxu_dtype"))
def pointnet_fp_module(xyz1, xyz2, points1, points2, params, *,
                       use_points1=True, bn_eps=1e-5, mxu_dtype=jnp.bfloat16):
    """Torch-layout inputs: xyz1 (B,3,N), xyz2 (B,3,M), points1 (B,C1,N),
    points2 (B,C2,M).  params: list of (W (C_out,C_in), b, gamma, beta).
    Returns (B, mlp[-1], N) float32."""
    f32 = jnp.float32
    B, _, N = xyz1.shape
    M = xyz2.shape[2]
    C2 = points2.shape[1]
    num_layers = len(params)

    tile_n = _pick_tile_n(N)
    nt = pl.cdiv(N, tile_n)
    n_pad = nt * tile_n

    xyz1_t = jnp.transpose(xyz1, (0, 2, 1)).astype(f32)            # (B, N, 3)
    if n_pad != N:
        xyz1_t = jnp.pad(xyz1_t, ((0, 0), (0, n_pad - N), (0, 0)))
    xyz2 = xyz2.astype(f32)                                        # (B, 3, M)
    points2_c = points2.astype(mxu_dtype)                          # (B, C2, M)
    if use_points1:
        points1_c = points1.astype(mxu_dtype)                      # (B, C1, N)
        if n_pad != N:
            points1_c = jnp.pad(points1_c, ((0, 0), (0, 0), (0, n_pad - N)))

    cparams = pltpu.CompilerParams(
        dimension_semantics=("parallel", "parallel"),
        vmem_limit_bytes=64 * 1024 * 1024)

    def stats_out(c_out):
        shapes = (jax.ShapeDtypeStruct((B, nt, c_out, 1), f32),
                  jax.ShapeDtypeStruct((B, nt, c_out, 1), f32))
        specs = (pl.BlockSpec((1, 1, c_out, 1), lambda b, n: (b, n, 0, 0)),
                 pl.BlockSpec((1, 1, c_out, 1), lambda b, n: (b, n, 0, 0)))
        return shapes, specs

    def bn_scale_shift(tsum, tsq, gamma, beta):
        cnt = jnp.float32(B * N)
        mean = jnp.sum(tsum[..., 0], axis=(0, 1)) / cnt            # (C,)
        ex2 = jnp.sum(tsq[..., 0], axis=(0, 1)) / cnt
        var = jnp.maximum(ex2 - mean * mean, 0.0)                  # biased batch var
        scale = gamma.astype(f32) * lax.rsqrt(var + bn_eps)
        shift = beta.astype(f32) - mean * scale
        return scale.reshape(-1, 1), shift.reshape(-1, 1)

    # ---- pass 0: three_nn + three_interpolate + layer-0 conv (pre-BN) + tile stats ---
    w0, b0, g0, be0 = params[0]
    c0 = w0.shape[0]
    in_arrays = [xyz1_t, xyz2, points2_c]
    in_specs = [pl.BlockSpec((1, tile_n, 3), lambda b, n: (b, n, 0)),
                pl.BlockSpec((1, 3, M), lambda b, n: (b, 0, 0)),
                pl.BlockSpec((1, C2, M), lambda b, n: (b, 0, 0))]
    if use_points1:
        c1 = points1_c.shape[1]
        in_arrays.append(points1_c)
        in_specs.append(pl.BlockSpec((1, c1, tile_n), lambda b, n: (b, 0, n)))
        in_arrays += [w0[:, :C2].astype(mxu_dtype), w0[:, C2:].astype(mxu_dtype)]
        in_specs += [pl.BlockSpec((c0, C2), lambda b, n: (0, 0)),
                     pl.BlockSpec((c0, c1), lambda b, n: (0, 0))]
    else:
        in_arrays.append(w0.astype(mxu_dtype))
        in_specs.append(pl.BlockSpec((c0, C2), lambda b, n: (0, 0)))
    in_arrays.append(b0.reshape(c0, 1).astype(f32))
    in_specs.append(pl.BlockSpec((c0, 1), lambda b, n: (0, 0)))

    st_shapes, st_specs = stats_out(c0)
    h, tsum, tsq = pl.pallas_call(
        functools.partial(_interp_layer0_kernel, use_points1=use_points1,
                          tile_n=tile_n, n_valid=N, mxu_dtype=mxu_dtype),
        grid=(B, nt),
        out_shape=(jax.ShapeDtypeStruct((B, c0, n_pad), mxu_dtype),) + st_shapes,
        in_specs=in_specs,
        out_specs=(pl.BlockSpec((1, c0, tile_n), lambda b, n: (b, 0, n)),) + st_specs,
        compiler_params=cparams,
    )(*in_arrays)
    scale, shift = bn_scale_shift(tsum, tsq, g0, be0)

    # ---- passes 1..L-1: BN+ReLU of previous layer fused with this layer's conv ------
    c_prev = c0
    for li in range(1, num_layers):
        w, b, g, be = params[li]
        c_out = w.shape[0]
        st_shapes, st_specs = stats_out(c_out)
        h, tsum, tsq = pl.pallas_call(
            functools.partial(_bn_relu_conv_kernel, tile_n=tile_n,
                              n_valid=N, mxu_dtype=mxu_dtype),
            grid=(B, nt),
            out_shape=(jax.ShapeDtypeStruct((B, c_out, n_pad), mxu_dtype),) + st_shapes,
            in_specs=[pl.BlockSpec((1, c_prev, tile_n), lambda b_, n_: (b_, 0, n_)),
                      pl.BlockSpec((c_prev, 1), lambda b_, n_: (0, 0)),
                      pl.BlockSpec((c_prev, 1), lambda b_, n_: (0, 0)),
                      pl.BlockSpec((c_out, c_prev), lambda b_, n_: (0, 0)),
                      pl.BlockSpec((c_out, 1), lambda b_, n_: (0, 0))],
            out_specs=(pl.BlockSpec((1, c_out, tile_n), lambda b_, n_: (b_, 0, n_)),)
                      + st_specs,
            compiler_params=cparams,
        )(h, scale, shift, w.astype(mxu_dtype), b.reshape(c_out, 1).astype(f32))
        scale, shift = bn_scale_shift(tsum, tsq, g, be)
        c_prev = c_out

    # ---- final pass: BN+ReLU of the last layer, lane-dense (B, C_last, N) output ----
    out = pl.pallas_call(
        _bn_relu_kernel,
        grid=(B, nt),
        out_shape=jax.ShapeDtypeStruct((B, c_prev, n_pad), f32),
        in_specs=[pl.BlockSpec((1, c_prev, tile_n), lambda b, n: (b, 0, n)),
                  pl.BlockSpec((c_prev, 1), lambda b, n: (0, 0)),
                  pl.BlockSpec((c_prev, 1), lambda b, n: (0, 0))],
        out_specs=pl.BlockSpec((1, c_prev, tile_n), lambda b, n: (b, 0, n)),
        compiler_params=cparams,
    )(h, scale, shift)

    # TODO(synk): for very large M (>= a few thousand) chunk the (TILE_N, M) distance /
    # interpolation workspace over M inside the kernel to bound VMEM on v7x.
    return out[:, :, :N] if n_pad != N else out


if __name__ == "__main__":
    B, N, M = 2, 16, 8
    in_channel = 8            # channels of points2
    in_channel_points1 = 6    # channels of points1
    mlp = [32, 16]
    use_points1 = True

    key = jax.random.PRNGKey(0)
    keys = jax.random.split(key, 5)
    xyz1 = jax.random.normal(keys[0], (B, 3, N), jnp.float32)
    xyz2 = jax.random.normal(keys[1], (B, 3, M), jnp.float32)
    points1 = jax.random.normal(keys[2], (B, in_channel_points1, N), jnp.float32)
    points2 = jax.random.normal(keys[3], (B, in_channel, M), jnp.float32)

    # deterministic Conv1d(k=1)+BN parameters for each mlp layer
    params = []
    last = in_channel + (in_channel_points1 if use_points1 else 0)
    pkey = keys[4]
    for c_out in mlp:
        pkey, kw, kb, kg, kbe = jax.random.split(pkey, 5)
        w = 0.1 * jax.random.normal(kw, (c_out, last), jnp.float32)
        b = 0.1 * jax.random.normal(kb, (c_out,), jnp.float32)
        gamma = 1.0 + 0.1 * jax.random.normal(kg, (c_out,), jnp.float32)
        beta = 0.1 * jax.random.normal(kbe, (c_out,), jnp.float32)
        params.append((w, b, gamma, beta))
        last = c_out

    out = pointnet_fp_module(xyz1, xyz2, points1, points2, params,
                             use_points1=use_points1)
    jax.block_until_ready(out)
    assert out.shape == (B, mlp[-1], N), out.shape
    assert bool(jnp.all(jnp.isfinite(out)))
    print("KERNEL_OK")
</pallas_src>

<mosaic_0001>
module attributes {stable_mosaic.version = 11 : i64} {
  func.func @_bn_relu_kernel(%arg0: i32, %arg1: i32, %arg2: memref<1x16x128xbf16, #tpu.memory_space<vmem>>, %arg3: memref<16x1xf32, #tpu.memory_space<vmem>>, %arg4: memref<16x1xf32, #tpu.memory_space<vmem>>, %arg5: memref<1x16x128xf32, #tpu.memory_space<vmem>>) attributes {dimension_semantics = [#tpu.dimension_semantics<parallel>, #tpu.dimension_semantics<parallel>], iteration_bounds = array<i64: 2, 1>, scalar_prefetch = 0 : i64, scratch_operands = 0 : i64, tpu.core_type = #tpu.core_type<tc>, window_params = [{transform_indices = @transform_0, window_bounds = array<i64: 1, 16, 128>}, {pipeline_mode = #tpu.pipeline_mode<synchronous>, transform_indices = @transform_1, window_bounds = array<i64: 16, 1>}, {pipeline_mode = #tpu.pipeline_mode<synchronous>, transform_indices = @transform_2, window_bounds = array<i64: 16, 1>}, {transform_indices = @transform_3, window_bounds = array<i64: 1, 16, 128>}]} {
    %c0 = arith.constant 0 : index
    %c0_0 = arith.constant 0 : index
    %c0_1 = arith.constant 0 : index
    %0 = vector.load %arg2[%c0, %c0_0, %c0_1] : memref<1x16x128xbf16, #tpu.memory_space<vmem>>, vector<1x16x128xbf16>
    %1 = vector.shape_cast %0 : vector<1x16x128xbf16> to vector<16x128xbf16>
    %2 = arith.extf %1 : vector<16x128xbf16> to vector<16x128xf32>
    %c0_2 = arith.constant 0 : index
    %c0_3 = arith.constant 0 : index
    %3 = vector.load %arg3[%c0_2, %c0_3] : memref<16x1xf32, #tpu.memory_space<vmem>>, vector<16x1xf32>
    %4 = vector.broadcast %3 : vector<16x1xf32> to vector<16x128xf32>
    %5 = arith.mulf %2, %4 : vector<16x128xf32>
    %c0_4 = arith.constant 0 : index
    %c0_5 = arith.constant 0 : index
    %6 = vector.load %arg4[%c0_4, %c0_5] : memref<16x1xf32, #tpu.memory_space<vmem>>, vector<16x1xf32>
    %7 = vector.broadcast %6 : vector<16x1xf32> to vector<16x128xf32>
    %8 = arith.addf %5, %7 : vector<16x128xf32>
    %cst = arith.constant 0.000000e+00 : f32
    %9 = vector.broadcast %cst : f32 to vector<16x128xf32>
    %10 = arith.maximumf %8, %9 : vector<16x128xf32>
    %c0_6 = arith.constant 0 : index
    %c0_7 = arith.constant 0 : index
    %c0_8 = arith.constant 0 : index
    %11 = vector.load %arg5[%c0_6, %c0_7, %c0_8] : memref<1x16x128xf32, #tpu.memory_space<vmem>>, vector<1x16x128xf32>
    %12 = vector.shape_cast %11 : vector<1x16x128xf32> to vector<16x128xf32>
    %13 = vector.shape_cast %10 : vector<16x128xf32> to vector<1x16x128xf32>
    tpu.vector_store %arg5[%c0_6, %c0_7, %c0_8], %13 {strides = array<i32>} : memref<1x16x128xf32, #tpu.memory_space<vmem>>, vector<1x16x128xf32>,
    return
  }
  func.func @transform_0(%arg0: i32, %arg1: i32) -> (i32, i32, i32) {
    %c0_i32 = arith.constant 0 : i32
    %c0_i32_0 = arith.constant 0 : i32
    return %arg0, %c0_i32, %arg1 : i32, i32, i32
  }
  func.func @transform_1(%arg0: i32, %arg1: i32) -> (i32, i32) {
    %c0_i32 = arith.constant 0 : i32
    %c0_i32_0 = arith.constant 0 : i32
    %c0_i32_1 = arith.constant 0 : i32
    return %c0_i32, %c0_i32_0 : i32, i32
  }
  func.func @transform_2(%arg0: i32, %arg1: i32) -> (i32, i32) {
    %c0_i32 = arith.constant 0 : i32
    %c0_i32_0 = arith.constant 0 : i32
    %c0_i32_1 = arith.constant 0 : i32
    return %c0_i32, %c0_i32_0 : i32, i32
  }
  func.func @transform_3(%arg0: i32, %arg1: i32) -> (i32, i32, i32) {
    %c0_i32 = arith.constant 0 : i32
    %c0_i32_0 = arith.constant 0 : i32
    return %arg0, %c0_i32, %arg1 : i32, i32, i32
  }
}

module attributes {stable_mosaic.version = 11 : i64} {
  func.func @_bn_relu_conv_kernel(%arg0: i32, %arg1: i32, %arg2: memref<1x32x128xbf16, #tpu.memory_space<vmem>>, %arg3: memref<32x1xf32, #tpu.memory_space<vmem>>, %arg4: memref<32x1xf32, #tpu.memory_space<vmem>>, %arg5: memref<16x32xbf16, #tpu.memory_space<vmem>>, %arg6: memref<16x1xf32, #tpu.memory_space<vmem>>, %arg7: memref<1x16x128xbf16, #tpu.memory_space<vmem>>, %arg8: memref<1x1x16x1xf32, #tpu.memory_space<vmem>>, %arg9: memref<1x1x16x1xf32, #tpu.memory_space<vmem>>) attributes {dimension_semantics = [#tpu.dimension_semantics<parallel>, #tpu.dimension_semantics<parallel>], iteration_bounds = array<i64: 2, 1>, scalar_prefetch = 0 : i64, scratch_operands = 0 : i64, tpu.core_type = #tpu.core_type<tc>, window_params = [{transform_indices = @transform_0, window_bounds = array<i64: 1, 32, 128>}, {pipeline_mode = #tpu.pipeline_mode<synchronous>, transform_indices = @transform_1, window_bounds = array<i64: 32, 1>}, {pipeline_mode = #tpu.pipeline_mode<synchronous>, transform_indices = @transform_2, window_bounds = array<i64: 32, 1>}, {pipeline_mode = #tpu.pipeline_mode<synchronous>, transform_indices = @transform_3, window_bounds = array<i64: 16, 32>}, {pipeline_mode = #tpu.pipeline_mode<synchronous>, transform_indices = @transform_4, window_bounds = array<i64: 16, 1>}, {transform_indices = @transform_5, window_bounds = array<i64: 1, 16, 128>}, {transform_indices = @transform_6, window_bounds = array<i64: 1, 1, 16, 1>}, {transform_indices = @transform_7, window_bounds = array<i64: 1, 1, 16, 1>}]} {
    %c0 = arith.constant 0 : index
    %c0_0 = arith.constant 0 : index
    %c0_1 = arith.constant 0 : index
    %0 = vector.load %arg2[%c0, %c0_0, %c0_1] : memref<1x32x128xbf16, #tpu.memory_space<vmem>>, vector<1x32x128xbf16>
    %1 = vector.shape_cast %0 : vector<1x32x128xbf16> to vector<32x128xbf16>
    %2 = arith.extf %1 : vector<32x128xbf16> to vector<32x128xf32>
    %c0_2 = arith.constant 0 : index
    %c0_3 = arith.constant 0 : index
    %3 = vector.load %arg3[%c0_2, %c0_3] : memref<32x1xf32, #tpu.memory_space<vmem>>, vector<32x1xf32>
    %4 = vector.broadcast %3 : vector<32x1xf32> to vector<32x128xf32>
    %5 = arith.mulf %2, %4 : vector<32x128xf32>
    %c0_4 = arith.constant 0 : index
    %c0_5 = arith.constant 0 : index
    %6 = vector.load %arg4[%c0_4, %c0_5] : memref<32x1xf32, #tpu.memory_space<vmem>>, vector<32x1xf32>
    %7 = vector.broadcast %6 : vector<32x1xf32> to vector<32x128xf32>
    %8 = arith.addf %5, %7 : vector<32x128xf32>
    %cst = arith.constant 0.000000e+00 : f32
    %9 = vector.broadcast %cst : f32 to vector<32x128xf32>
    %10 = arith.maximumf %8, %9 : vector<32x128xf32>
    %c0_6 = arith.constant 0 : index
    %c0_7 = arith.constant 0 : index
    %11 = vector.load %arg5[%c0_6, %c0_7] : memref<16x32xbf16, #tpu.memory_space<vmem>>, vector<16x32xbf16>
    %12 = arith.truncf %10 : vector<32x128xf32> to vector<32x128xbf16>
    %cst_8 = arith.constant dense<0.000000e+00> : vector<16x128xf32>
    %13 = tpu.matmul %11, %12, %cst_8 {dimension_numbers = #tpu.dot_dimension_numbers<[1], [0], [0], [1], [0, 0, 1, 1], [], []>} : vector<16x32xbf16>, vector<32x128xbf16>, vector<16x128xf32> -> vector<16x128xf32>
    %c0_9 = arith.constant 0 : index
    %c0_10 = arith.constant 0 : index
    %14 = vector.load %arg6[%c0_9, %c0_10] : memref<16x1xf32, #tpu.memory_space<vmem>>, vector<16x1xf32>
    %15 = vector.broadcast %14 : vector<16x1xf32> to vector<16x128xf32>
    %16 = arith.addf %13, %15 : vector<16x128xf32>
    %17 = arith.truncf %16 : vector<16x128xf32> to vector<16x128xbf16>
    %c0_11 = arith.constant 0 : index
    %c0_12 = arith.constant 0 : index
    %c0_13 = arith.constant 0 : index
    %18 = vector.load %arg7[%c0_11, %c0_12, %c0_13] : memref<1x16x128xbf16, #tpu.memory_space<vmem>>, vector<1x16x128xbf16>
    %19 = vector.shape_cast %18 : vector<1x16x128xbf16> to vector<16x128xbf16>
    %20 = vector.shape_cast %17 : vector<16x128xbf16> to vector<1x16x128xbf16>
    tpu.vector_store %arg7[%c0_11, %c0_12, %c0_13], %20 {strides = array<i32>} : memref<1x16x128xbf16, #tpu.memory_space<vmem>>, vector<1x16x128xbf16>,
    %21 = tpu.iota {dimensions = array<i32: 1>} : vector<1x128xi32>
    %c128_i32 = arith.constant 128 : i32
    %22 = arith.muli %arg1, %c128_i32 : i32
    %23 = vector.broadcast %22 : i32 to vector<1x128xi32>
    %24 = arith.addi %21, %23 : vector<1x128xi32>
    %c16_i32 = arith.constant 16 : i32
    %25 = vector.broadcast %c16_i32 : i32 to vector<1x128xi32>
    %26 = arith.cmpi slt, %24, %25 : vector<1x128xi32>
    %cst_14 = arith.constant 0.000000e+00 : f32
    %27 = vector.shape_cast %26 : vector<1x128xi1> to vector<1x128xi1>
    %28 = vector.broadcast %27 : vector<1x128xi1> to vector<16x128xi1>
    %29 = vector.broadcast %cst_14 : f32 to vector<16x128xf32>
    %30 = arith.select %28, %16, %29 : vector<16x128xi1>, vector<16x128xf32>
    %cst_15 = arith.constant dense<0.000000e+00> : vector<16xf32>
    %31 = vector.multi_reduction <add>, %30, %cst_15 [1] : vector<16x128xf32> to vector<16xf32>
    %32 = vector.shape_cast %31 : vector<16xf32> to vector<16x1xf32>
    %33 = arith.mulf %30, %30 : vector<16x128xf32>
    %cst_16 = arith.constant dense<0.000000e+00> : vector<16xf32>
    %34 = vector.multi_reduction <add>, %33, %cst_16 [1] : vector<16x128xf32> to vector<16xf32>
    %35 = vector.shape_cast %34 : vector<16xf32> to vector<16x1xf32>
    %c0_17 = arith.constant 0 : index
    %c0_18 = arith.constant 0 : index
    %c0_19 = arith.constant 0 : index
    %c0_20 = arith.constant 0 : index
    %36 = vector.load %arg8[%c0_17, %c0_18, %c0_19, %c0_20] : memref<1x1x16x1xf32, #tpu.memory_space<vmem>>, vector<1x1x16x1xf32>
    %37 = vector.shape_cast %36 : vector<1x1x16x1xf32> to vector<16x1xf32>
    %38 = vector.shape_cast %32 : vector<16x1xf32> to vector<1x1x16x1xf32>
    tpu.vector_store %arg8[%c0_17, %c0_18, %c0_19, %c0_20], %38 {strides = array<i32>} : memref<1x1x16x1xf32, #tpu.memory_space<vmem>>, vector<1x1x16x1xf32>,
    %c0_21 = arith.constant 0 : index
    %c0_22 = arith.constant 0 : index
    %c0_23 = arith.constant 0 : index
    %c0_24 = arith.constant 0 : index
    %39 = vector.load %arg9[%c0_21, %c0_22, %c0_23, %c0_24] : memref<1x1x16x1xf32, #tpu.memory_space<vmem>>, vector<1x1x16x1xf32>
    %40 = vector.shape_cast %39 : vector<1x1x16x1xf32> to vector<16x1xf32>
    %41 = vector.shape_cast %35 : vector<16x1xf32> to vector<1x1x16x1xf32>
    tpu.vector_store %arg9[%c0_21, %c0_22, %c0_23, %c0_24], %41 {strides = array<i32>} : memref<1x1x16x1xf32, #tpu.memory_space<vmem>>, vector<1x1x16x1xf32>,
    return
  }
  func.func @transform_0(%arg0: i32, %arg1: i32) -> (i32, i32, i32) {
    %c0_i32 = arith.constant 0 : i32
    %c0_i32_0 = arith.constant 0 : i32
    return %arg0, %c0_i32, %arg1 : i32, i32, i32
  }
  func.func @transform_1(%arg0: i32, %arg1: i32) -> (i32, i32) {
    %c0_i32 = arith.constant 0 : i32
    %c0_i32_0 = arith.constant 0 : i32
    %c0_i32_1 = arith.constant 0 : i32
    return %c0_i32, %c0_i32_0 : i32, i32
  }
  func.func @transform_2(%arg0: i32, %arg1: i32) -> (i32, i32) {
    %c0_i32 = arith.constant 0 : i32
    %c0_i32_0 = arith.constant 0 : i32
    %c0_i32_1 = arith.constant 0 : i32
    return %c0_i32, %c0_i32_0 : i32, i32
  }
  func.func @transform_3(%arg0: i32, %arg1: i32) -> (i32, i32) {
    %c0_i32 = arith.constant 0 : i32
    %c0_i32_0 = arith.constant 0 : i32
    %c0_i32_1 = arith.constant 0 : i32
    return %c0_i32, %c0_i32_0 : i32, i32
  }
  func.func @transform_4(%arg0: i32, %arg1: i32) -> (i32, i32) {
    %c0_i32 = arith.constant 0 : i32
    %c0_i32_0 = arith.constant 0 : i32
    %c0_i32_1 = arith.constant 0 : i32
    return %c0_i32, %c0_i32_0 : i32, i32
  }
  func.func @transform_5(%arg0: i32, %arg1: i32) -> (i32, i32, i32) {
    %c0_i32 = arith.constant 0 : i32
    %c0_i32_0 = arith.constant 0 : i32
    return %arg0, %c0_i32, %arg1 : i32, i32, i32
  }
  func.func @transform_6(%arg0: i32, %arg1: i32) -> (i32, i32, i32, i32) {
    %c0_i32 = arith.constant 0 : i32
    %c0_i32_0 = arith.constant 0 : i32
    %c0_i32_1 = arith.constant 0 : i32
    return %arg0, %arg1, %c0_i32, %c0_i32_0 : i32, i32, i32, i32
  }
  func.func @transform_7(%arg0: i32, %arg1: i32) -> (i32, i32, i32, i32) {
    %c0_i32 = arith.constant 0 : i32
    %c0_i32_0 = arith.constant 0 : i32
    %c0_i32_1 = arith.constant 0 : i32
    return %arg0, %arg1, %c0_i32, %c0_i32_0 : i32, i32, i32, i32
  }
}

module attributes {stable_mosaic.version = 11 : i64} {
  func.func @_interp_layer0_kernel(%arg0: i32, %arg1: i32, %arg2: memref<1x128x3xf32, #tpu.memory_space<vmem>>, %arg3: memref<1x3x8xf32, #tpu.memory_space<vmem>>, %arg4: memref<1x8x8xbf16, #tpu.memory_space<vmem>>, %arg5: memref<1x6x128xbf16, #tpu.memory_space<vmem>>, %arg6: memref<32x8xbf16, #tpu.memory_space<vmem>>, %arg7: memref<32x6xbf16, #tpu.memory_space<vmem>>, %arg8: memref<32x1xf32, #tpu.memory_space<vmem>>, %arg9: memref<1x32x128xbf16, #tpu.memory_space<vmem>>, %arg10: memref<1x1x32x1xf32, #tpu.memory_space<vmem>>, %arg11: memref<1x1x32x1xf32, #tpu.memory_space<vmem>>) attributes {dimension_semantics = [#tpu.dimension_semantics<parallel>, #tpu.dimension_semantics<parallel>], iteration_bounds = array<i64: 2, 1>, scalar_prefetch = 0 : i64, scratch_operands = 0 : i64, tpu.core_type = #tpu.core_type<tc>, window_params = [{transform_indices = @transform_0, window_bounds = array<i64: 1, 128, 3>}, {transform_indices = @transform_1, window_bounds = array<i64: 1, 3, 8>}, {transform_indices = @transform_2, window_bounds = array<i64: 1, 8, 8>}, {transform_indices = @transform_3, window_bounds = array<i64: 1, 6, 128>}, {pipeline_mode = #tpu.pipeline_mode<synchronous>, transform_indices = @transform_4, window_bounds = array<i64: 32, 8>}, {pipeline_mode = #tpu.pipeline_mode<synchronous>, transform_indices = @transform_5, window_bounds = array<i64: 32, 6>}, {pipeline_mode = #tpu.pipeline_mode<synchronous>, transform_indices = @transform_6, window_bounds = array<i64: 32, 1>}, {transform_indices = @transform_7, window_bounds = array<i64: 1, 32, 128>}, {transform_indices = @transform_8, window_bounds = array<i64: 1, 1, 32, 1>}, {transform_indices = @transform_9, window_bounds = array<i64: 1, 1, 32, 1>}]} {
    %c0 = arith.constant 0 : index
    %c0_0 = arith.constant 0 : index
    %c0_1 = arith.constant 0 : index
    %0 = vector.load %arg2[%c0, %c0_0, %c0_1] : memref<1x128x3xf32, #tpu.memory_space<vmem>>, vector<1x128x3xf32>
    %1 = vector.shape_cast %0 : vector<1x128x3xf32> to vector<128x3xf32>
    %c0_2 = arith.constant 0 : index
    %c0_3 = arith.constant 0 : index
    %c0_4 = arith.constant 0 : index
    %2 = vector.load %arg3[%c0_2, %c0_3, %c0_4] : memref<1x3x8xf32, #tpu.memory_space<vmem>>, vector<1x3x8xf32>
    %3 = vector.shape_cast %2 : vector<1x3x8xf32> to vector<3x8xf32>
    %c0_5 = arith.constant 0 : index
    %c0_6 = arith.constant 0 : index
    %c0_7 = arith.constant 0 : index
    %4 = vector.load %arg4[%c0_5, %c0_6, %c0_7] : memref<1x8x8xbf16, #tpu.memory_space<vmem>>, vector<1x8x8xbf16>
    %5 = vector.shape_cast %4 : vector<1x8x8xbf16> to vector<8x8xbf16>
    %6 = arith.mulf %1, %1 : vector<128x3xf32>
    %cst = arith.constant dense<0.000000e+00> : vector<128xf32>
    %7 = vector.multi_reduction <add>, %6, %cst [1] : vector<128x3xf32> to vector<128xf32>
    %8 = vector.shape_cast %7 : vector<128xf32> to vector<128x1xf32>
    %9 = arith.mulf %3, %3 : vector<3x8xf32>
    %cst_8 = arith.constant dense<0.000000e+00> : vector<8xf32>
    %10 = vector.multi_reduction <add>, %9, %cst_8 [0] : vector<3x8xf32> to vector<8xf32>
    %11 = vector.shape_cast %10 : vector<8xf32> to vector<1x8xf32>
    %cst_9 = arith.constant dense<0.000000e+00> : vector<128x8xf32>
    %12 = tpu.matmul %1, %3, %cst_9 {dimension_numbers = #tpu.dot_dimension_numbers<[1], [0], [0], [1], [0, 0, 1, 1], [], []>} : vector<128x3xf32>, vector<3x8xf32>, vector<128x8xf32> -> vector<128x8xf32>
    %13 = vector.broadcast %8 : vector<128x1xf32> to vector<128x8xf32>
    %14 = vector.broadcast %11 : vector<1x8xf32> to vector<128x8xf32>
    %15 = arith.addf %13, %14 : vector<128x8xf32>
    %cst_10 = arith.constant 2.000000e+00 : f32
    %16 = vector.broadcast %cst_10 : f32 to vector<128x8xf32>
    %17 = arith.mulf %16, %12 : vector<128x8xf32>
    %18 = arith.subf %15, %17 : vector<128x8xf32>
    %cst_11 = arith.constant 0.000000e+00 : f32
    %19 = vector.broadcast %cst_11 : f32 to vector<128x8xf32>
    %20 = arith.maximumf %18, %19 : vector<128x8xf32>
    %21 = tpu.iota {dimensions = array<i32: 1>} : vector<128x8xi32>
    %cst_12 = arith.constant dense<0x7F800000> : vector<128xf32>
    %22 = vector.multi_reduction <minimumf>, %20, %cst_12 [1] : vector<128x8xf32> to vector<128xf32>
    %23 = vector.shape_cast %22 : vector<128xf32> to vector<128x1xf32>
    %24 = vector.broadcast %23 : vector<128x1xf32> to vector<128x8xf32>
    %25 = arith.cmpf ole, %20, %24 : vector<128x8xf32>
    %c8_i32 = arith.constant 8 : i32
    %26 = vector.broadcast %c8_i32 : i32 to vector<128x8xi32>
    %27 = arith.select %25, %21, %26 : vector<128x8xi1>, vector<128x8xi32>
    %cst_13 = arith.constant dense<2147483647> : vector<128xi32>
    %28 = vector.multi_reduction <minsi>, %27, %cst_13 [1] : vector<128x8xi32> to vector<128xi32>
    %29 = vector.shape_cast %28 : vector<128xi32> to vector<128x1xi32>
    %30 = math.sqrt %23 : vector<128x1xf32>
    %cst_14 = arith.constant 1.000000e-10 : f32
    %31 = vector.broadcast %cst_14 : f32 to vector<128x1xf32>
    %32 = arith.maximumf %30, %31 : vector<128x1xf32>
    %cst_15 = arith.constant 1.000000e+00 : f32
    %33 = vector.broadcast %cst_15 : f32 to vector<128x1xf32>
    %34 = arith.divf %33, %32 : vector<128x1xf32>
    %35 = vector.broadcast %29 : vector<128x1xi32> to vector<128x8xi32>
    %36 = arith.cmpi eq, %21, %35 : vector<128x8xi32>
    %cst_16 = arith.constant 0x7F800000 : f32
    %37 = vector.broadcast %cst_16 : f32 to vector<128x8xf32>
    %38 = arith.select %36, %37, %20 : vector<128x8xi1>, vector<128x8xf32>
    %cst_17 = arith.constant dense<0x7F800000> : vector<128xf32>
    %39 = vector.multi_reduction <minimumf>, %38, %cst_17 [1] : vector<128x8xf32> to vector<128xf32>
    %40 = vector.shape_cast %39 : vector<128xf32> to vector<128x1xf32>
    %41 = vector.broadcast %40 : vector<128x1xf32> to vector<128x8xf32>
    %42 = arith.cmpf ole, %38, %41 : vector<128x8xf32>
    %c8_i32_18 = arith.constant 8 : i32
    %43 = vector.broadcast %c8_i32_18 : i32 to vector<128x8xi32>
    %44 = arith.select %42, %21, %43 : vector<128x8xi1>, vector<128x8xi32>
    %cst_19 = arith.constant dense<2147483647> : vector<128xi32>
    %45 = vector.multi_reduction <minsi>, %44, %cst_19 [1] : vector<128x8xi32> to vector<128xi32>
    %46 = vector.shape_cast %45 : vector<128xi32> to vector<128x1xi32>
    %47 = math.sqrt %40 : vector<128x1xf32>
    %cst_20 = arith.constant 1.000000e-10 : f32
    %48 = vector.broadcast %cst_20 : f32 to vector<128x1xf32>
    %49 = arith.maximumf %47, %48 : vector<128x1xf32>
    %cst_21 = arith.constant 1.000000e+00 : f32
    %50 = vector.broadcast %cst_21 : f32 to vector<128x1xf32>
    %51 = arith.divf %50, %49 : vector<128x1xf32>
    %52 = vector.broadcast %46 : vector<128x1xi32> to vector<128x8xi32>
    %53 = arith.cmpi eq, %21, %52 : vector<128x8xi32>
    %cst_22 = arith.constant 0x7F800000 : f32
    %54 = vector.broadcast %cst_22 : f32 to vector<128x8xf32>
    %55 = arith.select %53, %54, %38 : vector<128x8xi1>, vector<128x8xf32>
    %cst_23 = arith.constant dense<0x7F800000> : vector<128xf32>
    %56 = vector.multi_reduction <minimumf>, %55, %cst_23 [1] : vector<128x8xf32> to vector<128xf32>
    %57 = vector.shape_cast %56 : vector<128xf32> to vector<128x1xf32>
    %58 = vector.broadcast %57 : vector<128x1xf32> to vector<128x8xf32>
    %59 = arith.cmpf ole, %55, %58 : vector<128x8xf32>
    %c8_i32_24 = arith.constant 8 : i32
    %60 = vector.broadcast %c8_i32_24 : i32 to vector<128x8xi32>
    %61 = arith.select %59, %21, %60 : vector<128x8xi1>, vector<128x8xi32>
    %cst_25 = arith.constant dense<2147483647> : vector<128xi32>
    %62 = vector.multi_reduction <minsi>, %61, %cst_25 [1] : vector<128x8xi32> to vector<128xi32>
    %63 = vector.shape_cast %62 : vector<128xi32> to vector<128x1xi32>
    %64 = math.sqrt %57 : vector<128x1xf32>
    %cst_26 = arith.constant 1.000000e-10 : f32
    %65 = vector.broadcast %cst_26 : f32 to vector<128x1xf32>
    %66 = arith.maximumf %64, %65 : vector<128x1xf32>
    %cst_27 = arith.constant 1.000000e+00 : f32
    %67 = vector.broadcast %cst_27 : f32 to vector<128x1xf32>
    %68 = arith.divf %67, %66 : vector<128x1xf32>
    %69 = arith.addf %34, %51 : vector<128x1xf32>
    %70 = arith.addf %69, %68 : vector<128x1xf32>
    %cst_28 = arith.constant 1.000000e+00 : f32
    %71 = vector.broadcast %cst_28 : f32 to vector<128x1xf32>
    %72 = arith.divf %71, %70 : vector<128x1xf32>
    %73 = vector.broadcast %29 : vector<128x1xi32> to vector<128x8xi32>
    %74 = arith.cmpi eq, %21, %73 : vector<128x8xi32>
    %75 = arith.mulf %34, %72 : vector<128x1xf32>
    %cst_29 = arith.constant 0.000000e+00 : f32
    %76 = vector.shape_cast %75 : vector<128x1xf32> to vector<128x1xf32>
    %77 = vector.broadcast %76 : vector<128x1xf32> to vector<128x8xf32>
    %78 = vector.broadcast %cst_29 : f32 to vector<128x8xf32>
    %79 = arith.select %74, %77, %78 : vector<128x8xi1>, vector<128x8xf32>
    %80 = vector.broadcast %46 : vector<128x1xi32> to vector<128x8xi32>
    %81 = arith.cmpi eq, %21, %80 : vector<128x8xi32>
    %82 = arith.mulf %51, %72 : vector<128x1xf32>
    %cst_30 = arith.constant 0.000000e+00 : f32
    %83 = vector.shape_cast %82 : vector<128x1xf32> to vector<128x1xf32>
    %84 = vector.broadcast %83 : vector<128x1xf32> to vector<128x8xf32>
    %85 = vector.broadcast %cst_30 : f32 to vector<128x8xf32>
    %86 = arith.select %81, %84, %85 : vector<128x8xi1>, vector<128x8xf32>
    %87 = arith.addf %79, %86 : vector<128x8xf32>
    %88 = vector.broadcast %63 : vector<128x1xi32> to vector<128x8xi32>
    %89 = arith.cmpi eq, %21, %88 : vector<128x8xi32>
    %90 = arith.mulf %68, %72 : vector<128x1xf32>
    %cst_31 = arith.constant 0.000000e+00 : f32
    %91 = vector.shape_cast %90 : vector<128x1xf32> to vector<128x1xf32>
    %92 = vector.broadcast %91 : vector<128x1xf32> to vector<128x8xf32>
    %93 = vector.broadcast %cst_31 : f32 to vector<128x8xf32>
    %94 = arith.select %89, %92, %93 : vector<128x8xi1>, vector<128x8xf32>
    %95 = arith.addf %87, %94 : vector<128x8xf32>
    %96 = arith.truncf %95 : vector<128x8xf32> to vector<128x8xbf16>
    %cst_32 = arith.constant dense<0.000000e+00> : vector<8x128xf32>
    %97 = tpu.matmul %5, %96, %cst_32 {dimension_numbers = #tpu.dot_dimension_numbers<[1], [1], [0], [0], [0, 0, 1, 0], [], []>} : vector<8x8xbf16>, vector<128x8xbf16>, vector<8x128xf32> -> vector<8x128xf32>
    %c0_33 = arith.constant 0 : index
    %c0_34 = arith.constant 0 : index
    %98 = vector.load %arg6[%c0_33, %c0_34] : memref<32x8xbf16, #tpu.memory_space<vmem>>, vector<32x8xbf16>
    %99 = arith.truncf %97 : vector<8x128xf32> to vector<8x128xbf16>
    %cst_35 = arith.constant dense<0.000000e+00> : vector<32x128xf32>
    %100 = tpu.matmul %98, %99, %cst_35 {dimension_numbers = #tpu.dot_dimension_numbers<[1], [0], [0], [1], [0, 0, 1, 1], [], []>} : vector<32x8xbf16>, vector<8x128xbf16>, vector<32x128xf32> -> vector<32x128xf32>
    %c0_36 = arith.constant 0 : index
    %c0_37 = arith.constant 0 : index
    %101 = vector.load %arg7[%c0_36, %c0_37] : memref<32x6xbf16, #tpu.memory_space<vmem>>, vector<32x6xbf16>
    %c0_38 = arith.constant 0 : index
    %c0_39 = arith.constant 0 : index
    %c0_40 = arith.constant 0 : index
    %102 = vector.load %arg5[%c0_38, %c0_39, %c0_40] : memref<1x6x128xbf16, #tpu.memory_space<vmem>>, vector<1x6x128xbf16>
    %103 = vector.shape_cast %102 : vector<1x6x128xbf16> to vector<6x128xbf16>
    %cst_41 = arith.constant dense<0.000000e+00> : vector<32x128xf32>
    %104 = tpu.matmul %101, %103, %cst_41 {dimension_numbers = #tpu.dot_dimension_numbers<[1], [0], [0], [1], [0, 0, 1, 1], [], []>} : vector<32x6xbf16>, vector<6x128xbf16>, vector<32x128xf32> -> vector<32x128xf32>
    %105 = arith.addf %100, %104 : vector<32x128xf32>
    %c0_42 = arith.constant 0 : index
    %c0_43 = arith.constant 0 : index
    %106 = vector.load %arg8[%c0_42, %c0_43] : memref<32x1xf32, #tpu.memory_space<vmem>>, vector<32x1xf32>
    %107 = vector.broadcast %106 : vector<32x1xf32> to vector<32x128xf32>
    %108 = arith.addf %105, %107 : vector<32x128xf32>
    %109 = arith.truncf %108 : vector<32x128xf32> to vector<32x128xbf16>
    %c0_44 = arith.constant 0 : index
    %c0_45 = arith.constant 0 : index
    %c0_46 = arith.constant 0 : index
    %110 = vector.load %arg9[%c0_44, %c0_45, %c0_46] : memref<1x32x128xbf16, #tpu.memory_space<vmem>>, vector<1x32x128xbf16>
    %111 = vector.shape_cast %110 : vector<1x32x128xbf16> to vector<32x128xbf16>
    %112 = vector.shape_cast %109 : vector<32x128xbf16> to vector<1x32x128xbf16>
    tpu.vector_store %arg9[%c0_44, %c0_45, %c0_46], %112 {strides = array<i32>} : memref<1x32x128xbf16, #tpu.memory_space<vmem>>, vector<1x32x128xbf16>,
    %113 = tpu.iota {dimensions = array<i32: 1>} : vector<1x128xi32>
    %c128_i32 = arith.constant 128 : i32
    %114 = arith.muli %arg1, %c128_i32 : i32
    %115 = vector.broadcast %114 : i32 to vector<1x128xi32>
    %116 = arith.addi %113, %115 : vector<1x128xi32>
    %c16_i32 = arith.constant 16 : i32
    %117 = vector.broadcast %c16_i32 : i32 to vector<1x128xi32>
    %118 = arith.cmpi slt, %116, %117 : vector<1x128xi32>
    %cst_47 = arith.constant 0.000000e+00 : f32
    %119 = vector.shape_cast %118 : vector<1x128xi1> to vector<1x128xi1>
    %120 = vector.broadcast %119 : vector<1x128xi1> to vector<32x128xi1>
    %121 = vector.broadcast %cst_47 : f32 to vector<32x128xf32>
    %122 = arith.select %120, %108, %121 : vector<32x128xi1>, vector<32x128xf32>
    %cst_48 = arith.constant dense<0.000000e+00> : vector<32xf32>
    %123 = vector.multi_reduction <add>, %122, %cst_48 [1] : vector<32x128xf32> to vector<32xf32>
    %124 = vector.shape_cast %123 : vector<32xf32> to vector<32x1xf32>
    %125 = arith.mulf %122, %122 : vector<32x128xf32>
    %cst_49 = arith.constant dense<0.000000e+00> : vector<32xf32>
    %126 = vector.multi_reduction <add>, %125, %cst_49 [1] : vector<32x128xf32> to vector<32xf32>
    %127 = vector.shape_cast %126 : vector<32xf32> to vector<32x1xf32>
    %c0_50 = arith.constant 0 : index
    %c0_51 = arith.constant 0 : index
    %c0_52 = arith.constant 0 : index
    %c0_53 = arith.constant 0 : index
    %128 = vector.load %arg10[%c0_50, %c0_51, %c0_52, %c0_53] : memref<1x1x32x1xf32, #tpu.memory_space<vmem>>, vector<1x1x32x1xf32>
    %129 = vector.shape_cast %128 : vector<1x1x32x1xf32> to vector<32x1xf32>
    %130 = vector.shape_cast %124 : vector<32x1xf32> to vector<1x1x32x1xf32>
    tpu.vector_store %arg10[%c0_50, %c0_51, %c0_52, %c0_53], %130 {strides = array<i32>} : memref<1x1x32x1xf32, #tpu.memory_space<vmem>>, vector<1x1x32x1xf32>,
    %c0_54 = arith.constant 0 : index
    %c0_55 = arith.constant 0 : index
    %c0_56 = arith.constant 0 : index
    %c0_57 = arith.constant 0 : index
    %131 = vector.load %arg11[%c0_54, %c0_55, %c0_56, %c0_57] : memref<1x1x32x1xf32, #tpu.memory_space<vmem>>, vector<1x1x32x1xf32>
    %132 = vector.shape_cast %131 : vector<1x1x32x1xf32> to vector<32x1xf32>
    %133 = vector.shape_cast %127 : vector<32x1xf32> to vector<1x1x32x1xf32>
    tpu.vector_store %arg11[%c0_54, %c0_55, %c0_56, %c0_57], %133 {strides = array<i32>} : memref<1x1x32x1xf32, #tpu.memory_space<vmem>>, vector<1x1x32x1xf32>,
    return
  }
  func.func @transform_0(%arg0: i32, %arg1: i32) -> (i32, i32, i32) {
    %c0_i32 = arith.constant 0 : i32
    %c0_i32_0 = arith.constant 0 : i32
    return %arg0, %arg1, %c0_i32 : i32, i32, i32
  }
  func.func @transform_1(%arg0: i32, %arg1: i32) -> (i32, i32, i32) {
    %c0_i32 = arith.constant 0 : i32
    %c0_i32_0 = arith.constant 0 : i32
    %c0_i32_1 = arith.constant 0 : i32
    return %arg0, %c0_i32, %c0_i32_0 : i32, i32, i32
  }
  func.func @transform_2(%arg0: i32, %arg1: i32) -> (i32, i32, i32) {
    %c0_i32 = arith.constant 0 : i32
    %c0_i32_0 = arith.constant 0 : i32
    %c0_i32_1 = arith.constant 0 : i32
    return %arg0, %c0_i32, %c0_i32_0 : i32, i32, i32
  }
  func.func @transform_3(%arg0: i32, %arg1: i32) -> (i32, i32, i32) {
    %c0_i32 = arith.constant 0 : i32
    %c0_i32_0 = arith.constant 0 : i32
    return %arg0, %c0_i32, %arg1 : i32, i32, i32
  }
  func.func @transform_4(%arg0: i32, %arg1: i32) -> (i32, i32) {
    %c0_i32 = arith.constant 0 : i32
    %c0_i32_0 = arith.constant 0 : i32
    %c0_i32_1 = arith.constant 0 : i32
    return %c0_i32, %c0_i32_0 : i32, i32
  }
  func.func @transform_5(%arg0: i32, %arg1: i32) -> (i32, i32) {
    %c0_i32 = arith.constant 0 : i32
    %c0_i32_0 = arith.constant 0 : i32
    %c0_i32_1 = arith.constant 0 : i32
    return %c0_i32, %c0_i32_0 : i32, i32
  }
  func.func @transform_6(%arg0: i32, %arg1: i32) -> (i32, i32) {
    %c0_i32 = arith.constant 0 : i32
    %c0_i32_0 = arith.constant 0 : i32
    %c0_i32_1 = arith.constant 0 : i32
    return %c0_i32, %c0_i32_0 : i32, i32
  }
  func.func @transform_7(%arg0: i32, %arg1: i32) -> (i32, i32, i32) {
    %c0_i32 = arith.constant 0 : i32
    %c0_i32_0 = arith.constant 0 : i32
    return %arg0, %c0_i32, %arg1 : i32, i32, i32
  }
  func.func @transform_8(%arg0: i32, %arg1: i32) -> (i32, i32, i32, i32) {
    %c0_i32 = arith.constant 0 : i32
    %c0_i32_0 = arith.constant 0 : i32
    %c0_i32_1 = arith.constant 0 : i32
    return %arg0, %arg1, %c0_i32, %c0_i32_0 : i32, i32, i32, i32
  }
  func.func @transform_9(%arg0: i32, %arg1: i32) -> (i32, i32, i32, i32) {
    %c0_i32 = arith.constant 0 : i32
    %c0_i32_0 = arith.constant 0 : i32
    %c0_i32_1 = arith.constant 0 : i32
    return %arg0, %arg1, %c0_i32, %c0_i32_0 : i32, i32, i32, i32
  }
}

</mosaic_0001>

<bundles_post_ra>
// kernel: pointnet_fp_module.5
= control target key start
LH: loop header
LB: loop body
LE: loop exit
PB: predicated region body
PF: predicated region fallthrough
CT: control target
= control target key end

     0   :  { %8 = vsyncpa [#allocation3], 0  ;;  %s616_s0 = inlined_call_operand.vmem [shape: bf16[2,16,128], index: 0, kind: input, shape index: {}]   ;;  %s617_s1 = inlined_call_operand.vmem [shape: f32[16,1], index: 1, kind: input, shape index: {}]   ;;  %s618_s2 = inlined_call_operand.vmem [shape: f32[16,1], index: 2, kind: input, shape index: {}]   ;;  %s619_s3 = inlined_call_operand.hbm [shape: f32[2,16,128], index: 3, kind: output, shape index: {}]  }
   0x1   :  { %10 = vsyncpa [#allocation3 + $0x1], 0  ;;  %s507_s12 = smov 0   ;;  %s509_s13 = smov 0  }
   0x2   :  { %s511_s14 = smov 0   ;;  %s513_s15 = smov 0  }
   0x3   :  { %s515_s16 = smov 0   ;;  %s517_s17 = smov 0  }
   0x4 LB: > { %s325_s18 = sadd.s32 4294967295, %s482_s17   ;;  %s326_s19 = sadd.s32 4294967294, %s482_s17   ;;  %s482_s17 = sphi %s517_s17, %s16_s17   ;;  %s478_s16 = sphi %s515_s16, %s626_s16   ;;  %s474_s15 = sphi %s513_s15, %s625_s15   ;;  %s470_s14 = sphi %s511_s14, %s624_s14   ;;  %s466_s13 = sphi %s509_s13, %s623_s13   ;;  %s462_s12 = sphi %s507_s12, %s622_s12  }
   0x5   : > { %s28_s20 = sadd.s32 1, %s478_s16  ;;  %s107_s21 = sadd.s32 1, %s470_s14 }
   0x6   : > { %p30_p0 = scmp.ge.s32.totalorder %s28_s20, 2  ;;  %p117_p1 = scmp.ne.s32.totalorder %s470_s14, %s466_s13 }
   0x7   : > { %p118_p2 = scmp.eq.s32.totalorder %s325_s18, 1  ;;  %p123_p3 = scmp.ne.s32.totalorder %s466_s13, %s462_s12 }
   0x8   : > { %s628_s20 = smov (%p30_p0, %s28_s20), 0  ;;  %p124_p5 = scmp.eq.s32.totalorder %s326_s19, 1 }
   0x9   : > { %p547_p4 = por %p118_p2, %p117_p1  ;;  %s102_s23 = ssub.s32 %s478_s16, %s628_s20 }
   0xa   : > { %p329_p6 = scmp.ge.s32.totalorder %s482_s17, 1  ;;  %p105_p7 = scmp.eq.s32.totalorder %s102_s23, 0 }
   0xb   : > { %p554_p8 = por %p124_p5, %p123_p3  ;;  %p159_p9 = scmp.lt.s32.totalorder %s482_s17, 3 }
   0xc   : > { %s560_s25 = scalar_select %p105_p7, %s470_s14, %s107_s21  }
   0xd   : > { %p160_p10 = pnand %p329_p6, %p159_p9 }
   0xe   : > { %p186_p11 = scmp.lt.s32.totalorder (!%p160_p10), %s474_s15, 1  ;;  %s183_s18 = sand.u32 (!%p160_p10), 1, %s466_s13  }
   0xf   : > { %163 = sbr.rel (%p160_p10) target bundleno = 155 (0x9b), region = 32  ;;  %s330_s19 = sshll.u32 (!%p160_p10), %s183_s18, 4 }
  0x10   : > { %s339_s21 = sshll.u32 (!%p160_p10), %s474_s15, 4  ;;  %s185_s28 = scalar_lea.vmem (!%p160_p10), [#allocation2], %s330_s19 }
  0x11   : > { %s243_s27 = scalar_lea.hbm (!%p160_p10), %s619_s3, %s339_s21  ;;  %s244_s29 = sshll.u32 (!%p160_p10), %s185_s28, 4  ;;  %s245_s29 = int_to_ptr.vmem [resolvable:$true] %s244_s29 }
  0x12   : > { %s246_s30 = sshll.u32 (!%p160_p10), %s243_s27, 4  ;;  %s247_s30 = int_to_ptr.hbm [resolvable:$true] %s246_s30 }
  0x13   : > { %s418_s4 = sshra.s32 (!%p160_p10), %s247_s30, 4  ;;  %s419_s4 = int_to_ptr.hbm [resolvable:$true] %s418_s4 }
  0x14   : > { %v212_v0 = vld [vmem:[%s618_s2] sm:$0xff]  ;;  %v484_v2 = vmov 0   ;;  %v213_v3 = vld [vmem:[%s618_s2 + $0x8] sm:$0xff]  ;;  %s187_s7 = scalar_select %p186_p11, %s474_s15, 1 }
  0x15   : > { %v198_v1 = vld [vmem:[%s617_s1] sm:$0xff]  ;;  %403 = vset.pattern.permute.xlu1 %v484_v2  ;;  %402 = vset.pattern.permute.xlu0 %v484_v2  ;;  %v199_v4 = vld [vmem:[%s617_s1 + $0x8] sm:$0xff]  ;;  %s231_s15 = scalar_lea.sflag [#allocation3], %s183_s18  ;;  %s420_s5 = scalar_lea.hbm %s419_s4, 16 }
  0x16   : > { %216 = vperm.xlu1 %403, %v212_v0   ;;  %202 = vperm.xlu0 %402, %v198_v1   ;;  %s338_s8 = sshll.u32 %s187_s7, 3  ;;  %p421_p12 = scmp.ne.s32.totalorder %s419_s4, %s420_s5 }
  0x17   : > { %s193_s11 = scalar_lea.vmem %s616_s0, %s338_s8  ;;  %s424_s8 = scalar_lea.hbm %s619_s3, 32 }
  0x18   : > { %v341_v5 = vld [vmem:[%s193_s11] sm:$0xff]   ;;  %p422_p13 = pnand %p421_p12, %p547_p4  ;;  %p425_p1 = scmp.lt.s32.totalorder %s419_s4, %s619_s3 }
  0x19   : > { %v342_v6 = vunpack.c.l.bf16 %v341_v5  ;;  %v343_v12 = vunpack.c.h.bf16 %v341_v5  ;;  %p426_p2 = scmp.lt.s32.totalorder %s424_s8, %s420_s5 }
  0x1a   : > { %p423_p0 = pneg %p422_p13 }
  0x1b   : > { %p427_p3 = por %p426_p2, %p425_p1 }
  0x1d   : > { %p428_p5 = pnand %p427_p3, %p423_p0 }
  0x1e   : > { %221 = vperm.xlu1 %403, %v213_v3   ;;  %207 = vperm.xlu0 %402, %v199_v4  }
  0x88   : > { %v217_v7 = vpop.permute.xlu1 %216  ;;  %v203_v8 = vpop.permute.xlu0 %202 }
  0x89   : > { %v210_v9 = vmul.f32 %v342_v6, %v203_v8 }
  0x8b   : > { %v224_v10 = vadd.f32 %v217_v7, %v210_v9 }
  0x8d   : > { %v226_v11 = vmax.f32 %v224_v10, 0.0 }
  0x8f   : > { %228 = vst [vmem:[%s185_s28] sm:$0xff] %v226_v11 }
  0x90   : > { %v208_v13 = vpop.permute.xlu0 %207  ;;  %v222_v15 = vpop.permute.xlu1 %221 }
  0x91   : > { %v211_v14 = vmul.f32 %v343_v12, %v208_v13 }
  0x93   : > { %v225_v16 = vadd.f32 %v222_v15, %v211_v14 }
  0x95   : > { %v227_v17 = vmax.f32 %v225_v16, 0.0 }
  0x97   : > { %229 = vst [vmem:[%s185_s28 + $0x8] sm:$0xff] %v227_v17 }
  0x98   : > { %431 = shalt.err (!%p428_p5)
}
  0x99   : > { %s485_s11 = smov 128   ;;  %s486_s18 = smov 8  }
  0x9a   : > { %344 = dma.vmem_to_hbm [thread:$0]  (%p547_p4), %s245_s29, 256, %s247_s30, %s231_s15, %s485_s11, %s485_s11, %s486_s18  }
  0x9b PF: > { %p350_p6 = scmp.ge.s32.totalorder %s482_s17, 2  ;;  %s261_s19 = sand.u32 1, %s462_s12  }
  0x9c   : > { %s262_s21 = scalar_lea.sflag [#allocation3], %s261_s19 }
  0x9d   : > { %p347_p7 = pnand %p350_p6, %p554_p8 }
  0x9f   : > { %p348_p9 = pneg %p347_p7 }
  0xa1   : > { %457 = dma.done.wait (%p348_p9), %s262_s21, 256  }
  0xa2   : > { %459 = vsyncadd (%p348_p9), %s262_s21, 4294967040  ;;  %s16_s17 = sadd.s32 1, %s482_s17   ;;  %s622_s12 = smov %s466_s13 }
  0xa3   : > { %p13_p10 = scmp.ge.s32.totalorder %s16_s17, 4   ;;  %s623_s13 = smov %s470_s14 }
  0xa4   : > { %s624_s14 = smov %s560_s25  ;;  %s625_s15 = smov %s478_s16 }
  0xa5   : > { %s626_s16 = smov %s628_s20  ;;  %15 = sbr.rel (!%p13_p10) target bundleno = 4 (0x4), region = 67 }
  0xaa   :  { %268 = vsyncpa [#allocation3], 1 }
  0xab   :  { %270 = vsyncpa [#allocation3 + $0x1], 1 }

// kernel: pointnet_fp_module.4
= control target key start
LH: loop header
LB: loop body
LE: loop exit
PB: predicated region body
PF: predicated region fallthrough
CT: control target
= control target key end

     0   :  { %s813_s24 = smov 0   ;;  %s815_s25 = smov 0   ;;  %s898_s0 = inlined_call_operand.vmem [shape: bf16[2,32,128], index: 0, kind: input, shape index: {}]   ;;  %s899_s1 = inlined_call_operand.vmem [shape: f32[32,1], index: 1, kind: input, shape index: {}]   ;;  %s900_s2 = inlined_call_operand.vmem [shape: f32[32,1], index: 2, kind: input, shape index: {}]   ;;  %s901_s3 = inlined_call_operand.vmem [shape: bf16[16,32], index: 3, kind: input, shape index: {}]   ;;  %s902_s4 = inlined_call_operand.vmem [shape: f32[16,1], index: 4, kind: input, shape index: {}]   ;;  %s903_s5 = inlined_call_operand.vmem [shape: bf16[2,16,128], index: 5, kind: output, shape index: {0}]   ;;  %s904_s6 = inlined_call_operand.vmem [shape: f32[2,1,16,1], index: 6, kind: output, shape index: {1}]   ;;  %s905_s7 = inlined_call_operand.vmem [shape: f32[2,1,16,1], index: 7, kind: output, shape index: {2}]  }
   0x1   :  { %s817_s26 = smov 0  }
   0x2 LB: > { %s30_s27 = sadd.s32 1, %s766_s25  ;;  %p685_p0 = scmp.ge.s32.totalorder %s770_s26, 1  ;;  %s770_s26 = sphi %s817_s26, %s18_s26   ;;  %s766_s25 = sphi %s815_s25, %s907_s25   ;;  %s762_s24 = sphi %s813_s24, %s906_s24  }
   0x3   : > { %p32_p1 = scmp.ge.s32.totalorder %s30_s27, 2  ;;  %p265_p2 = scmp.lt.s32.totalorder %s770_s26, 3 }
   0x5   : > { %s909_s27 = smov (%p32_p1, %s30_s27), 0  ;;  %p266_p3 = pnand %p685_p0, %p265_p2 }
   0x6   : > { %p321_p4 = scmp.lt.s32.totalorder (!%p266_p3), %s762_s24, 1 }
   0x7   : > { %269 = sbr.rel (%p266_p3) target bundleno = 416 (0x1a0), region = 40 }
   0xc   : > { %v394_v0 = vld [vmem:[%s900_s2 + $0x10] sm:$0xff]  ;;  %v772_v2 = vmov 0   ;;  %v364_v3 = vld [vmem:[%s899_s1] sm:$0xff]  ;;  %v395_v4 = vld [vmem:[%s900_s2 + $0x18] sm:$0xff]  ;;  %s911_s24 = smov (!%p321_p4, %s762_s24), 1  ;;  %vm445_vm0 = vcmask 261120   ;;  %v467_v40 = vlaneseq }
   0xd   : > { %v366_v1 = vld [vmem:[%s899_s1 + $0x10] sm:$0xff]  ;;  %746 = vset.pattern.permute.xlu1 %v772_v2  ;;  %745 = vset.pattern.permute.xlu0 %v772_v2  ;;  %v367_v5 = vld [vmem:[%s899_s1 + $0x18] sm:$0xff]  ;;  %v365_v6 = vld [vmem:[%s899_s1 + $0x8] sm:$0xff]  ;;  %s868_s29 = sshll.u32 %s911_s24, 4  ;;  %s702_s12 = sshll.u32 %s911_s24, 3  ;;  %vm487_vm2 = vcmask 7168  }
   0xe   : > { %408 = vperm.xlu1 %746, %v394_v0   ;;  %380 = vperm.xlu0 %745, %v366_v1   ;;  %v393_v7 = vld [vmem:[%s900_s2 + $0x8] sm:$0xff]  ;;  %v392_v8 = vld [vmem:[%s900_s2] sm:$0xff]  ;;  %s328_s9 = scalar_lea.vmem %s898_s0, %s868_s29  ;;  %v468_v41 = vand.u32 127, %v467_v40  ;;  %s336_s15 = scalar_lea.vmem %s903_s5, %s702_s12 }
   0xf   : > { %747 = vset.pattern.permute.xlu2 %v772_v2  ;;  %v428_v9 = vld [vmem:[%s902_s4] sm:$0xff]  ;;  %v429_v10 = vld [vmem:[%s902_s4 + $0x8] sm:$0xff]  ;;  %s345_s18 = scalar_lea.vmem %s904_s6, %s868_s29  ;;  %s354_s20 = scalar_lea.vmem %s905_s7, %s868_s29 }
  0x10   : > { %370 = vperm.xlu2 %747, %v364_v3   ;;  %v719_v11 = vld [vmem:[%s328_s9 + $0x8] sm:$0xff]   ;;  %v707_v18 = vld [vmem:[%s328_s9] sm:$0xff]   ;;  %vm472_vm1 = vcmp.lt.s32.totalorder %v468_v41, 16 }
  0x11   : > { %v712_v14 = vunpack.c.l.bf16 %v719_v11  ;;  %v713_v17 = vunpack.c.h.bf16 %v719_v11  ;;  %v708_v23 = vunpack.c.l.bf16 %v707_v18  ;;  %v709_v24 = vunpack.c.h.bf16 %v707_v18  ;;  %v705_v39 = vld [vmem:[%s901_s3] sm:$0xff] }
  0x16   : > { %413 = vperm.xlu1 %746, %v395_v4   ;;  %385 = vperm.xlu0 %745, %v367_v5  }
  0x18   : > { %375 = vperm.xlu2 %747, %v365_v6  }
  0x1e   : > { %403 = vperm.xlu1 %746, %v393_v7   ;;  %398 = vperm.xlu0 %745, %v392_v8  }
  0x20   : > { %432 = vperm.xlu2 %747, %v428_v9  }
  0x26   : > { %437 = vperm.xlu0 %745, %v429_v10  }
  0x6a   : > { %v371_v15 = vpop.permute.xlu2 %370 }
  0x6b   : > { %v388_v29 = vmul.f32 %v708_v23, %v371_v15 }
  0x72   : > { %v376_v28 = vpop.permute.xlu2 %375 }
  0x73   : > { %v389_v30 = vmul.f32 %v709_v24, %v376_v28 }
  0x7a   : > { %v433_v42 = vpop.permute.xlu2 %432 }
  0x80   : > { %v409_v12 = vpop.permute.xlu1 %408  ;;  %v381_v13 = vpop.permute.xlu0 %380 }
  0x81   : > { %v390_v16 = vmul.f32 %v712_v14, %v381_v13 }
  0x83   : > { %v418_v22 = vadd.f32 %v409_v12, %v390_v16 }
  0x85   : > { %v422_v26 = vmax.f32 %v418_v22, 0.0 }
  0x88   : > { %v414_v19 = vpop.permute.xlu1 %413  ;;  %v386_v20 = vpop.permute.xlu0 %385 }
  0x89   : > { %v391_v21 = vmul.f32 %v713_v17, %v386_v20 }
  0x8b   : > { %v419_v25 = vadd.f32 %v414_v19, %v391_v21 }
  0x8d   : > { %v423_v27 = vmax.f32 %v419_v25, 0.0 }
  0x8f   : > { %v427_v31 = vpack.c.bf16 %v423_v27, %v422_v26 }
  0x90   : > { %v404_v32 = vpop.permute.xlu1 %403  ;;  %v399_v33 = vpop.permute.xlu0 %398 }
  0x91   : > { %v417_v34 = vadd.f32 %v404_v32, %v389_v30  ;;  %v416_v35 = vadd.f32 %v399_v33, %v388_v29  ;;  %455 = vmatpush.bf16.msra.mxu0 %v427_v31 }
  0x93   : > { %v421_v36 = vmax.f32 %v417_v34, 0.0  ;;  %v420_v37 = vmax.f32 %v416_v35, 0.0 }
  0x95   : > { %v426_v38 = vpack.c.bf16 %v421_v36, %v420_v37 }
  0x97   : > { %456 = vmatpush.bf16.msra.mxu0 %v426_v38 }
  0x98   : > { %v438_v47 = vpop.permute.xlu0 %437 }
  0x9a   : > { %698 = vmatmul.msk.bf16.vlgmr.msra.gmra.mxu0 %vm445_vm0, %v705_v39 }
 0x117   : > { %v458_v43 = vpop.f32.mrf.mxu0 }
 0x118   : > { %v459_v44 = vadd.f32 %v458_v43, %v433_v42 }
 0x11a   : > { %v475_v45 = vsel %vm472_vm1, %v459_v44, 0.0 }
 0x11b   : > { %477 = vadd.xlane.f32.xlu1 %v475_v45  ;;  %v481_v46 = vmul.f32 %v475_v45, %v475_v45 }
 0x11d   : > { %483 = vadd.xlane.f32.xlu0 %v481_v46 }
 0x11f   : > { %v460_v48 = vpop.f32.mrf.mxu0 }
 0x120   : > { %v461_v49 = vadd.f32 %v460_v48, %v438_v47 }
 0x122   : > { %v717_v50 = vpack.c.bf16 %v461_v49, %v459_v44  ;;  %v476_v51 = vsel %vm472_vm1, %v461_v49, 0.0 }
 0x123   : > { %479 = vadd.xlane.f32.xlu2 %v476_v51  ;;  %v482_v52 = vmul.f32 %v476_v51, %v476_v51 }
 0x124   : > { %718 = vst [vmem:[%s336_s15] sm:$0xff] %v717_v50  }
 0x12b   : > { %485 = vadd.xlane.f32.xlu2 %v482_v52 }
 0x18e   : > { %v478_v53 = vpop.xlane.xlu1 %477 }
 0x18f   : > { %488 = vst.msk [vmem:[%s345_s18] sm:$0xff] %vm487_vm2, %v478_v53 }
 0x190   : > { %v484_v54 = vpop.xlane.xlu0 %483 }
 0x191   : > { %490 = vst.msk [vmem:[%s354_s20] sm:$0xff] %vm487_vm2, %v484_v54 }
 0x196   : > { %v480_v55 = vpop.xlane.xlu2 %479 }
 0x197   : > { %489 = vst.msk [vmem:[%s345_s18 + $0x8] sm:$0xff] %vm487_vm2, %v480_v55 }
 0x19e   : > { %v486_v56 = vpop.xlane.xlu2 %485 }
 0x19f   : > { %491 = vst.msk [vmem:[%s354_s20 + $0x8] sm:$0xff] %vm487_vm2, %v486_v56 }
 0x1a0 PF: > { %s18_s26 = sadd.s32 1, %s770_s26   ;;  %s906_s24 = smov %s766_s25 }
 0x1a1   : > { %p15_p5 = scmp.ge.s32.totalorder %s18_s26, 4   ;;  %s907_s25 = smov %s909_s27 }
 0x1a3   :  { %17 = sbr.rel (!%p15_p5) target bundleno = 2 (0x2), region = 94 }

// kernel: pointnet_fp_module.3
= control target key start
LH: loop header
LB: loop body
LE: loop exit
PB: predicated region body
PF: predicated region fallthrough
CT: control target
= control target key end

     0   :  { %s4379_s30 = smov 0   ;;  %s4381_s10 = smov 0   ;;  %s8316_s0 = inlined_call_operand.vmem [shape: f32[2,128,3], index: 0, kind: input, shape index: {}]   ;;  %s8317_s1 = inlined_call_operand.vmem [shape: f32[2,3,8], index: 1, kind: input, shape index: {}]   ;;  %s8318_s2 = inlined_call_operand.vmem [shape: bf16[2,8,8], index: 2, kind: input, shape index: {}]   ;;  %s8319_s3 = inlined_call_operand.vmem [shape: bf16[2,6,128], index: 3, kind: input, shape index: {}]   ;;  %s8320_s4 = inlined_call_operand.vmem [shape: bf16[32,8], index: 4, kind: input, shape index: {}]   ;;  %s8321_s5 = inlined_call_operand.vmem [shape: bf16[32,6], index: 5, kind: input, shape index: {}]   ;;  %s8322_s6 = inlined_call_operand.vmem [shape: f32[32,1], index: 6, kind: input, shape index: {}]   ;;  %s8323_s7 = inlined_call_operand.vmem [shape: bf16[2,32,128], index: 7, kind: output, shape index: {0}]   ;;  %s8324_s8 = inlined_call_operand.vmem [shape: f32[2,1,32,1], index: 8, kind: output, shape index: {1}]   ;;  %s8325_s9 = inlined_call_operand.vmem [shape: f32[2,1,32,1], index: 9, kind: output, shape index: {2}]  }
   0x1   :  { %s4383_s11 = smov 0  }
   0x2 LB: > { %s32_s12 = sadd.s32 1, %s4322_s10  ;;  %p3980_p0 = scmp.ge.s32.totalorder %s4326_s11, 1  ;;  %s4326_s11 = sphi %s4383_s11, %s20_s11   ;;  %s4322_s10 = sphi %s4381_s10, %s8973_s10   ;;  %s4318_s30 = sphi %s4379_s30, %s8972_s30  }
   0x3   : > { %p34_p1 = scmp.ge.s32.totalorder %s32_s12, 2  ;;  %p349_p2 = scmp.lt.s32.totalorder %s4326_s11, 3 }
   0x5   : > { %s8975_s12 = smov (%p34_p1, %s32_s12), 0  ;;  %p350_p3 = pnand %p3980_p0, %p349_p2 }
   0x7   : > { %353 = sbr.rel (%p350_p3) target bundleno = 1890 (0x762), region = 48 }
   0xc   : > { %p426_p4 = scmp.lt.s32.totalorder %s4318_s30, 1  ;;  %vm8336_vm0 = vcmask 1042432   ;;  %vm511_vm1 = vcmask 23552   ;;  %vm561_vm2 = vcmask 59392   ;;  %vm752_vm3 = vcmask 64512  }
   0xe   : > { %s8977_s30 = smov (!%p426_p4, %s4318_s30), 1 }
   0xf   : > { %s4032_s13 = sshll.u32 %s8977_s30, 7  ;;  %s4401_s14 = sshll.u32 %s8977_s30, 2 }
  0x10   : > { %s4406_s17 = scalar_lea.vmem %s8316_s0, %s4032_s13  ;;  %s438_s20 = scalar_lea.vmem %s8317_s1, %s4401_s14 }
  0x11   : > { %v4412_v0 = vld [vmem:[%s438_s20] sm:$0x7]  ;;  %v486_v1 = vld [vmem:[%s4406_s17 + $0x48] sm:$0xff]  ;;  %v487_v4 = vld [vmem:[%s4406_s17 + $0x50] sm:$0xff]  ;;  %s449_s23 = scalar_lea.vmem %s8319_s3, %s4401_s14  ;;  %s442_s13 = scalar_lea.vmem %s8318_s2, %s4401_s14 }
  0x12   : > { %v489_v2 = vld [vmem:[%s4406_s17 + $0x60] sm:$0xff]  ;;  %4051 = vmatpush.msk.msra.mxu2 %vm8336_vm0, %v4412_v0  ;;  %3992 = vmatpush.msk.msra.mxu0 %vm8336_vm0, %v4412_v0  ;;  %v490_v6 = vld [vmem:[%s4406_s17 + $0x68] sm:$0xff]  ;;  %v505_v7 = vmul.f32 %v487_v4, %v487_v4  ;;  %v488_v11 = vld [vmem:[%s4406_s17 + $0x58] sm:$0xff]  ;;  %v504_v16 = vmul.f32 %v486_v1, %v486_v1  ;;  %v560_v47 = vmul.f32 %v4412_v0, %v4412_v0  ;;  %s4033_s26 = sshll.u32 %s8977_s30, 4 }
  0x13   : > { %v507_v3 = vmul.f32 %v489_v2, %v489_v2  ;;  %v4422_v5 = vld [vmem:[%s4406_s17] sm:$0xff]  ;;  %4002 = vmatmul.msk.f32.vlgmr.msra.gmra.mxu2 %vm511_vm1, %v486_v1  ;;  %v508_v10 = vmul.f32 %v490_v6, %v490_v6  ;;  %v506_v12 = vmul.f32 %v488_v11, %v488_v11  ;;  %v4432_v13 = vld [vmem:[%s4406_s17 + $0x8] sm:$0xff]  ;;  %v479_v17 = vld [vmem:[%s4406_s17 + $0x10] sm:$0xff]  ;;  %s457_s29 = scalar_lea.vmem %s8323_s7, %s4033_s26 }
  0x14   : > { %3993 = vmatmul.msk.f32.vlgmr.msra.gmra.mxu0 %vm511_vm1, %v4422_v5  ;;  %v542_v9 = vsel %vm511_vm1, %v505_v7, 0.0  ;;  %v539_v18 = vsel %vm511_vm1, %v504_v16, 0.0  ;;  %v491_v19 = vld [vmem:[%s4406_s17 + $0x70] sm:$0xff]  ;;  %v492_v22 = vld [vmem:[%s4406_s17 + $0x78] sm:$0xff]  ;;  %v481_v25 = vld [vmem:[%s4406_s17 + $0x20] sm:$0xff]  ;;  %v497_v41 = vmul.f32 %v479_v17, %v479_v17  ;;  %v562_v49 = vsel %vm561_vm2, %v560_v47, 0.0 }
  0x15   : > { %v548_v8 = vsel %vm511_vm1, %v507_v3, 0.0  ;;  %543 = vadd.xlane.f32.xlu2 %v542_v9  ;;  %v551_v14 = vsel %vm511_vm1, %v508_v10, 0.0  ;;  %v545_v15 = vsel %vm511_vm1, %v506_v12, 0.0  ;;  %v509_v20 = vmul.f32 %v491_v19, %v491_v19  ;;  %v480_v24 = vld [vmem:[%s4406_s17 + $0x18] sm:$0xff]  ;;  %v483_v29 = vld [vmem:[%s4406_s17 + $0x30] sm:$0xff]  ;;  %v485_v30 = vld [vmem:[%s4406_s17 + $0x40] sm:$0xff] }
  0x16   : > { %549 = vadd.xlane.f32.xlu1 %v548_v8  ;;  %v510_v23 = vmul.f32 %v492_v22, %v492_v22  ;;  %v499_v27 = vmul.f32 %v481_v25, %v481_v25  ;;  %v501_v31 = vmul.f32 %v483_v29, %v483_v29  ;;  %v503_v32 = vmul.f32 %v485_v30, %v485_v30  ;;  %v482_v35 = vld [vmem:[%s4406_s17 + $0x28] sm:$0xff]  ;;  %v484_v36 = vld [vmem:[%s4406_s17 + $0x38] sm:$0xff] }
  0x17   : > { %v554_v21 = vsel %vm511_vm1, %v509_v20, 0.0  ;;  %v500_v37 = vmul.f32 %v482_v35, %v482_v35  ;;  %v502_v38 = vmul.f32 %v484_v36, %v484_v36  ;;  %v498_v42 = vmul.f32 %v480_v24, %v480_v24 }
  0x18   : > { %555 = vadd.xlane.f32.xlu0 %v554_v21  ;;  %v557_v26 = vsel %vm511_vm1, %v510_v23, 0.0  ;;  %v524_v28 = vsel %vm511_vm1, %v499_v27, 0.0  ;;  %v530_v33 = vsel %vm511_vm1, %v501_v31, 0.0  ;;  %v536_v34 = vsel %vm511_vm1, %v503_v32, 0.0 }
  0x19   : > { %v527_v39 = vsel %vm511_vm1, %v500_v37, 0.0  ;;  %v533_v40 = vsel %vm511_vm1, %v502_v38, 0.0  ;;  %v518_v43 = vsel %vm511_vm1, %v497_v41, 0.0  ;;  %v521_v44 = vsel %vm511_vm1, %v498_v42, 0.0 }
  0x1a   : > { %v563_v51 = vrot.slane %v562_v49, 4 }
  0x1b   : > { %4003 = vmatmul.msk.f32.gmra.mxu2 %vm511_vm1, %v487_v4 }
  0x1c   : > { %3994 = vmatmul.msk.f32.gmra.mxu0 %vm511_vm1, %v4432_v13  ;;  %v564_v53 = vadd.f32 %v563_v51, %v562_v49 }
  0x1d   : > { %546 = vadd.xlane.f32.xlu2 %v545_v15 }
  0x1e   : > { %552 = vadd.xlane.f32.xlu1 %v551_v14  ;;  %v565_v55 = vrot.slane %v564_v53, 2 }
  0x20   : > { %558 = vadd.xlane.f32.xlu0 %v557_v26  ;;  %v566_v58 = vadd.f32 %v565_v55, %v564_v53 }
  0x22   : > { %v567_v60 = vrot.slane %v566_v58, 1 }
  0x23   : > { %4004 = vmatmul.msk.f32.gmra.mxu2 %vm511_vm1, %v488_v11 }
  0x24   : > { %3995 = vmatmul.msk.f32.gmra.mxu0 %vm511_vm1, %v479_v17  ;;  %v4480_v63 = vadd.f32 %v567_v60, %v566_v58 }
  0x25   : > { %531 = vadd.xlane.f32.xlu2 %v530_v33 }
  0x26   : > { %540 = vadd.xlane.f32.xlu1 %v539_v18 }
  0x28   : > { %537 = vadd.xlane.f32.xlu0 %v536_v34 }
  0x2b   : > { %4005 = vmatmul.msk.f32.gmra.mxu2 %vm511_vm1, %v489_v2 }
  0x2c   : > { %3996 = vmatmul.msk.f32.gmra.mxu0 %vm511_vm1, %v480_v24 }
  0x2d   : > { %528 = vadd.xlane.f32.xlu2 %v527_v39 }
  0x2e   : > { %525 = vadd.xlane.f32.xlu1 %v524_v28 }
  0x30   : > { %534 = vadd.xlane.f32.xlu0 %v533_v40 }
  0x33   : > { %4006 = vmatmul.msk.f32.gmra.mxu2 %vm511_vm1, %v490_v6 }
  0x34   : > { %3997 = vmatmul.msk.f32.gmra.mxu0 %vm511_vm1, %v481_v25 }
  0x35   : > { %519 = vadd.xlane.f32.xlu2 %v518_v43 }
  0x38   : > { %522 = vadd.xlane.f32.xlu0 %v521_v44 }
  0x3b   : > { %4007 = vmatmul.msk.f32.gmra.mxu2 %vm511_vm1, %v491_v19 }
  0x3c   : > { %3998 = vmatmul.msk.f32.gmra.mxu0 %vm511_vm1, %v482_v35  ;;  %v495_v35 = vmul.f32 %v4422_v5, %v4422_v5 }
  0x3e   : > { %v512_v47 = vsel %vm511_vm1, %v495_v35, 0.0 }
  0x43   : > { %4008 = vmatmul.msk.f32.gmra.mxu2 %vm511_vm1, %v492_v22 }
  0x44   : > { %3999 = vmatmul.msk.f32.gmra.mxu0 %vm511_vm1, %v483_v29 }
  0x4c   : > { %4000 = vmatmul.msk.f32.gmra.mxu0 %vm511_vm1, %v484_v36 }
  0x54   : > { %4001 = vmatmul.msk.f32.gmra.mxu0 %vm511_vm1, %v485_v30 }
  0x88   : > { %v544_v1 = vpop.xlane.xlu2 %543 }
  0x89   : > { %v550_v56 = vpop.xlane.xlu1 %549  ;;  %v696_v7 = vadd.f32 %v4480_v63, %v544_v1 }
  0x8a   : > { %v698_v36 = vadd.f32 %v4480_v63, %v550_v56 }
  0x8b   : > { %v556_v4 = vpop.xlane.xlu0 %555 }
  0x8c   : > { %v700_v14 = vadd.f32 %v4480_v63, %v556_v4  ;;  %v496_v4 = vmul.f32 %v4432_v13, %v4432_v13 }
  0x90   : > { %v547_v21 = vpop.xlane.xlu2 %546 }
  0x91   : > { %v4470_v45 = vpop.f32.mrf.mxu0  ;;  %v553_v62 = vpop.xlane.xlu1 %552  ;;  %v697_v41 = vadd.f32 %v4480_v63, %v547_v21 }
  0x92   : > { %v699_v0 = vadd.f32 %v4480_v63, %v553_v62 }
  0x93   : > { %v559_v23 = vpop.xlane.xlu0 %558 }
  0x94   : > { %v701_v28 = vadd.f32 %v4480_v63, %v559_v23 }
  0x96   : > { %v665_v46 = vpop.f32.mrf.mxu2 }
  0x97   : > { %v711_v24 = vmul.f32 2.0, %v665_v46 }
  0x98   : > { %v532_v40 = vpop.xlane.xlu2 %531 }
  0x99   : > { %v4474_v48 = vpop.f32.mrf.mxu0  ;;  %v541_v11 = vpop.xlane.xlu1 %540  ;;  %v692_v55 = vadd.f32 %v4480_v63, %v532_v40 }
  0x9a   : > { %v695_v19 = vadd.f32 %v4480_v63, %v541_v11 }
  0x9b   : > { %v538_v56 = vpop.xlane.xlu0 %537 }
  0x9c   : > { %v727_v27 = vsub.f32 %v695_v19, %v711_v24 }
  0x9e   : > { %v668_v50 = vpop.f32.mrf.mxu2  ;;  %v4505_v37 = vmax.f32 %v727_v27, 0.0 }
  0x9f   : > { %v712_v8 = vmul.f32 2.0, %v668_v50 }
  0xa0   : > { %v780_v50 = vsel %vm752_vm3, %v4505_v37, inf }
  0xa1   : > { %v4476_v52 = vpop.f32.mrf.mxu0  ;;  %v728_v12 = vsub.f32 %v696_v7, %v712_v8  ;;  %v526_v26 = vpop.xlane.xlu1 %525 }
  0xa2   : > { %v690_v34 = vadd.f32 %v4480_v63, %v526_v26 }
  0xa3   : > { %v4492_v20 = vmax.f32 %v728_v12, 0.0  ;;  %v535_v12 = vpop.xlane.xlu0 %534 }
  0xa4   : > { %v693_v13 = vadd.f32 %v4480_v63, %v535_v12 }
  0xa5   : > { %v783_v30 = vsel %vm752_vm3, %v4492_v20, inf }
  0xa6   : > { %v671_v54 = vpop.f32.mrf.mxu2 }
  0xa7   : > { %v713_v42 = vmul.f32 2.0, %v671_v54 }
  0xa9   : > { %v4478_v57 = vpop.f32.mrf.mxu0  ;;  %v729_v51 = vsub.f32 %v697_v41, %v713_v42 }
  0xae   : > { %v674_v59 = vpop.f32.mrf.mxu2 }
  0xaf   : > { %v714_v38 = vmul.f32 2.0, %v674_v59  ;;  %v4520_v59 = vmax.f32 %v729_v51, 0.0 }
  0xb1   : > { %v650_v61 = vpop.f32.mrf.mxu0  ;;  %v730_v49 = vsub.f32 %v698_v36, %v714_v38  ;;  %v750_v38 = vlaneseq }
  0xb2   : > { %v706_v32 = vmul.f32 2.0, %v650_v61  ;;  %v529_v61 = vpop.xlane.xlu2 %528 }
  0xb3   : > { %v4518_v58 = vmax.f32 %v730_v49, 0.0  ;;  %v691_v11 = vadd.f32 %v4480_v63, %v529_v61 }
  0xb4   : > { %v722_v46 = vsub.f32 %v690_v34, %v706_v32 }
  0xb5   : > { %v789_v1 = vsel %vm752_vm3, %v4518_v58, inf }
  0xb6   : > { %v677_v2 = vpop.f32.mrf.mxu2  ;;  %v4515_v53 = vmax.f32 %v722_v46, 0.0 }
  0xb7   : > { %v715_v3 = vmul.f32 2.0, %v677_v2  ;;  %v786_v2 = vsel %vm752_vm3, %v4520_v59, inf }
  0xb8   : > { %v765_v60 = vsel %vm752_vm3, %v4515_v53, inf }
  0xb9   : > { %v4483_v6 = vpop.f32.mrf.mxu0  ;;  %v731_v9 = vsub.f32 %v699_v0, %v715_v3  ;;  %v694_v3 = vadd.f32 %v4480_v63, %v538_v56 }
  0xba   : > { %v707_v8 = vmul.f32 2.0, %v4483_v6  ;;  %v704_v6 = vmul.f32 2.0, %v4476_v52 }
  0xbb   : > { %v4486_v10 = vmax.f32 %v731_v9, 0.0 }
  0xbd   : > { %v792_v15 = vsel %vm752_vm3, %v4486_v10, inf }
  0xbe   : > { %v680_v16 = vpop.f32.mrf.mxu2  ;;  %793 = vmin.xlane.f32.xlu2 %v792_v15 }
  0xbf   : > { %v716_v17 = vmul.f32 2.0, %v680_v16  ;;  %v723_v16 = vsub.f32 %v691_v11, %v707_v8 }
  0xc1   : > { %v656_v18 = vpop.f32.mrf.mxu0  ;;  %v732_v22 = vsub.f32 %v700_v14, %v716_v17  ;;  %v515_v14 = vsel %vm511_vm1, %v496_v4, 0.0 }
  0xc2   : > { %v708_v54 = vmul.f32 2.0, %v656_v18  ;;  %v520_v18 = vpop.xlane.xlu2 %519 }
  0xc3   : > { %v4494_v25 = vmax.f32 %v732_v22, 0.0  ;;  %v4542_v22 = vmax.f32 %v723_v16, 0.0  ;;  %v688_v23 = vadd.f32 %v4480_v63, %v520_v18 }
  0xc4   : > { %v724_v62 = vsub.f32 %v692_v55, %v708_v54 }
  0xc5   : > { %v795_v29 = vsel %vm752_vm3, %v4494_v25, inf  ;;  %v720_v27 = vsub.f32 %v688_v23, %v704_v6 }
  0xc6   : > { %v683_v31 = vpop.f32.mrf.mxu2  ;;  %796 = vmin.xlane.f32.xlu0 %v795_v29  ;;  %784 = vmin.xlane.f32.xlu2 %v783_v30  ;;  %v4532_v9 = vmax.f32 %v724_v62, 0.0  ;;  %v523_v29 = vpop.xlane.xlu0 %522  ;;  %v705_v30 = vmul.f32 2.0, %v4478_v57 }
  0xc7   : > { %v717_v33 = vmul.f32 2.0, %v683_v31  ;;  %v689_v52 = vadd.f32 %v4480_v63, %v523_v29  ;;  %v4553_v32 = vmax.f32 %v720_v27, 0.0 }
  0xc8   : > { %v771_v17 = vsel %vm752_vm3, %v4532_v9, inf }
  0xc9   : > { %v733_v39 = vsub.f32 %v701_v28, %v717_v33  ;;  %v659_v43 = vpop.f32.mrf.mxu0  ;;  %v768_v28 = vsel %vm752_vm3, %v4542_v22, inf  ;;  %v721_v33 = vsub.f32 %v689_v52, %v705_v30  ;;  %v759_v35 = vsel %vm752_vm3, %v4553_v32, inf }
  0xca   : > { %v709_v19 = vmul.f32 2.0, %v659_v43 }
  0xcb   : > { %v4508_v44 = vmax.f32 %v733_v39, 0.0  ;;  %v4559_v36 = vmax.f32 %v721_v33, 0.0  ;;  %v4563_v39 = vand.u32 127, %v750_v38 }
  0xcc   : > { %v725_v24 = vsub.f32 %v693_v13, %v709_v19 }
  0xcd   : > { %v798_v5 = vsel %vm752_vm3, %v4508_v44, inf  ;;  %v762_v57 = vsel %vm752_vm3, %v4559_v36, inf }
  0xce   : > { %799 = vmin.xlane.f32.xlu1 %v798_v5  ;;  %781 = vmin.xlane.f32.xlu2 %v780_v50  ;;  %v4550_v31 = vmax.f32 %v725_v24, 0.0 }
  0xcf   : > { %513 = vadd.xlane.f32.xlu0 %v512_v47 }
  0xd0   : > { %v774_v34 = vsel %vm752_vm3, %v4550_v31, inf }
  0xd1   : > { %v662_v0 = vpop.f32.mrf.mxu0 }
  0xd2   : > { %v710_v7 = vmul.f32 2.0, %v662_v0 }
  0xd4   : > { %v726_v15 = vsub.f32 %v694_v3, %v710_v7 }
  0xd6   : > { %790 = vmin.xlane.f32.xlu1 %v789_v1  ;;  %766 = vmin.xlane.f32.xlu2 %v765_v60  ;;  %v4538_v21 = vmax.f32 %v726_v15, 0.0 }
  0xd7   : > { %787 = vmin.xlane.f32.xlu0 %v786_v2  ;;  %v702_v2 = vmul.f32 2.0, %v4470_v45 }
  0xd8   : > { %v777_v26 = vsel %vm752_vm3, %v4538_v21, inf }
  0xde   : > { %516 = vadd.xlane.f32.xlu1 %v515_v14 }
  0xdf   : > { %772 = vmin.xlane.f32.xlu0 %v771_v17 }
  0xe6   : > { %778 = vmin.xlane.f32.xlu1 %v777_v26  ;;  %v703_v26 = vmul.f32 2.0, %v4474_v48 }
  0xe7   : > { %769 = vmin.xlane.f32.xlu0 %v768_v28 }
  0xee   : > { %775 = vmin.xlane.f32.xlu1 %v774_v34 }
  0xef   : > { %760 = vmin.xlane.f32.xlu0 %v759_v35 }
  0xf6   : > { %763 = vmin.xlane.f32.xlu1 %v762_v57 }
 0x131   : > { %v4565_v40 = vpop.xlane.xlu2 %793 }
 0x132   : > { %vm814_vm4 = vcmp.le.f32.partialorder %v4486_v10, %v4565_v40 }
 0x133   : > { %v830_v41 = vsel %vm814_vm4, %v4563_v39, 8 }
 0x134   : > { %v4571_v42 = vsel %vm752_vm3, %v830_v41, 2147483647 }
 0x135   : > { %v1030_v43 = vshra.s32 %v4571_v42, 16 }
 0x137   : > { %v4574_v46 = vcvt.s32.f32 %v1030_v43 }
 0x139   : > { %v4576_v47 = vpop.xlane.xlu0 %796  ;;  %v4578_v49 = vpop.xlane.xlu2 %784  ;;  %1033 = vmin.xlane.f32.xlu0 %v4574_v46 }
 0x13a   : > { %vm815_vm5 = vcmp.le.f32.partialorder %v4494_v25, %v4576_v47  ;;  %vm811_vm6 = vcmp.le.f32.partialorder %v4492_v20, %v4578_v49 }
 0x13b   : > { %v831_v5 = vsel %vm815_vm5, %v4563_v39, 8  ;;  %v827_v50 = vsel %vm811_vm6, %v4563_v39, 8 }
 0x13c   : > { %v4588_v51 = vsel %vm752_vm3, %v831_v5, 2147483647  ;;  %v4591_v54 = vsel %vm752_vm3, %v827_v50, 2147483647 }
 0x13d   : > { %v1045_v55 = vshra.s32 %v4588_v51, 16  ;;  %v985_v56 = vshra.s32 %v4591_v54, 16 }
 0x13f   : > { %v4597_v61 = vcvt.s32.f32 %v1045_v55  ;;  %v4599_v62 = vcvt.s32.f32 %v985_v56 }
 0x141   : > { %v4595_v60 = vpop.xlane.xlu1 %799  ;;  %v4601_v1 = vpop.xlane.xlu2 %781  ;;  %1048 = vmin.xlane.f32.xlu1 %v4597_v61  ;;  %988 = vmin.xlane.f32.xlu0 %v4599_v62 }
 0x142   : > { %v514_v0 = vpop.xlane.xlu0 %513  ;;  %8510 = vst [vmem:[#allocation2_spill] sm:$0xff] %v4601_v1  ;;  %vm816_vm7 = vcmp.le.f32.partialorder %v4508_v44, %v4595_v60  ;;  %vm810_vm8 = vcmp.le.f32.partialorder %v4505_v37, %v4601_v1 }
 0x143   : > { %v686_v3 = vadd.f32 %v4480_v63, %v514_v0  ;;  %v832_v4 = vsel %vm816_vm7, %v4563_v39, 8  ;;  %v826_v11 = vsel %vm810_vm8, %v4563_v39, 8 }
 0x144   : > { %v4613_v8 = vsel %vm752_vm3, %v832_v4, 2147483647  ;;  %v4618_v45 = vsel %vm752_vm3, %v826_v11, 2147483647 }
 0x145   : > { %v718_v7 = vsub.f32 %v686_v3, %v702_v2  ;;  %v1060_v12 = vshra.s32 %v4613_v8, 16  ;;  %v970_v15 = vshra.s32 %v4618_v45, 16 }
 0x147   : > { %v4625_v17 = vmax.f32 %v718_v7, 0.0  ;;  %v4627_v18 = vcvt.s32.f32 %v1060_v12  ;;  %v4632_v13 = vcvt.s32.f32 %v970_v15 }
 0x149   : > { %v4620_v14 = vpop.xlane.xlu1 %790  ;;  %1063 = vmin.xlane.f32.xlu2 %v4627_v18  ;;  %v4630_v19 = vpop.xlane.xlu2 %766  ;;  %v753_v6 = vsel %vm752_vm3, %v4625_v17, inf  ;;  %973 = vmin.xlane.f32.xlu0 %v4632_v13 }
 0x14a   : > { %8511 = vst [vmem:[#allocation3_spill] sm:$0xff] %v4620_v14  ;;  %v4623_v16 = vpop.xlane.xlu0 %787  ;;  %754 = vmin.xlane.f32.xlu1 %v753_v6  ;;  %vm813_vm9 = vcmp.le.f32.partialorder %v4518_v58, %v4620_v14  ;;  %vm805_vm10 = vcmp.le.f32.partialorder %v4515_v53, %v4630_v19 }
 0x14b   : > { %8512 = vst [vmem:[#allocation4_spill] sm:$0xff] %v4630_v19  ;;  %v829_v24 = vsel %vm813_vm9, %v4563_v39, 8  ;;  %v821_v29 = vsel %vm805_vm10, %v4563_v39, 8  ;;  %vm812_vm11 = vcmp.le.f32.partialorder %v4520_v59, %v4623_v16  ;;  %4080 = vrsqrt.f32 %v4623_v16 }
 0x14c   : > { %v4645_v28 = vsel %vm752_vm3, %v829_v24, 2147483647  ;;  %v4652_v34 = vsel %vm752_vm3, %v821_v29, 2147483647 }
 0x14d   : > { %v1015_v30 = vshra.s32 %v4645_v28, 16  ;;  %v895_v48 = vshra.s32 %v4652_v34, 16 }
 0x14f   : > { %v4656_v35 = vcvt.s32.f32 %v1015_v30  ;;  %v4663_v38 = vcvt.s32.f32 %v895_v48 }
 0x151   : > { %v517_v23 = vpop.xlane.xlu1 %516  ;;  %1018 = vmin.xlane.f32.xlu2 %v4656_v35  ;;  %898 = vmin.xlane.f32.xlu0 %v4663_v38 }
 0x152   : > { %v687_v27 = vadd.f32 %v4480_v63, %v517_v23  ;;  %v4649_v52 = vpop.xlane.xlu0 %772  ;;  %v828_v63 = vsel %vm812_vm11, %v4563_v39, 8 }
 0x153   : > { %v4666_v41 = vsel %vm752_vm3, %v828_v63, 2147483647  ;;  %vm807_vm12 = vcmp.le.f32.partialorder %v4532_v9, %v4649_v52 }
 0x154   : > { %v719_v33 = vsub.f32 %v687_v27, %v703_v26  ;;  %v1000_v43 = vshra.s32 %v4666_v41, 16  ;;  %v823_v56 = vsel %vm807_vm12, %v4563_v39, 8 }
 0x155   : > { %v4683_v2 = vsel %vm752_vm3, %v823_v56, 2147483647 }
 0x156   : > { %v4661_v57 = vmax.f32 %v719_v33, 0.0  ;;  %v4672_v50 = vcvt.s32.f32 %v1000_v43  ;;  %v925_v3 = vshra.s32 %v4683_v2, 16 }
 0x158   : > { %v756_v55 = vsel %vm752_vm3, %v4661_v57, inf  ;;  %1003 = vmin.xlane.f32.xlu1 %v4672_v50  ;;  %v4690_v4 = vcvt.s32.f32 %v925_v3 }
 0x159   : > { %v4669_v5 = vpop.xlane.xlu1 %778  ;;  %757 = vmin.xlane.f32.xlu2 %v756_v55 }
 0x15a   : > { %8513 = vst [vmem:[#allocation5_spill] sm:$0xff] %v4669_v5  ;;  %v4680_v0 = vpop.xlane.xlu0 %769  ;;  %vm809_vm13 = vcmp.le.f32.partialorder %v4538_v21, %v4669_v5 }
 0x15b   : > { %vm806_vm14 = vcmp.le.f32.partialorder %v4542_v22, %v4680_v0  ;;  %v825_v7 = vsel %vm809_vm13, %v4563_v39, 8 }
 0x15c   : > { %v4694_v11 = vsel %vm752_vm3, %v825_v7, 2147483647  ;;  %v822_v15 = vsel %vm806_vm14, %v4563_v39, 8 }
 0x15d   : > { %v955_v6 = vshra.s32 %v4694_v11, 16  ;;  %v4704_v24 = vsel %vm752_vm3, %v822_v15, 2147483647 }
 0x15e   : > { %v910_v26 = vshra.s32 %v4704_v24, 16 }
 0x15f   : > { %v4701_v23 = vcvt.s32.f32 %v955_v6 }
 0x160   : > { %928 = vmin.xlane.f32.xlu1 %v4690_v4  ;;  %v4708_v27 = vcvt.s32.f32 %v910_v26 }
 0x161   : > { %v4696_v12 = vpop.xlane.xlu1 %775  ;;  %958 = vmin.xlane.f32.xlu2 %v4701_v23 }
 0x162   : > { %8514 = vst [vmem:[#allocation6_spill] sm:$0xff] %v4696_v12  ;;  %v4710_v29 = vpop.xlane.xlu0 %760  ;;  %vm808_vm15 = vcmp.le.f32.partialorder %v4550_v31, %v4696_v12  ;;  %v984_v12 = vand.u32 65535, %v4591_v54  ;;  %v969_v54 = vand.u32 65535, %v4618_v45 }
 0x163   : > { %8515 = vst [vmem:[#allocation7_spill] sm:$0xff] %v4710_v29  ;;  %v824_v30 = vsel %vm808_vm15, %v4563_v39, 8  ;;  %vm803_vm1 = vcmp.le.f32.partialorder %v4553_v32, %v4710_v29 }
 0x164   : > { %v4716_v33 = vsel %vm752_vm3, %v824_v30, 2147483647  ;;  %v819_v55 = vsel %vm803_vm1, %v4563_v39, 8  ;;  %v986_v19 = vcvt.s32.f32 %v984_v12 }
 0x165   : > { %v940_v48 = vshra.s32 %v4716_v33, 16  ;;  %v4731_v56 = vsel %vm752_vm3, %v819_v55, 2147483647 }
 0x166   : > { %v865_v7 = vshra.s32 %v4731_v56, 16 }
 0x167   : > { %v4724_v43 = vcvt.s32.f32 %v940_v48  ;;  %v1029_v48 = vand.u32 65535, %v4571_v42 }
 0x168   : > { %913 = vmin.xlane.f32.xlu1 %v4708_v27  ;;  %v4738_v6 = vcvt.s32.f32 %v865_v7  ;;  %v1044_v7 = vand.u32 65535, %v4588_v51  ;;  %v1059_v51 = vand.u32 65535, %v4613_v8 }
 0x169   : > { %v4719_v63 = vpop.xlane.xlu1 %763  ;;  %943 = vmin.xlane.f32.xlu2 %v4724_v43 }
 0x16a   : > { %8516 = vst [vmem:[#allocation8_spill] sm:$0xff] %v4719_v63  ;;  %vm804_vm2 = vcmp.le.f32.partialorder %v4559_v36, %v4719_v63  ;;  %v1031_v63 = vcvt.s32.f32 %v1029_v48  ;;  %v1046_v5 = vcvt.s32.f32 %v1044_v7  ;;  %v1061_v48 = vcvt.s32.f32 %v1059_v51 }
 0x16b   : > { %v820_v3 = vsel %vm804_vm2, %v4563_v39, 8  ;;  %v894_v7 = vand.u32 65535, %v4652_v34 }
 0x16c   : > { %v4736_v15 = vsel %vm752_vm3, %v820_v3, 2147483647 }
 0x16d   : > { %v880_v26 = vshra.s32 %v4736_v15, 16 }
 0x16f   : > { %v4742_v30 = vcvt.s32.f32 %v880_v26 }
 0x170   : > { %868 = vmin.xlane.f32.xlu1 %v4738_v6 }
 0x171   : > { %883 = vmin.xlane.f32.xlu2 %v4742_v30 }
 0x1ac   : > { %v4746_v55 = vpop.xlane.xlu0 %1033 }
 0x1ad   : > { %vm1035_vm4 = vcmp.eq.f32.partialorder %v4574_v46, %v4746_v55 }
 0x1ae   : > { %v1036_v3 = vsel %vm1035_vm4, %v1031_v63, inf }
 0x1af   : > { %1037 = vmin.xlane.f32.xlu1 %v1036_v3 }
 0x1b4   : > { %v4752_v29 = vpop.xlane.xlu1 %1048  ;;  %v4754_v26 = vpop.xlane.xlu0 %988 }
 0x1b5   : > { %vm1050_vm5 = vcmp.eq.f32.partialorder %v4597_v61, %v4752_v29  ;;  %vm990_vm6 = vcmp.eq.f32.partialorder %v4599_v62, %v4754_v26  ;;  %v971_v62 = vcvt.s32.f32 %v969_v54  ;;  %v896_v54 = vcvt.s32.f32 %v894_v7 }
 0x1b6   : > { %v1051_v42 = vsel %vm1050_vm5, %v1046_v5, inf  ;;  %v991_v46 = vsel %vm990_vm6, %v986_v19, inf  ;;  %v1014_v19 = vand.u32 65535, %v4645_v28 }
 0x1b7   : > { %1052 = vmin.xlane.f32.xlu2 %v1051_v42  ;;  %992 = vmin.xlane.f32.xlu1 %v991_v46 }
 0x1bc   : > { %v4762_v63 = vpop.xlane.xlu2 %1063  ;;  %v4768_v61 = vpop.xlane.xlu0 %973 }
 0x1bd   : > { %vm1065_vm7 = vcmp.eq.f32.partialorder %v4627_v18, %v4762_v63  ;;  %v4766_v12 = vpop.xlane.xlu1 %754  ;;  %vm975_vm8 = vcmp.eq.f32.partialorder %v4632_v13, %v4768_v61  ;;  %v1016_v13 = vcvt.s32.f32 %v1014_v19 }
 0x1be   : > { %v1066_v3 = vsel %vm1065_vm7, %v1061_v48, inf  ;;  %vm801_vm9 = vcmp.le.f32.partialorder %v4625_v17, %v4766_v12  ;;  %v976_v8 = vsel %vm975_vm8, %v971_v62, inf  ;;  %v999_v48 = vand.u32 65535, %v4666_v41 }
 0x1bf   : > { %1067 = vmin.xlane.f32.xlu0 %v1066_v3  ;;  %v817_v45 = vsel %vm801_vm9, %v4563_v39, 8  ;;  %977 = vmin.xlane.f32.xlu1 %v976_v8 }
 0x1c0   : > { %v4777_v18 = vsel %vm752_vm3, %v817_v45, 2147483647  ;;  %v1001_v62 = vcvt.s32.f32 %v999_v48  ;;  %v924_v45 = vand.u32 65535, %v4683_v2  ;;  %v954_v2 = vand.u32 65535, %v4694_v11 }
 0x1c1   : > { %v835_v5 = vshra.s32 %v4777_v18, 16  ;;  %v939_v11 = vand.u32 65535, %v4716_v33  ;;  %v879_v33 = vand.u32 65535, %v4736_v15  ;;  %v995_v15 = vcvt.f32.s32 %v4754_v26 }
 0x1c3   : > { %v4783_v46 = vcvt.s32.f32 %v835_v5 }
 0x1c4   : > { %v4781_v42 = vpop.xlane.xlu2 %1018  ;;  %v4788_v28 = vpop.xlane.xlu0 %898 }
 0x1c5   : > { %vm1020_vm10 = vcmp.eq.f32.partialorder %v4656_v35, %v4781_v42  ;;  %838 = vmin.xlane.f32.xlu2 %v4783_v46  ;;  %vm900_vm11 = vcmp.eq.f32.partialorder %v4663_v38, %v4788_v28 }
 0x1c6   : > { %v1021_v51 = vsel %vm1020_vm10, %v1016_v13, inf  ;;  %v901_v34 = vsel %vm900_vm11, %v896_v54, inf  ;;  %v909_v54 = vand.u32 65535, %v4704_v24  ;;  %v864_v24 = vand.u32 65535, %v4731_v56 }
 0x1c7   : > { %1022 = vmin.xlane.f32.xlu0 %v1021_v51  ;;  %902 = vmin.xlane.f32.xlu1 %v901_v34  ;;  %v956_v34 = vcvt.s32.f32 %v954_v2  ;;  %v881_v56 = vcvt.s32.f32 %v879_v33  ;;  %v1040_v2 = vcvt.f32.s32 %v4746_v55 }
 0x1cb   : > { %v4793_v3 = vpop.xlane.xlu1 %1003 }
 0x1cc   : > { %vm1005_vm12 = vcmp.eq.f32.partialorder %v4672_v50, %v4793_v3  ;;  %v4797_v35 = vpop.xlane.xlu2 %757  ;;  %v926_v50 = vcvt.s32.f32 %v924_v45  ;;  %v941_v45 = vcvt.s32.f32 %v939_v11 }
 0x1cd   : > { %v1006_v8 = vsel %vm1005_vm12, %v1001_v62, inf  ;;  %vm802_vm13 = vcmp.le.f32.partialorder %v4661_v57, %v4797_v35  ;;  %v911_v62 = vcvt.s32.f32 %v909_v54 }
 0x1ce   : > { %1007 = vmin.xlane.f32.xlu2 %v1006_v8  ;;  %v818_v41 = vsel %vm802_vm13, %v4563_v39, 8 }
 0x1cf   : > { %v4804_v38 = vsel %vm752_vm3, %v818_v41, 2147483647 }
 0x1d0   : > { %v850_v19 = vshra.s32 %v4804_v38, 16 }
 0x1d2   : > { %v4809_v7 = vcvt.s32.f32 %v850_v19  ;;  %v866_v19 = vcvt.s32.f32 %v864_v24 }
 0x1d3   : > { %v4807_v5 = vpop.xlane.xlu1 %928 }
 0x1d4   : > { %vm930_vm14 = vcmp.eq.f32.partialorder %v4690_v4, %v4807_v5  ;;  %v4813_v13 = vpop.xlane.xlu2 %958  ;;  %853 = vmin.xlane.f32.xlu0 %v4809_v7 }
 0x1d5   : > { %v931_v51 = vsel %vm930_vm14, %v926_v50, inf  ;;  %vm960_vm15 = vcmp.eq.f32.partialorder %v4701_v23, %v4813_v13 }
 0x1d6   : > { %932 = vmin.xlane.f32.xlu2 %v931_v51  ;;  %v961_v4 = vsel %vm960_vm15, %v956_v34, inf  ;;  %v1041_v34 = vshll.u32 %v1040_v2, 16  ;;  %v980_v2 = vcvt.f32.s32 %v4768_v61 }
 0x1db   : > { %v4820_v48 = vpop.xlane.xlu1 %913 }
 0x1dc   : > { %vm915_vm1 = vcmp.eq.f32.partialorder %v4708_v27, %v4820_v48  ;;  %v4824_v8 = vpop.xlane.xlu2 %943  ;;  %962 = vmin.xlane.f32.xlu0 %v961_v4  ;;  %v1055_v4 = vcvt.f32.s32 %v4752_v29 }
 0x1dd   : > { %v916_v41 = vsel %vm915_vm1, %v911_v62, inf  ;;  %vm945_vm2 = vcmp.eq.f32.partialorder %v4724_v43, %v4824_v8 }
 0x1de   : > { %917 = vmin.xlane.f32.xlu2 %v916_v41  ;;  %v946_v27 = vsel %vm945_vm2, %v941_v45, inf  ;;  %v1056_v24 = vshll.u32 %v1055_v4, 16  ;;  %v996_v45 = vshll.u32 %v995_v15, 16 }
 0x1e3   : > { %v4830_v23 = vpop.xlane.xlu1 %868 }
 0x1e4   : > { %vm870_vm4 = vcmp.eq.f32.partialorder %v4738_v6, %v4830_v23  ;;  %947 = vmin.xlane.f32.xlu0 %v946_v27  ;;  %v4834_v51 = vpop.xlane.xlu2 %883 }
 0x1e5   : > { %v871_v50 = vsel %vm870_vm4, %v866_v19, inf  ;;  %vm885_vm5 = vcmp.eq.f32.partialorder %v4742_v30, %v4834_v51 }
 0x1e6   : > { %872 = vmin.xlane.f32.xlu2 %v871_v50  ;;  %v886_v43 = vsel %vm885_vm5, %v881_v56, inf }
 0x1ec   : > { %887 = vmin.xlane.f32.xlu0 %v886_v43  ;;  %v1070_v43 = vcvt.f32.s32 %v4762_v63 }
 0x222   : > { %v1038_v54 = vpop.xlane.xlu1 %1037 }
 0x223   : > { %v1039_v62 = vcvt.f32.s32 %v1038_v54  ;;  %v1071_v54 = vshll.u32 %v1070_v43, 16 }
 0x225   : > { %v4840_v6 = vadd.s32 %v1041_v34, %v1039_v62 }
 0x227   : > { %8517 = vst [vmem:[#allocation9_spill] sm:$0xff] %v4840_v6  ;;  %vm8423_vm6 = vcmp.eq.s32.totalorder %v4563_v39, %v4840_v6 }
 0x228   : > { %v4850_v30 = vsel %vm8423_vm6, inf, %v4486_v10 }
 0x229   : > { %8518 = vst [vmem:[#allocation10_spill] sm:$0xff] %v4850_v30  ;;  %v1592_v55 = vsel %vm752_vm3, %v4850_v30, inf }
 0x22a   : > { %1593 = vmin.xlane.f32.xlu2 %v1592_v55  ;;  %v1053_v41 = vpop.xlane.xlu2 %1052  ;;  %v993_v11 = vpop.xlane.xlu1 %992  ;;  %v834_v55 = vand.u32 65535, %v4777_v18  ;;  %v905_v18 = vcvt.f32.s32 %v4788_v28 }
 0x22b   : > { %v1054_v19 = vcvt.f32.s32 %v1053_v41  ;;  %v994_v27 = vcvt.f32.s32 %v993_v11  ;;  %v1025_v41 = vcvt.f32.s32 %v4781_v42 }
 0x22d   : > { %v4854_v50 = vadd.s32 %v1056_v24, %v1054_v19  ;;  %v4856_v29 = vadd.s32 %v996_v45, %v994_v27  ;;  %v836_v45 = vcvt.s32.f32 %v834_v55  ;;  %v1026_v19 = vshll.u32 %v1025_v41, 16 }
 0x22e   : > { %v849_v41 = vand.u32 65535, %v4804_v38 }
 0x22f   : > { %8519 = vst [vmem:[#allocation11_spill] sm:$0xff] %v4854_v50  ;;  %vm1535_vm7 = vcmp.eq.s32.totalorder %v4563_v39, %v4854_v50  ;;  %vm8418_vm8 = vcmp.eq.s32.totalorder %v4563_v39, %v4856_v29 }
 0x230   : > { %8520 = vst [vmem:[#allocation12_spill] sm:$0xff] %v4856_v29  ;;  %v4866_v10 = vsel %vm1535_vm7, inf, %v4494_v25  ;;  %v4872_v26 = vsel %vm8418_vm8, inf, %v4492_v20  ;;  %v981_v20 = vshll.u32 %v980_v2, 16  ;;  %v906_v2 = vshll.u32 %v905_v18, 16 }
 0x231   : > { %8521 = vst [vmem:[#allocation13_spill] sm:$0xff] %v4866_v10  ;;  %v1595_v33 = vsel %vm752_vm3, %v4866_v10, inf  ;;  %v1583_v56 = vsel %vm752_vm3, %v4872_v26, inf }
 0x232   : > { %8522 = vst [vmem:[#allocation14_spill] sm:$0xff] %v4872_v26  ;;  %1596 = vmin.xlane.f32.xlu0 %v1595_v33  ;;  %1584 = vmin.xlane.f32.xlu2 %v1583_v56  ;;  %v1068_v25 = vpop.xlane.xlu0 %1067  ;;  %v978_v62 = vpop.xlane.xlu1 %977 }
 0x233   : > { %v1069_v34 = vcvt.f32.s32 %v1068_v25  ;;  %v979_v15 = vcvt.f32.s32 %v978_v62 }
 0x235   : > { %v4880_v4 = vadd.s32 %v1071_v54, %v1069_v34  ;;  %v4886_v63 = vadd.s32 %v981_v20, %v979_v15 }
 0x237   : > { %8523 = vst [vmem:[#allocation15_spill] sm:$0xff] %v4880_v4  ;;  %vm8455_vm9 = vcmp.eq.s32.totalorder %v4563_v39, %v4880_v4  ;;  %vm8400_vm10 = vcmp.eq.s32.totalorder %v4563_v39, %v4886_v63 }
 0x238   : > { %8524 = vst [vmem:[#allocation16_spill] sm:$0xff] %v4886_v63  ;;  %v4892_v61 = vsel %vm8455_vm9, inf, %v4508_v44  ;;  %v4896_v24 = vpop.xlane.xlu2 %838  ;;  %v4907_v44 = vsel %vm8400_vm10, inf, %v4505_v37 }
 0x239   : > { %8525 = vst [vmem:[#allocation17_spill] sm:$0xff] %v4892_v61  ;;  %v1598_v11 = vsel %vm752_vm3, %v4892_v61, inf  ;;  %vm840_vm11 = vcmp.eq.f32.partialorder %v4783_v46, %v4896_v24  ;;  %v1580_v33 = vsel %vm752_vm3, %v4907_v44, inf  ;;  %v1010_v46 = vcvt.f32.s32 %v4793_v3 }
 0x23a   : > { %1599 = vmin.xlane.f32.xlu1 %v1598_v11  ;;  %8526 = vst [vmem:[#allocation18_spill] sm:$0xff] %v4907_v44  ;;  %v1023_v42 = vpop.xlane.xlu0 %1022  ;;  %v841_v27 = vsel %vm840_vm11, %v836_v45, inf  ;;  %1581 = vmin.xlane.f32.xlu2 %v1580_v33  ;;  %v903_v43 = vpop.xlane.xlu1 %902  ;;  %v935_v11 = vcvt.f32.s32 %v4807_v5 }
 0x23b   : > { %v1024_v56 = vcvt.f32.s32 %v1023_v42  ;;  %842 = vmin.xlane.f32.xlu0 %v841_v27  ;;  %v904_v25 = vcvt.f32.s32 %v903_v43  ;;  %v1011_v20 = vshll.u32 %v1010_v46, 16  ;;  %v851_v42 = vcvt.s32.f32 %v849_v41 }
 0x23c   : > { %v936_v5 = vshll.u32 %v935_v11, 16 }
 0x23d   : > { %v4911_v28 = vadd.s32 %v1026_v19, %v1024_v56  ;;  %v4916_v37 = vadd.s32 %v906_v2, %v904_v25  ;;  %v920_v56 = vcvt.f32.s32 %v4820_v48 }
 0x23f   : > { %8527 = vst [vmem:[#allocation19_spill] sm:$0xff] %v4911_v28  ;;  %vm8419_vm12 = vcmp.eq.s32.totalorder %v4563_v39, %v4911_v28  ;;  %vm8342_vm13 = vcmp.eq.s32.totalorder %v4563_v39, %v4916_v37 }
 0x240   : > { %8528 = vst [vmem:[#allocation20_spill] sm:$0xff] %v4916_v37  ;;  %v4922_v54 = vsel %vm8419_vm12, inf, %v4518_v58  ;;  %v4932_v3 = vsel %vm8342_vm13, inf, %v4515_v53 }
 0x241   : > { %8529 = vst [vmem:[#allocation21_spill] sm:$0xff] %v4922_v54  ;;  %v1008_v34 = vpop.xlane.xlu2 %1007  ;;  %v1589_v62 = vsel %vm752_vm3, %v4922_v54, inf  ;;  %v1565_v58 = vsel %vm752_vm3, %v4932_v3, inf }
 0x242   : > { %v1009_v15 = vcvt.f32.s32 %v1008_v34  ;;  %1590 = vmin.xlane.f32.xlu1 %v1589_v62  ;;  %8530 = vst [vmem:[#allocation22_spill] sm:$0xff] %v4932_v3  ;;  %1566 = vmin.xlane.f32.xlu2 %v1565_v58 }
 0x244   : > { %v4934_v55 = vadd.s32 %v1011_v20, %v1009_v15  ;;  %v950_v15 = vcvt.f32.s32 %v4824_v8 }
 0x246   : > { %8531 = vst [vmem:[#allocation23_spill] sm:$0xff] %v4934_v55  ;;  %vm8415_vm14 = vcmp.eq.s32.totalorder %v4563_v39, %v4934_v55 }
 0x247   : > { %v4946_v45 = vsel %vm8415_vm14, inf, %v4520_v59  ;;  %v4950_v18 = vpop.xlane.xlu0 %853  ;;  %v965_v59 = vcvt.f32.s32 %v4813_v13  ;;  %v921_v13 = vshll.u32 %v920_v56, 16  ;;  %vm1260_vm14 = vcmp.eq.f32.partialorder %v4595_v60, inf }
 0x248   : > { %8532 = vst [vmem:[#allocation24_spill] sm:$0xff] %v4946_v45  ;;  %v1586_v53 = vsel %vm752_vm3, %v4946_v45, inf  ;;  %vm855_vm15 = vcmp.eq.f32.partialorder %v4809_v7, %v4950_v18 }
 0x249   : > { %1587 = vmin.xlane.f32.xlu0 %v1586_v53  ;;  %v933_v38 = vpop.xlane.xlu2 %932  ;;  %v856_v27 = vsel %vm855_vm15, %v851_v42, inf  ;;  %v966_v2 = vshll.u32 %v965_v59, 16  ;;  %v951_v53 = vshll.u32 %v950_v15, 16 }
 0x24a   : > { %v934_v19 = vcvt.f32.s32 %v933_v38  ;;  %857 = vmin.xlane.f32.xlu1 %v856_v27 }
 0x24c   : > { %v4954_v33 = vadd.s32 %v936_v5, %v934_v19 }
 0x24e   : > { %8533 = vst [vmem:[#allocation25_spill] sm:$0xff] %v4954_v33  ;;  %vm8398_vm1 = vcmp.eq.s32.totalorder %v4563_v39, %v4954_v33 }
 0x24f   : > { %v4964_v43 = vsel %vm8398_vm1, inf, %v4532_v9  ;;  %v963_v46 = vpop.xlane.xlu0 %962  ;;  %v875_v9 = vcvt.f32.s32 %v4830_v23 }
 0x250   : > { %8534 = vst [vmem:[#allocation26_spill] sm:$0xff] %v4964_v43  ;;  %v1571_v7 = vsel %vm752_vm3, %v4964_v43, inf  ;;  %v964_v34 = vcvt.f32.s32 %v963_v46 }
 0x251   : > { %1572 = vmin.xlane.f32.xlu0 %v1571_v7  ;;  %v918_v25 = vpop.xlane.xlu2 %917 }
 0x252   : > { %v919_v62 = vcvt.f32.s32 %v918_v25  ;;  %v4968_v48 = vadd.s32 %v966_v2, %v964_v34 }
 0x254   : > { %8535 = vst [vmem:[#allocation27_spill] sm:$0xff] %v4968_v48  ;;  %v4970_v20 = vadd.s32 %v921_v13, %v919_v62  ;;  %vm8399_vm2 = vcmp.eq.s32.totalorder %v4563_v39, %v4968_v48 }
 0x255   : > { %v4982_v58 = vsel %vm8399_vm2, inf, %v4538_v21  ;;  %v876_v21 = vshll.u32 %v875_v9, 16 }
 0x256   : > { %8536 = vst [vmem:[#allocation28_spill] sm:$0xff] %v4970_v20  ;;  %vm8394_vm4 = vcmp.eq.s32.totalorder %v4563_v39, %v4970_v20  ;;  %v1577_v8 = vsel %vm752_vm3, %v4982_v58, inf  ;;  %v860_v20 = vcvt.f32.s32 %v4950_v18 }
 0x257   : > { %8537 = vst [vmem:[#allocation29_spill] sm:$0xff] %v4982_v58  ;;  %v4988_v41 = vsel %vm8394_vm4, inf, %v4542_v22  ;;  %1578 = vmin.xlane.f32.xlu1 %v1577_v8  ;;  %v948_v11 = vpop.xlane.xlu0 %947  ;;  %v890_v22 = vcvt.f32.s32 %v4834_v51 }
 0x258   : > { %8538 = vst [vmem:[#allocation30_spill] sm:$0xff] %v4988_v41  ;;  %v1568_v23 = vsel %vm752_vm3, %v4988_v41, inf  ;;  %v949_v38 = vcvt.f32.s32 %v948_v11  ;;  %v861_v33 = vshll.u32 %v860_v20, 16 }
 0x259   : > { %1569 = vmin.xlane.f32.xlu0 %v1568_v23  ;;  %v873_v42 = vpop.xlane.xlu2 %872  ;;  %v891_v2 = vshll.u32 %v890_v22, 16 }
 0x25a   : > { %v874_v5 = vcvt.f32.s32 %v873_v42  ;;  %v4994_v19 = vadd.s32 %v951_v53, %v949_v38 }
 0x25c   : > { %8539 = vst [vmem:[#allocation31_spill] sm:$0xff] %v4994_v19  ;;  %v4996_v27 = vadd.s32 %v876_v21, %v874_v5  ;;  %vm8395_vm5 = vcmp.eq.s32.totalorder %v4563_v39, %v4994_v19 }
 0x25d   : > { %v5007_v59 = vsel %vm8395_vm5, inf, %v4550_v31 }
 0x25e   : > { %8540 = vst [vmem:[#allocation32_spill] sm:$0xff] %v4996_v27  ;;  %vm8393_vm11 = vcmp.eq.s32.totalorder %v4563_v39, %v4996_v27  ;;  %v1574_v51 = vsel %vm752_vm3, %v5007_v59, inf }
 0x25f   : > { %8541 = vst [vmem:[#allocation33_spill] sm:$0xff] %v5007_v59  ;;  %v5013_v56 = vsel %vm8393_vm11, inf, %v4553_v32  ;;  %1575 = vmin.xlane.f32.xlu1 %v1574_v51  ;;  %v888_v46 = vpop.xlane.xlu0 %887 }
 0x260   : > { %8542 = vst [vmem:[#allocation34_spill] sm:$0xff] %v5013_v56  ;;  %v1559_v7 = vsel %vm752_vm3, %v5013_v56, inf  ;;  %v889_v25 = vcvt.f32.s32 %v888_v46 }
 0x261   : > { %1560 = vmin.xlane.f32.xlu0 %v1559_v7  ;;  %v845_v7 = vcvt.f32.s32 %v4896_v24 }
 0x262   : > { %v5019_v34 = vadd.s32 %v891_v2, %v889_v25 }
 0x264   : > { %8543 = vst [vmem:[#allocation35_spill] sm:$0xff] %v5019_v34  ;;  %vm8337_vm15 = vcmp.eq.s32.totalorder %v4563_v39, %v5019_v34 }
 0x265   : > { %v5027_v31 = vsel %vm8337_vm15, inf, %v4559_v36 }
 0x266   : > { %8544 = vst [vmem:[#allocation36_spill] sm:$0xff] %v5027_v31  ;;  %v1562_v32 = vsel %vm752_vm3, %v5027_v31, inf }
 0x267   : > { %1563 = vmin.xlane.f32.xlu1 %v1562_v32 }
 0x29d   : > { %v5031_v13 = vpop.xlane.xlu2 %1593 }
 0x29e   : > { %8545 = vst [vmem:[#allocation37_spill] sm:$0xff] %v5031_v13  ;;  %vm1614_vm0 = vcmp.le.f32.partialorder %v4850_v30, %v5031_v13 }
 0x29f   : > { %v1630_v62 = vsel %vm1614_vm0, %v4563_v39, 8 }
 0x2a0   : > { %v5037_v15 = vsel %vm752_vm3, %v1630_v62, 2147483647  ;;  %v846_v62 = vshll.u32 %v845_v7, 16 }
 0x2a1   : > { %v1830_v9 = vshra.s32 %v5037_v15, 16 }
 0x2a3   : > { %v5040_v8 = vcvt.s32.f32 %v1830_v9 }
 0x2a5   : > { %1833 = vmin.xlane.f32.xlu0 %v5040_v8  ;;  %v5043_v36 = vpop.xlane.xlu2 %1584  ;;  %v5047_v23 = vpop.xlane.xlu0 %1596 }
 0x2a6   : > { %8546 = vst [vmem:[#allocation38_spill] sm:$0xff] %v5043_v36  ;;  %vm1611_vm15 = vcmp.le.f32.partialorder %v4872_v26, %v5043_v36  ;;  %vm1615_vm0 = vcmp.le.f32.partialorder %v4866_v10, %v5047_v23 }
 0x2a7   : > { %8547 = vst [vmem:[#allocation39_spill] sm:$0xff] %v5047_v23  ;;  %v1627_v11 = vsel %vm1611_vm15, %v4563_v39, 8  ;;  %v1631_v21 = vsel %vm1615_vm0, %v4563_v39, 8 }
 0x2a8   : > { %v5051_v53 = vsel %vm752_vm3, %v1627_v11, 2147483647  ;;  %v5060_v5 = vsel %vm752_vm3, %v1631_v21, 2147483647 }
 0x2a9   : > { %v1785_v42 = vshra.s32 %v5051_v53, 16  ;;  %v1845_v22 = vshra.s32 %v5060_v5, 16 }
 0x2ab   : > { %v5056_v38 = vcvt.s32.f32 %v1785_v42  ;;  %v5069_v2 = vcvt.s32.f32 %v1845_v22 }
 0x2ad   : > { %1788 = vmin.xlane.f32.xlu0 %v5056_v38  ;;  %v5064_v51 = vpop.xlane.xlu1 %1599  ;;  %v5067_v46 = vpop.xlane.xlu2 %1581  ;;  %1848 = vmin.xlane.f32.xlu1 %v5069_v2 }
 0x2ae   : > { %8548 = vst [vmem:[#allocation40_spill] sm:$0xff] %v5064_v51  ;;  %v843_v25 = vpop.xlane.xlu0 %842  ;;  %vm1610_vm15 = vcmp.le.f32.partialorder %v4907_v44, %v5067_v46  ;;  %vm1616_vm0 = vcmp.le.f32.partialorder %v4892_v61, %v5064_v51 }
 0x2af   : > { %8549 = vst [vmem:[#allocation41_spill] sm:$0xff] %v5067_v46  ;;  %v844_v32 = vcvt.f32.s32 %v843_v25  ;;  %v1626_v9 = vsel %vm1610_vm15, %v4563_v39, 8  ;;  %v1632_v11 = vsel %vm1616_vm0, %v4563_v39, 8 }
 0x2b0   : > { %v5081_v42 = vsel %vm752_vm3, %v1626_v9, 2147483647  ;;  %v5084_v21 = vsel %vm752_vm3, %v1632_v11, 2147483647 }
 0x2b1   : > { %v5078_v24 = vadd.s32 %v846_v62, %v844_v32  ;;  %v1770_v22 = vshra.s32 %v5081_v42, 16  ;;  %v1860_v7 = vshra.s32 %v5084_v21, 16 }
 0x2b3   : > { %8550 = vst [vmem:[#allocation42_spill] sm:$0xff] %v5078_v24  ;;  %v5090_v34 = vcvt.s32.f32 %v1770_v22  ;;  %v5092_v37 = vcvt.s32.f32 %v1860_v7  ;;  %vm8344_vm15 = vcmp.eq.s32.totalorder %v4563_v39, %v5078_v24 }
 0x2b4   : > { %v5104_v32 = vsel %vm8344_vm15, inf, %v4625_v17 }
 0x2b5   : > { %v5088_v25 = vpop.xlane.xlu1 %1590  ;;  %v5094_v27 = vpop.xlane.xlu2 %1566  ;;  %1773 = vmin.xlane.f32.xlu0 %v5090_v34  ;;  %1863 = vmin.xlane.f32.xlu2 %v5092_v37  ;;  %8553 = vst [vmem:[#allocation45_spill] sm:$0xff] %v5104_v32  ;;  %v1553_v62 = vsel %vm752_vm3, %v5104_v32, inf }
 0x2b6   : > { %8551 = vst [vmem:[#allocation43_spill] sm:$0xff] %v5088_v25  ;;  %vm1605_vm0 = vcmp.le.f32.partialorder %v4932_v3, %v5094_v27  ;;  %1554 = vmin.xlane.f32.xlu1 %v1553_v62  ;;  %vm1613_vm13 = vcmp.le.f32.partialorder %v4922_v54, %v5088_v25 }
 0x2b7   : > { %8552 = vst [vmem:[#allocation44_spill] sm:$0xff] %v5094_v27  ;;  %v1621_v11 = vsel %vm1605_vm0, %v4563_v39, 8  ;;  %v1629_v24 = vsel %vm1613_vm13, %v4563_v39, 8 }
 0x2b8   : > { %v5114_v22 = vsel %vm752_vm3, %v1621_v11, 2147483647  ;;  %v5126_v62 = vsel %vm752_vm3, %v1629_v24, 2147483647 }
 0x2b9   : > { %v1695_v17 = vshra.s32 %v5114_v22, 16  ;;  %v1815_v27 = vshra.s32 %v5126_v62, 16 }
 0x2bb   : > { %v5123_v19 = vcvt.s32.f32 %v1695_v17  ;;  %v5133_v63 = vcvt.s32.f32 %v1815_v27 }
 0x2bc   : > { %v5110_v9 = vpop.xlane.xlu0 %1587 }
 0x2bd   : > { %v858_v7 = vpop.xlane.xlu1 %857  ;;  %vm1612_vm15 = vcmp.le.f32.partialorder %v4946_v45, %v5110_v9  ;;  %1698 = vmin.xlane.f32.xlu0 %v5123_v19  ;;  %1818 = vmin.xlane.f32.xlu2 %v5133_v63  ;;  %4082 = vrsqrt.f32 %v5110_v9 }
 0x2be   : > { %v859_v11 = vcvt.f32.s32 %v858_v7  ;;  %v1628_v18 = vsel %vm1612_vm15, %v4563_v39, 8  ;;  %4084 = vrsqrt.f32 %v4649_v52 }
 0x2bf   : > { %v5138_v17 = vsel %vm752_vm3, %v1628_v18, 2147483647 }
 0x2c0   : > { %v5135_v55 = vadd.s32 %v861_v33, %v859_v11  ;;  %v1800_v24 = vshra.s32 %v5138_v17, 16 }
 0x2c2   : > { %8554 = vst [vmem:[#allocation46_spill] sm:$0xff] %v5135_v55  ;;  %v5143_v20 = vcvt.s32.f32 %v1800_v24  ;;  %vm8385_vm13 = vcmp.eq.s32.totalorder %v4563_v39, %v5135_v55  ;;  %v4081_v24 = vpop.eup %4080 }
 0x2c3   : > { %v5154_v33 = vsel %vm8385_vm13, inf, %v4661_v57  ;;  %v1206_v55 = vmul.f32 %v4081_v24, %v4623_v16  ;;  %v4083_v13 = vpop.eup %4082  ;;  %vm2012_vm13 = vcmp.eq.f32.partialorder %v5110_v9, inf }
 0x2c4   : > { %v5131_v48 = vpop.xlane.xlu0 %1572  ;;  %1803 = vmin.xlane.f32.xlu1 %v5143_v20  ;;  %8555 = vst [vmem:[#allocation47_spill] sm:$0xff] %v5154_v33  ;;  %v1556_v11 = vsel %vm752_vm3, %v5154_v33, inf }
 0x2c5   : > { %vm1607_vm15 = vcmp.le.f32.partialorder %v4964_v43, %v5131_v48  ;;  %1557 = vmin.xlane.f32.xlu2 %v1556_v11  ;;  %v1207_v4 = vmul.f32 %v4081_v24, %v1206_v55  ;;  %v2006_v55 = vmul.f32 %v4083_v13, %v5110_v9  ;;  %4086 = vrsqrt.f32 %v5131_v48 }
 0x2c6   : > { %v1623_v7 = vsel %vm1607_vm15, %v4563_v39, 8 }
 0x2c7   : > { %v5164_v29 = vsel %vm752_vm3, %v1623_v7, 2147483647  ;;  %v1208_v51 = vmul.f32 0.5, %v1207_v4 }
 0x2c8   : > { %v1725_v28 = vshra.s32 %v5164_v29, 16 }
 0x2c9   : > { %v1209_v23 = vsub.f32 1.5, %v1208_v51 }
 0x2ca   : > { %v5156_v27 = vpop.xlane.xlu1 %1578  ;;  %v5168_v57 = vcvt.s32.f32 %v1725_v28 }
 0x2cb   : > { %8556 = vst [vmem:[#allocation48_spill] sm:$0xff] %v5156_v27  ;;  %vm1609_vm0 = vcmp.le.f32.partialorder %v4982_v58, %v5156_v27 }
 0x2cc   : > { %v5161_v18 = vpop.xlane.xlu0 %1569  ;;  %1728 = vmin.xlane.f32.xlu1 %v5168_v57  ;;  %v1625_v7 = vsel %vm1609_vm0, %v4563_v39, 8 }
 0x2cd   : > { %vm1606_vm15 = vcmp.le.f32.partialorder %v4988_v41, %v5161_v18  ;;  %v5178_v6 = vsel %vm752_vm3, %v1625_v7, 2147483647  ;;  %v1210_v41 = vmul.f32 %v4081_v24, %v1209_v23  ;;  %v1215_v24 = vand.u32 2147483648, %v4623_v16 }
 0x2ce   : > { %v1622_v11 = vsel %vm1606_vm15, %v4563_v39, 8  ;;  %v1755_v28 = vshra.s32 %v5178_v6, 16 }
 0x2cf   : > { %v5187_v27 = vsel %vm752_vm3, %v1622_v11, 2147483647 }
 0x2d0   : > { %v5184_v46 = vcvt.s32.f32 %v1755_v28  ;;  %v1710_v25 = vshra.s32 %v5187_v27, 16 }
 0x2d2   : > { %v5182_v50 = vpop.xlane.xlu1 %1575  ;;  %1758 = vmin.xlane.f32.xlu2 %v5184_v46  ;;  %v5193_v7 = vcvt.s32.f32 %v1710_v25 }
 0x2d3   : > { %8557 = vst [vmem:[#allocation49_spill] sm:$0xff] %v5182_v50  ;;  %vm1608_vm0 = vcmp.le.f32.partialorder %v5007_v59, %v5182_v50  ;;  %v2007_v50 = vmul.f32 %v4083_v13, %v2006_v55 }
 0x2d4   : > { %v5189_v36 = vpop.xlane.xlu0 %1560  ;;  %v1624_v11 = vsel %vm1608_vm0, %v4563_v39, 8  ;;  %1713 = vmin.xlane.f32.xlu1 %v5193_v7 }
 0x2d5   : > { %8558 = vst [vmem:[#allocation50_spill] sm:$0xff] %v5189_v36  ;;  %vm1603_vm15 = vcmp.le.f32.partialorder %v5013_v56, %v5189_v36  ;;  %v5204_v4 = vsel %vm752_vm3, %v1624_v11, 2147483647  ;;  %v2008_v51 = vmul.f32 0.5, %v2007_v50 }
 0x2d6   : > { %v1619_v28 = vsel %vm1603_vm15, %v4563_v39, 8  ;;  %v1740_v25 = vshra.s32 %v5204_v4, 16  ;;  %vm1212_vm15 = vcmp.eq.f32.partialorder %v4623_v16, inf }
 0x2d7   : > { %v5208_v58 = vsel %vm752_vm3, %v1619_v28, 2147483647  ;;  %v1211_v28 = vmul.f32 %v1210_v41, %v4623_v16  ;;  %v2009_v23 = vsub.f32 1.5, %v2008_v51  ;;  %v4085_v41 = vpop.eup %4084 }
 0x2d8   : > { %v5212_v36 = vcvt.s32.f32 %v1740_v25  ;;  %v1665_v56 = vshra.s32 %v5208_v58, 16  ;;  %v1146_v45 = vmul.f32 %v4085_v41, %v4649_v52 }
 0x2d9   : > { %v1213_v50 = vsel %vm1212_vm15, %v4623_v16, %v1211_v28  ;;  %vm2014_vm15 = vcmp.eq.f32.partialorder %v5110_v9, 0.0 }
 0x2da   : > { %v5210_v59 = vpop.xlane.xlu1 %1563  ;;  %1743 = vmin.xlane.f32.xlu2 %v5212_v36  ;;  %v5216_v43 = vcvt.s32.f32 %v1665_v56  ;;  %v1147_v54 = vmul.f32 %v4085_v41, %v1146_v45 }
 0x2db   : > { %8559 = vst [vmem:[#allocation51_spill] sm:$0xff] %v5210_v59  ;;  %vm1604_vm0 = vcmp.le.f32.partialorder %v5027_v31, %v5210_v59 }
 0x2dc   : > { %v1620_v11 = vsel %vm1604_vm0, %v4563_v39, 8  ;;  %1668 = vmin.xlane.f32.xlu1 %v5216_v43  ;;  %vm1214_vm0 = vcmp.eq.f32.partialorder %v4623_v16, 0.0 }
 0x2dd   : > { %v5223_v55 = vsel %vm752_vm3, %v1620_v11, 2147483647  ;;  %v2010_v11 = vmul.f32 %v4083_v13, %v2009_v23  ;;  %v1216_v59 = vsel %vm1214_vm0, %v1215_v24, %v1213_v50  ;;  %v4087_v13 = vpop.eup %4086  ;;  %vm1154_vm0 = vcmp.eq.f32.partialorder %v4649_v52, 0.0 }
 0x2de   : > { %v1680_v25 = vshra.s32 %v5223_v55, 16  ;;  %v1276_v31 = vmax.f32 %v1216_v59, 1e-10  ;;  %v1148_v59 = vmul.f32 0.5, %v1147_v54  ;;  %v1946_v24 = vmul.f32 %v4087_v13, %v5131_v48 }
 0x2df   : > { %v2011_v51 = vmul.f32 %v2010_v11, %v5110_v9 }
 0x2e0   : > { %v5229_v56 = vcvt.s32.f32 %v1680_v25  ;;  %4088 = vrcp.f32 %v1276_v31  ;;  %v2015_v25 = vand.u32 2147483648, %v5110_v9  ;;  %v1149_v3 = vsub.f32 1.5, %v1148_v59 }
 0x2e1   : > { %v2013_v28 = vsel %vm2012_vm13, %v5110_v9, %v2011_v51  ;;  %v1947_v61 = vmul.f32 %v4087_v13, %v1946_v24  ;;  %vm1152_vm13 = vcmp.eq.f32.partialorder %v4649_v52, inf  ;;  %vm1451_vm11 = vweird.f32 %v1276_v31 }
 0x2e2   : > { %1683 = vmin.xlane.f32.xlu2 %v5229_v56  ;;  %v2016_v16 = vsel %vm2014_vm15, %v2015_v25, %v2013_v28  ;;  %v1150_v10 = vmul.f32 %v4085_v41, %v1149_v3  ;;  %v1155_v28 = vand.u32 2147483648, %v4649_v52  ;;  %v1457_v3 = vand.u32 2147483648, %v1276_v31 }
 0x2e3   : > { %v2076_v50 = vmax.f32 %v2016_v16, 1e-10  ;;  %v1948_v51 = vmul.f32 0.5, %v1947_v61  ;;  %v1455_v61 = vand.u32 2147483647, %v1276_v31 }
 0x2e4   : > { %v1151_v45 = vmul.f32 %v1150_v10, %v4649_v52 }
 0x2e5   : > { %4090 = vrcp.f32 %v2076_v50  ;;  %v1949_v54 = vsub.f32 1.5, %v1948_v51  ;;  %v2257_v41 = vand.u32 2147483648, %v2076_v50  ;;  %v2255_v10 = vand.u32 2147483647, %v2076_v50 }
 0x2e6   : > { %v4089_v23 = vpop.eup %4088  ;;  %v1153_v59 = vsel %vm1152_vm13, %v4649_v52, %v1151_v45  ;;  %vm2251_vm1 = vweird.f32 %v2076_v50  ;;  %vm1456_vm10 = vcmp.eq.f32.partialorder %v1455_v61, 8.507059e+37  ;;  %4092 = vrsqrt.f32 %v5161_v18 }
 0x2e7   : > { %v1447_v11 = vmul.f32 %v4089_v23, %v1276_v31  ;;  %vm1452_vm15 = vweird.f32 %v4089_v23  ;;  %v1950_v24 = vmul.f32 %v4087_v13, %v1949_v54  ;;  %vm2256_vm13 = vcmp.eq.f32.partialorder %v2255_v10, 8.507059e+37 }
 0x2e8   : > { %vm1453_vm5 = vmor %vm1451_vm11, %vm1452_vm15  ;;  %4094 = vrsqrt.f32 %v4680_v0 }
 0x2e9   : > { %v1448_v44 = vsub.f32 1.0, %v1447_v11  ;;  %v1156_v11 = vsel %vm1154_vm0, %v1155_v28, %v1153_v59  ;;  %v1951_v31 = vmul.f32 %v1950_v24, %v5131_v48 }
 0x2ea   : > { %v5250_v1 = vmax.f32 %v1156_v11, 1e-10 }
 0x2eb   : > { %v4091_v26 = vpop.eup %4090  ;;  %v1449_v30 = vmul.f32 %v4089_v23, %v1448_v44 }
 0x2ec   : > { %v2247_v9 = vmul.f32 %v4091_v26, %v2076_v50  ;;  %vm2252_vm4 = vweird.f32 %v4091_v26  ;;  %4096 = vrcp.f32 %v5250_v1 }
 0x2ed   : > { %v1450_v25 = vadd.f32 %v4089_v23, %v1449_v30  ;;  %v1458_v30 = vor.u32 1.1754944e-38, %v1457_v3  ;;  %vm2253_vm2 = vmor %vm2251_vm1, %vm2252_vm4  ;;  %vm1952_vm1 = vcmp.eq.f32.partialorder %v5131_v48, inf }
 0x2ee   : > { %v2248_v16 = vsub.f32 1.0, %v2247_v9  ;;  %v2258_v9 = vor.u32 1.1754944e-38, %v2257_v41 }
 0x2ef   : > { %v1454_v51 = vsel %vm1453_vm5, %v4089_v23, %v1450_v25  ;;  %v1829_v23 = vand.u32 65535, %v5037_v15  ;;  %v4093_v15 = vpop.eup %4092  ;;  %vm1376_vm5 = vweird.f32 %v5250_v1 }
 0x2f0   : > { %v2249_v44 = vmul.f32 %v4091_v26, %v2248_v16  ;;  %v5253_v16 = vsel %vm1456_vm10, %v1458_v30, %v1454_v51  ;;  %vm1954_vm10 = vcmp.eq.f32.partialorder %v5131_v48, 0.0  ;;  %v4095_v59 = vpop.eup %4094  ;;  %v1934_v61 = vmul.f32 %v4093_v15, %v5161_v18 }
 0x2f1   : > { %8560 = vst [vmem:[#allocation52_spill] sm:$0xff] %v5253_v16  ;;  %v1831_v54 = vcvt.s32.f32 %v1829_v23 }
 0x2f2   : > { %v2250_v14 = vadd.f32 %v4091_v26, %v2249_v44  ;;  %v5273_v3 = vpop.eup %4096  ;;  %v1784_v44 = vand.u32 65535, %v5051_v53  ;;  %v1935_v24 = vmul.f32 %v4093_v15, %v1934_v61 }
 0x2f3   : > { %v1372_v10 = vmul.f32 %v5273_v3, %v5250_v1  ;;  %vm1377_vm0 = vweird.f32 %v5273_v3 }
 0x2f4   : > { %v2254_v45 = vsel %vm2253_vm2, %v4091_v26, %v2250_v14  ;;  %v1953_v14 = vsel %vm1952_vm1, %v5131_v48, %v1951_v31  ;;  %v1955_v26 = vand.u32 2147483648, %v5131_v48  ;;  %v1134_v48 = vmul.f32 %v4095_v59, %v4680_v0  ;;  %vm5296_vm15 = vmor %vm1376_vm5, %vm1377_vm0 }
 0x2f5   : > { %v5255_v13 = vsel %vm2256_vm13, %v2258_v9, %v2254_v45  ;;  %v1373_v30 = vsub.f32 1.0, %v1372_v10  ;;  %v1844_v9 = vand.u32 65535, %v5060_v5  ;;  %v1936_v31 = vmul.f32 0.5, %v1935_v24 }
 0x2f6   : > { %8561 = vst [vmem:[#allocation53_spill] sm:$0xff] %v5255_v13  ;;  %v5259_v52 = vadd.f32 %v5255_v13, %v5253_v16  ;;  %v1956_v28 = vsel %vm1954_vm10, %v1955_v26, %v1953_v14  ;;  %v1135_v51 = vmul.f32 %v4095_v59, %v1134_v48  ;;  %v1859_v10 = vand.u32 65535, %v5084_v21 }
 0x2f7   : > { %v2071_v41 = vmax.f32 %v1956_v28, 1e-10  ;;  %v1374_v14 = vmul.f32 %v5273_v3, %v1373_v30  ;;  %v1937_v28 = vsub.f32 1.5, %v1936_v31  ;;  %v1769_v24 = vand.u32 65535, %v5081_v42 }
 0x2f8   : > { %8562 = vst [vmem:[#allocation54_spill] sm:$0xff] %v5259_v52  ;;  %v1136_v23 = vmul.f32 0.5, %v1135_v51  ;;  %vm1140_vm0 = vcmp.eq.f32.partialorder %v4680_v0, inf }
 0x2f9   : > { %4098 = vrcp.f32 %v2071_v41  ;;  %v1375_v61 = vadd.f32 %v5273_v3, %v1374_v14  ;;  %v1938_v51 = vmul.f32 %v4093_v15, %v1937_v28  ;;  %vm2176_vm10 = vweird.f32 %v2071_v41 }
 0x2ff   : > { %v4099_v53 = vpop.eup %4098 }
 0x300   : > { %vm2177_vm13 = vweird.f32 %v4099_v53 }
 0x301   : > { %vm2178_vm5 = vmor %vm2176_vm10, %vm2177_vm13  ;;  %vm1942_vm10 = vcmp.eq.f32.partialorder %v5161_v18, 0.0 }
 0x318   : > { %v5269_v50 = vpop.xlane.xlu0 %1833 }
 0x319   : > { %vm1835_vm2 = vcmp.eq.f32.partialorder %v5040_v8, %v5269_v50  ;;  %v1786_v8 = vcvt.s32.f32 %v1784_v44  ;;  %v1382_v44 = vand.u32 2147483648, %v5250_v1 }
 0x31a   : > { %v1836_v25 = vsel %vm1835_vm2, %v1831_v54, inf  ;;  %v1846_v54 = vcvt.s32.f32 %v1844_v9  ;;  %v2182_v9 = vand.u32 2147483648, %v2071_v41 }
 0x31b   : > { %1837 = vmin.xlane.f32.xlu1 %v1836_v25  ;;  %v1137_v25 = vsub.f32 1.5, %v1136_v23  ;;  %v1379_v23 = vsel %vm5296_vm15, %v5273_v3, %v1375_v61  ;;  %v1383_v14 = vor.u32 1.1754944e-38, %v1382_v44  ;;  %vm1940_vm15 = vcmp.eq.f32.partialorder %v5161_v18, inf }
 0x31c   : > { %v2183_v15 = vor.u32 1.1754944e-38, %v2182_v9 }
 0x31d   : > { %v1138_v31 = vmul.f32 %v4095_v59, %v1137_v25 }
 0x31f   : > { %v1139_v61 = vmul.f32 %v1138_v31, %v4680_v0 }
 0x320   : > { %v5280_v11 = vpop.xlane.xlu0 %1788  ;;  %v5286_v26 = vpop.xlane.xlu1 %1848 }
 0x321   : > { %vm1790_vm4 = vcmp.eq.f32.partialorder %v5056_v38, %v5280_v11  ;;  %vm1850_vm11 = vcmp.eq.f32.partialorder %v5069_v2, %v5286_v26  ;;  %v2172_v38 = vmul.f32 %v4099_v53, %v2071_v41  ;;  %v1380_v2 = vand.u32 2147483647, %v5250_v1 }
 0x322   : > { %v1791_v45 = vsel %vm1790_vm4, %v1786_v8, inf  ;;  %v1851_v5 = vsel %vm1850_vm11, %v1846_v54, inf  ;;  %v1939_v1 = vmul.f32 %v1938_v51, %v5161_v18  ;;  %v1141_v8 = vsel %vm1140_vm0, %v4680_v0, %v1139_v61 }
 0x323   : > { %1792 = vmin.xlane.f32.xlu1 %v1791_v45  ;;  %1852 = vmin.xlane.f32.xlu2 %v1851_v5  ;;  %v2173_v48 = vsub.f32 1.0, %v2172_v38  ;;  %v2180_v45 = vand.u32 2147483647, %v2071_v41  ;;  %v1861_v38 = vcvt.s32.f32 %v1859_v10  ;;  %v1771_v5 = vcvt.s32.f32 %v1769_v24 }
 0x324   : > { %vm1381_vm1 = vcmp.eq.f32.partialorder %v1380_v2, 8.507059e+37  ;;  %v1943_v10 = vand.u32 2147483648, %v5161_v18 }
 0x325   : > { %v2174_v30 = vmul.f32 %v4099_v53, %v2173_v48  ;;  %vm2181_vm11 = vcmp.eq.f32.partialorder %v2180_v45, 8.507059e+37  ;;  %v5314_v25 = vsel %vm1381_vm1, %v1383_v14, %v1379_v23  ;;  %v1143_v48 = vand.u32 2147483648, %v4680_v0 }
 0x326   : > { %8565 = vst [vmem:[#allocation55_spill] sm:$0xff] %v5314_v25  ;;  %vm1142_vm1 = vcmp.eq.f32.partialorder %v4680_v0, 0.0  ;;  %v1799_v14 = vand.u32 65535, %v5138_v17 }
 0x327   : > { %v2175_v21 = vadd.f32 %v4099_v53, %v2174_v30  ;;  %v1144_v31 = vsel %vm1142_vm1, %v1143_v48, %v1141_v8 }
 0x328   : > { %v5304_v54 = vpop.xlane.xlu2 %1863  ;;  %v5306_v42 = vpop.xlane.xlu0 %1773 }
 0x329   : > { %vm1865_vm2 = vcmp.eq.f32.partialorder %v5092_v37, %v5304_v54  ;;  %vm1775_vm4 = vcmp.eq.f32.partialorder %v5090_v34, %v5306_v42  ;;  %v2179_v28 = vsel %vm2178_vm5, %v4099_v53, %v2175_v21  ;;  %v5319_v44 = vpop.xlane.xlu1 %1554  ;;  %v1941_v34 = vsel %vm1940_vm15, %v5161_v18, %v1939_v1 }
 0x32a   : > { %v1866_v59 = vsel %vm1865_vm2, %v1861_v38, inf  ;;  %v1776_v3 = vsel %vm1775_vm4, %v1771_v5, inf  ;;  %v5316_v41 = vsel %vm2181_vm11, %v2183_v15, %v2179_v28  ;;  %vm1601_vm13 = vcmp.le.f32.partialorder %v5104_v32, %v5319_v44  ;;  %v8659_v32 = vld [vmem:[#allocation49_spill] sm:$0xff] }
 0x32b   : > { %1867 = vmin.xlane.f32.xlu0 %v1866_v59  ;;  %1777 = vmin.xlane.f32.xlu1 %v1776_v3  ;;  %8566 = vst [vmem:[#allocation56_spill] sm:$0xff] %v5316_v41  ;;  %v5323_v37 = vadd.f32 %v5316_v41, %v5314_v25  ;;  %v1694_v53 = vand.u32 65535, %v5114_v22  ;;  %v1617_v24 = vsel %vm1601_vm13, %v4563_v39, 8  ;;  %v1944_v51 = vsel %vm1942_vm10, %v1943_v10, %v1941_v34 }
 0x32c   : > { %v5338_v2 = vsel %vm752_vm3, %v1617_v24, 2147483647  ;;  %v1814_v22 = vand.u32 65535, %v5126_v62  ;;  %v5348_v0 = vmax.f32 %v1944_v51, 1e-10  ;;  %v1801_v1 = vcvt.s32.f32 %v1799_v14 }
 0x32d   : > { %8567 = vst [vmem:[#allocation57_spill] sm:$0xff] %v5323_v37  ;;  %v1635_v30 = vshra.s32 %v5338_v2, 16  ;;  %v1696_v45 = vcvt.s32.f32 %v1694_v53  ;;  %v5352_v21 = vmax.f32 %v1144_v31, 1e-10  ;;  %v1724_v15 = vand.u32 65535, %v5164_v29 }
 0x32e   : > { %v1816_v62 = vcvt.s32.f32 %v1814_v22  ;;  %4100 = vrcp.f32 %v5348_v0  ;;  %v1754_v51 = vand.u32 65535, %v5178_v6  ;;  %v1780_v37 = vcvt.f32.s32 %v5306_v42 }
 0x32f   : > { %v5344_v23 = vcvt.s32.f32 %v1635_v30  ;;  %4102 = vrcp.f32 %v5352_v21  ;;  %v1726_v34 = vcvt.s32.f32 %v1724_v15  ;;  %v1709_v30 = vand.u32 65535, %v5187_v27 }
 0x330   : > { %v5341_v9 = vpop.xlane.xlu0 %1698  ;;  %v5354_v38 = vpop.xlane.xlu2 %1818  ;;  %vm1361_vm1 = vweird.f32 %v5352_v21  ;;  %v2167_v15 = vand.u32 2147483648, %v5348_v0  ;;  %4104 = vrsqrt.f32 %v4766_v12 }
 0x331   : > { %vm1700_vm2 = vcmp.eq.f32.partialorder %v5123_v19, %v5341_v9  ;;  %1638 = vmin.xlane.f32.xlu2 %v5344_v23  ;;  %vm1820_vm4 = vcmp.eq.f32.partialorder %v5133_v63, %v5354_v38  ;;  %v1711_v14 = vcvt.s32.f32 %v1709_v30  ;;  %4106 = vrsqrt.f32 %v4565_v40 }
 0x332   : > { %v1701_v18 = vsel %vm1700_vm2, %v1696_v45, inf  ;;  %v1821_v5 = vsel %vm1820_vm4, %v1816_v62, inf  ;;  %4108 = vrsqrt.f32 %v5319_v44 }
 0x333   : > { %1702 = vmin.xlane.f32.xlu1 %v1701_v18  ;;  %1822 = vmin.xlane.f32.xlu0 %v1821_v5  ;;  %v1756_v18 = vcvt.s32.f32 %v1754_v51  ;;  %v2168_v51 = vor.u32 1.1754944e-38, %v2167_v15  ;;  %4110 = vrsqrt.f32 %v4797_v35 }
 0x334   : > { %v4101_v59 = vpop.eup %4100  ;;  %4112 = vrsqrt.f32 %v4576_v47 }
 0x335   : > { %v5367_v63 = vpop.eup %4102  ;;  %v2157_v53 = vmul.f32 %v4101_v59, %v5348_v0  ;;  %vm2162_vm2 = vweird.f32 %v4101_v59  ;;  %4114 = vrsqrt.f32 %v4578_v49 }
 0x336   : > { %v1357_v10 = vmul.f32 %v5367_v63, %v5352_v21  ;;  %vm1362_vm10 = vweird.f32 %v5367_v63  ;;  %4116 = vrsqrt.f32 %v4595_v60 }
 0x337   : > { %v5359_v19 = vpop.xlane.xlu1 %1803  ;;  %v2158_v8 = vsub.f32 1.0, %v2157_v53  ;;  %vm5404_vm4 = vmor %vm1361_vm1, %vm1362_vm10  ;;  %v2165_v53 = vand.u32 2147483647, %v5348_v0 }
 0x338   : > { %vm1805_vm5 = vcmp.eq.f32.partialorder %v5143_v20, %v5359_v19  ;;  %v5365_v3 = vpop.xlane.xlu2 %1557  ;;  %v1358_v45 = vsub.f32 1.0, %v1357_v10 }
 0x339   : > { %v1806_v17 = vsel %vm1805_vm5, %v1801_v1, inf  ;;  %vm1602_vm11 = vcmp.le.f32.partialorder %v5154_v33, %v5365_v3  ;;  %v1664_v1 = vand.u32 65535, %v5208_v58  ;;  %vm2161_vm5 = vweird.f32 %v5348_v0 }
 0x33a   : > { %1807 = vmin.xlane.f32.xlu2 %v1806_v17  ;;  %v1618_v61 = vsel %vm1602_vm11, %v4563_v39, 8  ;;  %v1359_v6 = vmul.f32 %v5367_v63, %v1358_v45  ;;  %v1367_v17 = vand.u32 2147483648, %v5352_v21  ;;  %vm2163_vm11 = vmor %vm2161_vm5, %vm2162_vm2  ;;  %vm2166_vm1 = vcmp.eq.f32.partialorder %v2165_v53, 8.507059e+37 }
 0x33b   : > { %v5376_v20 = vsel %vm752_vm3, %v1618_v61, 2147483647  ;;  %v1666_v10 = vcvt.s32.f32 %v1664_v1  ;;  %vm1080_vm2 = vcmp.eq.f32.partialorder %v4766_v12, inf  ;;  %vm1082_vm5 = vcmp.eq.f32.partialorder %v4766_v12, 0.0 }
 0x33c   : > { %v1650_v29 = vshra.s32 %v5376_v20, 16 }
 0x33e   : > { %v5383_v24 = vcvt.s32.f32 %v1650_v29 }
 0x33f   : > { %v5371_v28 = vpop.xlane.xlu1 %1728 }
 0x340   : > { %vm1730_vm0 = vcmp.eq.f32.partialorder %v5168_v57, %v5371_v28  ;;  %1653 = vmin.xlane.f32.xlu0 %v5383_v24  ;;  %v2159_v57 = vmul.f32 %v4101_v59, %v2158_v8  ;;  %v1368_v8 = vor.u32 1.1754944e-38, %v1367_v17 }
 0x341   : > { %v1731_v48 = vsel %vm1730_vm0, %v1726_v34, inf  ;;  %v1365_v34 = vand.u32 2147483647, %v5352_v21 }
 0x342   : > { %1732 = vmin.xlane.f32.xlu2 %v1731_v48  ;;  %v2160_v5 = vadd.f32 %v4101_v59, %v2159_v57 }
 0x344   : > { %v2164_v58 = vsel %vm2163_vm11, %v4101_v59, %v2160_v5  ;;  %vm1236_vm11 = vcmp.eq.f32.partialorder %v4565_v40, inf }
 0x345   : > { %v5388_v22 = vpop.xlane.xlu2 %1758  ;;  %v5422_v45 = vsel %vm2166_vm1, %v2168_v51, %v2164_v58  ;;  %v1840_v58 = vcvt.f32.s32 %v5269_v50  ;;  %v8573_v51 = vld [vmem:[#allocation2_spill] sm:$0xff]  ;;  %vm1882_vm1 = vcmp.eq.f32.partialorder %v5319_v44, 0.0 }
 0x346   : > { %vm1760_vm15 = vcmp.eq.f32.partialorder %v5184_v46, %v5388_v22  ;;  %v1739_v46 = vand.u32 65535, %v5204_v4  ;;  %8570 = vst [vmem:[#allocation58_spill] sm:$0xff] %v5422_v45  ;;  %4118 = vrsqrt.f32 %v8573_v51 }
 0x347   : > { %v5392_v31 = vpop.xlane.xlu1 %1713  ;;  %v1761_v62 = vsel %vm1760_vm15, %v1756_v18, inf  ;;  %4120 = vrsqrt.f32 %v5365_v3 }
 0x348   : > { %vm1715_vm13 = vcmp.eq.f32.partialorder %v5193_v7, %v5392_v31  ;;  %1762 = vmin.xlane.f32.xlu0 %v1761_v62  ;;  %v1360_v7 = vadd.f32 %v5367_v63, %v1359_v6  ;;  %v1741_v48 = vcvt.s32.f32 %v1739_v46 }
 0x349   : > { %v1716_v27 = vsel %vm1715_vm13, %v1711_v14, inf  ;;  %vm1366_vm13 = vcmp.eq.f32.partialorder %v1365_v34, 8.507059e+37  ;;  %v4105_v14 = vpop.eup %4104 }
 0x34a   : > { %1717 = vmin.xlane.f32.xlu2 %v1716_v27  ;;  %v1364_v0 = vsel %vm5404_vm4, %v5367_v63, %v1360_v7  ;;  %v4107_v6 = vpop.eup %4106 }
 0x34b   : > { %v5425_v59 = vsel %vm1366_vm13, %v1368_v8, %v1364_v0  ;;  %v1230_v27 = vmul.f32 %v4107_v6, %v4565_v40  ;;  %vm1092_vm13 = vcmp.eq.f32.partialorder %v4797_v35, inf }
 0x34c   : > { %8571 = vst [vmem:[#allocation59_spill] sm:$0xff] %v5425_v59  ;;  %v5429_v57 = vadd.f32 %v5422_v45, %v5425_v59 }
 0x34d   : > { %v5411_v4 = vpop.xlane.xlu2 %1743  ;;  %v1231_v46 = vmul.f32 %v4107_v6, %v1230_v27 }
 0x34e   : > { %vm1745_vm0 = vcmp.eq.f32.partialorder %v5212_v36, %v5411_v4  ;;  %v1679_v36 = vand.u32 65535, %v5223_v55  ;;  %8572 = vst [vmem:[#allocation60_spill] sm:$0xff] %v5429_v57  ;;  %v1074_v55 = vmul.f32 %v4105_v14, %v4766_v12 }
 0x34f   : > { %v5415_v29 = vpop.xlane.xlu1 %1668  ;;  %v1746_v21 = vsel %vm1745_vm0, %v1741_v48, inf  ;;  %v1232_v61 = vmul.f32 0.5, %v1231_v46 }
 0x350   : > { %vm1670_vm15 = vcmp.eq.f32.partialorder %v5216_v43, %v5415_v29  ;;  %1747 = vmin.xlane.f32.xlu0 %v1746_v21  ;;  %v1681_v63 = vcvt.s32.f32 %v1679_v36  ;;  %v1075_v62 = vmul.f32 %v4105_v14, %v1074_v55 }
 0x351   : > { %v1671_v30 = vsel %vm1670_vm15, %v1666_v10, inf  ;;  %v1233_v0 = vsub.f32 1.5, %v1232_v61  ;;  %vm1880_vm15 = vcmp.eq.f32.partialorder %v5319_v44, inf }
 0x352   : > { %1672 = vmin.xlane.f32.xlu2 %v1671_v30  ;;  %v1076_v5 = vmul.f32 0.5, %v1075_v62 }
 0x354   : > { %v1077_v17 = vsub.f32 1.5, %v1076_v5 }
 0x355   : > { %v5431_v43 = vpop.xlane.xlu2 %1683 }
 0x356   : > { %vm1685_vm10 = vcmp.eq.f32.partialorder %v5229_v56, %v5431_v43  ;;  %v4109_v56 = vpop.eup %4108  ;;  %v1078_v53 = vmul.f32 %v4105_v14, %v1077_v17  ;;  %v1234_v17 = vmul.f32 %v4107_v6, %v1233_v0  ;;  %v1795_v0 = vcvt.f32.s32 %v5280_v11 }
 0x357   : > { %v1686_v18 = vsel %vm1685_vm10, %v1681_v63, inf  ;;  %v5442_v1 = vpop.eup %4110  ;;  %v1874_v15 = vmul.f32 %v4109_v56, %v5319_v44  ;;  %v1841_v63 = vshll.u32 %v1840_v58, 16 }
 0x358   : > { %1687 = vmin.xlane.f32.xlu0 %v1686_v18  ;;  %v5446_v7 = vpop.eup %4112  ;;  %v1086_v34 = vmul.f32 %v5442_v1, %v4797_v35  ;;  %v1079_v36 = vmul.f32 %v1078_v53, %v4766_v12  ;;  %v1083_v53 = vand.u32 2147483648, %v4766_v12 }
 0x359   : > { %v1875_v48 = vmul.f32 %v4109_v56, %v1874_v15  ;;  %v5452_v10 = vpop.eup %4114  ;;  %v1242_v8 = vmul.f32 %v5446_v7, %v4576_v47  ;;  %v8575_v15 = vld [vmem:[#allocation3_spill] sm:$0xff] }
 0x35a   : > { %v1087_v21 = vmul.f32 %v5442_v1, %v1086_v34  ;;  %v1194_v18 = vmul.f32 %v5452_v10, %v4578_v49  ;;  %v5465_v27 = vpop.eup %4116  ;;  %4122 = vrsqrt.f32 %v8575_v15  ;;  %v1081_v61 = vsel %vm1080_vm2, %v4766_v12, %v1079_v36 }
 0x35b   : > { %v1876_v14 = vmul.f32 0.5, %v1875_v48  ;;  %v1243_v55 = vmul.f32 %v5446_v7, %v1242_v8  ;;  %v5468_v46 = vpop.eup %4118  ;;  %v8576_v48 = vld [vmem:[#allocation10_spill] sm:$0xff]  ;;  %v1254_v36 = vmul.f32 %v5465_v27, %v4595_v60  ;;  %vm1094_vm2 = vcmp.eq.f32.partialorder %v4797_v35, 0.0 }
 0x35c   : > { %v1088_v5 = vmul.f32 0.5, %v1087_v21  ;;  %v1195_v34 = vmul.f32 %v5452_v10, %v1194_v18  ;;  %v5482_v21 = vpop.eup %4120  ;;  %vm1224_vm12 = vcmp.eq.f32.partialorder %v8575_v15, inf }
 0x35d   : > { %v1877_v58 = vsub.f32 1.5, %v1876_v14  ;;  %v1244_v6 = vmul.f32 0.5, %v1243_v55  ;;  %v1235_v14 = vmul.f32 %v1234_v17, %v4565_v40  ;;  %v1886_v45 = vmul.f32 %v5482_v21, %v5365_v3  ;;  %v8579_v17 = vld [vmem:[#allocation14_spill] sm:$0xff] }
 0x35e   : > { %v1089_v18 = vsub.f32 1.5, %v1088_v5  ;;  %v1196_v55 = vmul.f32 0.5, %v1195_v34  ;;  %v1796_v5 = vshll.u32 %v1795_v0, 16  ;;  %v8578_v0 = vld [vmem:[#allocation4_spill] sm:$0xff] }
 0x35f   : > { %v1245_v41 = vsub.f32 1.5, %v1244_v6  ;;  %v1855_v6 = vcvt.f32.s32 %v5286_v26  ;;  %4124 = vrsqrt.f32 %v8578_v0 }
 0x360   : > { %v5498_v57 = vpop.eup %4122  ;;  %v1090_v34 = vmul.f32 %v5442_v1, %v1089_v18  ;;  %v1887_v1 = vmul.f32 %v5482_v21, %v1886_v45  ;;  %v1197_v18 = vsub.f32 1.5, %v1196_v55 }
 0x361   : > { %v1856_v45 = vshll.u32 %v1855_v6, 16 }
 0x362   : > { %v1198_v11 = vmul.f32 %v5452_v10, %v1197_v18  ;;  %v8583_v10 = vld [vmem:[#allocation13_spill] sm:$0xff] }
 0x38e   : > { %v1838_v30 = vpop.xlane.xlu1 %1837 }
 0x38f   : > { %v1839_v50 = vcvt.f32.s32 %v1838_v30 }
 0x391   : > { %v5463_v62 = vadd.s32 %v1841_v63, %v1839_v50  ;;  %v1182_v63 = vmul.f32 %v5468_v46, %v8573_v51  ;;  %v1084_v50 = vsel %vm1082_vm5, %v1083_v53, %v1081_v61 }
 0x392   : > { %v5500_v61 = vmax.f32 %v1084_v50, 1e-10 }
 0x393   : > { %8574 = vst [vmem:[#allocation2_spill] sm:$0xff] %v5463_v62  ;;  %vm8420_vm4 = vcmp.eq.s32.totalorder %v4563_v39, %v5463_v62  ;;  %v1183_v12 = vmul.f32 %v5468_v46, %v1182_v63  ;;  %v1246_v63 = vmul.f32 %v5446_v7, %v1245_v41  ;;  %v5576_v62 = vmul.f32 %v1198_v11, %v4578_v49 }
 0x394   : > { %v5480_v8 = vsel %vm8420_vm4, inf, %v8576_v48  ;;  %v1878_v48 = vmul.f32 %v4109_v56, %v1877_v58  ;;  %v5509_v56 = vsel %vm1236_vm11, %v4565_v40, %v1235_v14  ;;  %4126 = vrcp.f32 %v5500_v61  ;;  %v8581_v58 = vld [vmem:[#allocation7_spill] sm:$0xff] }
 0x395   : > { %v2392_v30 = vsel %vm752_vm3, %v5480_v8, inf  ;;  %v1184_v14 = vmul.f32 0.5, %v1183_v12 }
 0x396   : > { %2393 = vmin.xlane.f32.xlu2 %v2392_v30  ;;  %v1793_v59 = vpop.xlane.xlu1 %1792  ;;  %v1255_v30 = vmul.f32 %v5465_v27, %v1254_v36  ;;  %v1879_v36 = vmul.f32 %v1878_v48, %v5319_v44 }
 0x397   : > { %v1794_v53 = vcvt.f32.s32 %v1793_v59  ;;  %v1218_v59 = vmul.f32 %v5498_v57, %v8575_v15 }
 0x398   : > { %v1256_v26 = vmul.f32 0.5, %v1255_v30  ;;  %v8580_v30 = vld [vmem:[#allocation5_spill] sm:$0xff]  ;;  %v1881_v12 = vsel %vm1880_vm15, %v5319_v44, %v1879_v36  ;;  %vm1892_vm15 = vcmp.eq.f32.partialorder %v5365_v3, inf }
 0x399   : > { %v5513_v50 = vadd.s32 %v1796_v5, %v1794_v53  ;;  %v1091_v5 = vmul.f32 %v1090_v34, %v4797_v35  ;;  %v1853_v53 = vpop.xlane.xlu2 %1852  ;;  %v1219_v55 = vmul.f32 %v5498_v57, %v1218_v59  ;;  %4128 = vrsqrt.f32 %v8580_v30 }
 0x39a   : > { %v1854_v41 = vcvt.f32.s32 %v1853_v53  ;;  %v1888_v34 = vmul.f32 0.5, %v1887_v1  ;;  %4130 = vrsqrt.f32 %v8581_v58  ;;  %v5542_v53 = vpop.eup %4124  ;;  %v1257_v25 = vsub.f32 1.5, %v1256_v26 }
 0x39b   : > { %8577 = vst [vmem:[#allocation3_spill] sm:$0xff] %v5513_v50  ;;  %vm8416_vm0 = vcmp.eq.s32.totalorder %v4563_v39, %v5513_v50  ;;  %v1093_v59 = vsel %vm1092_vm13, %v4797_v35, %v1091_v5  ;;  %v5547_v36 = vpop.eup %4126  ;;  %v1870_v1 = vcvt.f32.s32 %v5304_v54  ;;  %v1220_v54 = vmul.f32 0.5, %v1219_v55 }
 0x39c   : > { %v5529_v48 = vsel %vm8416_vm0, inf, %v8579_v17  ;;  %v1883_v17 = vand.u32 2147483648, %v5319_v44  ;;  %v5540_v6 = vadd.s32 %v1856_v45, %v1854_v41  ;;  %v1185_v45 = vsub.f32 1.5, %v1184_v14  ;;  %v8584_v14 = vld [vmem:[#allocation6_spill] sm:$0xff] }
 0x39d   : > { %v2383_v7 = vsel %vm752_vm3, %v5529_v48, inf  ;;  %v1095_v41 = vand.u32 2147483648, %v4797_v35  ;;  %v1889_v13 = vsub.f32 1.5, %v1888_v34  ;;  %v5561_v44 = vmul.f32 %v1246_v63, %v4576_v47 }
 0x39e   : > { %2384 = vmin.xlane.f32.xlu2 %v2383_v7  ;;  %8582 = vst [vmem:[#allocation10_spill] sm:$0xff] %v5540_v6  ;;  %v1884_v7 = vsel %vm1882_vm1, %v1883_v17, %v1881_v12  ;;  %vm8456_vm10 = vcmp.eq.s32.totalorder %v4563_v39, %v5540_v6  ;;  %4132 = vrsqrt.f32 %v8584_v14  ;;  %v1778_v34 = vpop.xlane.xlu1 %1777  ;;  %v1868_v17 = vpop.xlane.xlu0 %1867  ;;  %v1282_v63 = vmul.f32 %v5547_v36, %v5500_v61 }
 0x39f   : > { %v5558_v18 = vsel %vm8456_vm10, inf, %v8583_v10  ;;  %v5566_v26 = vpop.eup %4128  ;;  %v1096_v5 = vsel %vm1094_vm2, %v1095_v41, %v1093_v59  ;;  %v5569_v12 = vmax.f32 %v1884_v7, 1e-10  ;;  %v1871_v55 = vshll.u32 %v1870_v1, 16 }
 0x3a0   : > { %v2395_v42 = vsel %vm752_vm3, %v5558_v18, inf  ;;  %v5573_v10 = vpop.eup %4130  ;;  %v1781_v35 = vshll.u32 %v1780_v37, 16  ;;  %v1779_v16 = vcvt.f32.s32 %v1778_v34  ;;  %v1869_v50 = vcvt.f32.s32 %v1868_v17 }
 0x3a1   : > { %2396 = vmin.xlane.f32.xlu0 %v2395_v42  ;;  %v1258_v52 = vmul.f32 %v5465_v27, %v1257_v25  ;;  %v1186_v59 = vmul.f32 %v5468_v46, %v1185_v45  ;;  %v1890_v7 = vmul.f32 %v5482_v21, %v1889_v13  ;;  %v1221_v41 = vsub.f32 1.5, %v1220_v54  ;;  %v8587_v21 = vld [vmem:[#allocation18_spill] sm:$0xff] }
 0x3a2   : > { %v1122_v42 = vmul.f32 %v5542_v53, %v8578_v0  ;;  %v5583_v6 = vadd.s32 %v1781_v35, %v1779_v16  ;;  %v5585_v33 = vadd.s32 %v1871_v55, %v1869_v50  ;;  %v1170_v37 = vmul.f32 %v5566_v26, %v8580_v30 }
 0x3a3   : > { %v1098_v11 = vmul.f32 %v5573_v10, %v8581_v58  ;;  %v5591_v1 = vmax.f32 %v1096_v5, 1e-10  ;;  %4134 = vrcp.f32 %v5569_v12  ;;  %v1705_v13 = vcvt.f32.s32 %v5341_v9  ;;  %v8588_v9 = vld [vmem:[#allocation17_spill] sm:$0xff] }
 0x3a4   : > { %8585 = vst [vmem:[#allocation14_spill] sm:$0xff] %v5583_v6  ;;  %vm8414_vm5 = vcmp.eq.s32.totalorder %v4563_v39, %v5583_v6  ;;  %vm8454_vm11 = vcmp.eq.s32.totalorder %v4563_v39, %v5585_v33  ;;  %v1283_v16 = vsub.f32 1.0, %v1282_v63  ;;  %v5599_v25 = vpop.eup %4132  ;;  %v1891_v27 = vmul.f32 %v1890_v7, %v5365_v3 }
 0x3a5   : > { %8586 = vst [vmem:[#allocation5_spill] sm:$0xff] %v5585_v33  ;;  %v1634_v46 = vand.u32 65535, %v5338_v2  ;;  %v5607_v50 = vsel %vm8414_vm5, inf, %v8587_v21  ;;  %v5613_v45 = vsel %vm8454_vm11, inf, %v8588_v9  ;;  %v5616_v54 = vmul.f32 %v1258_v52, %v4595_v60 }
 0x3a6   : > { %v5619_v5 = vmul.f32 %v1186_v59, %v8573_v51  ;;  %v2380_v2 = vsel %vm752_vm3, %v5607_v50, inf  ;;  %v2398_v34 = vsel %vm752_vm3, %v5613_v45, inf  ;;  %v5627_v63 = vmul.f32 %v5498_v57, %v1221_v41  ;;  %v1703_v21 = vpop.xlane.xlu1 %1702 }
 0x3a7   : > { %v5630_v55 = vmul.f32 %v5542_v53, %v1122_v42  ;;  %v1099_v52 = vmul.f32 %v5573_v10, %v1098_v11  ;;  %2381 = vmin.xlane.f32.xlu2 %v2380_v2  ;;  %2399 = vmin.xlane.f32.xlu1 %v2398_v34  ;;  %v5634_v35 = vmul.f32 %v5566_v26, %v1170_v37  ;;  %4136 = vrcp.f32 %v5591_v1  ;;  %v5645_v42 = vpop.xlane.xlu2 %1638 }
 0x3a8   : > { %v5638_v59 = vmul.f32 %v5599_v25, %v8584_v14  ;;  %v1706_v7 = vshll.u32 %v1705_v13, 16  ;;  %v1893_v41 = vsel %vm1892_vm15, %v5365_v3, %v1891_v27  ;;  %v1636_v11 = vcvt.s32.f32 %v1634_v46 }
 0x3a9   : > { %v5642_v57 = vpop.eup %4134  ;;  %v1284_v37 = vmul.f32 %v5547_v36, %v1283_v16  ;;  %v1825_v9 = vcvt.f32.s32 %v5354_v38  ;;  %v1895_v2 = vand.u32 2147483648, %v5365_v3  ;;  %vm1640_vm13 = vcmp.eq.f32.partialorder %v5344_v23, %v5645_v42  ;;  %v1823_v23 = vpop.xlane.xlu0 %1822 }
 0x3aa   : > { %v1704_v34 = vcvt.f32.s32 %v1703_v21  ;;  %v5652_v17 = vmul.f32 0.5, %v1099_v52  ;;  %vm1894_vm1 = vcmp.eq.f32.partialorder %v5365_v3, 0.0  ;;  %v1641_v13 = vsel %vm1640_vm13, %v1636_v11, inf }
 0x3ab   : > { %vm1286_vm2 = vweird.f32 %v5500_v61  ;;  %v1896_v27 = vsel %vm1894_vm1, %v1895_v2, %v1893_v41  ;;  %1642 = vmin.xlane.f32.xlu0 %v1641_v13  ;;  %v1290_v16 = vand.u32 2147483647, %v5500_v61  ;;  %v2082_v38 = vmul.f32 %v5642_v57, %v5569_v12 }
 0x3ac   : > { %v5656_v46 = vadd.s32 %v1706_v7, %v1704_v34  ;;  %v1810_v0 = vcvt.f32.s32 %v5359_v19  ;;  %v1285_v52 = vadd.f32 %v5547_v36, %v1284_v37  ;;  %vm1287_vm15 = vweird.f32 %v5547_v36  ;;  %v8590_v19 = vld [vmem:[#allocation22_spill] sm:$0xff] }
 0x3ad   : > { %v1292_v3 = vand.u32 2147483648, %v5500_v61  ;;  %v5665_v11 = vpop.eup %4136  ;;  %v1826_v41 = vshll.u32 %v1825_v9, 16  ;;  %v1824_v21 = vcvt.f32.s32 %v1823_v23  ;;  %v2083_v7 = vsub.f32 1.0, %v2082_v38 }
 0x3ae   : > { %8589 = vst [vmem:[#allocation7_spill] sm:$0xff] %v5656_v46  ;;  %vm8417_vm13 = vcmp.eq.s32.totalorder %v4563_v39, %v5656_v46  ;;  %vm1248_vm1 = vcmp.eq.f32.partialorder %v4576_v47, inf  ;;  %v5670_v2 = vmax.f32 %v1896_v27, 1e-10  ;;  %v2090_v34 = vand.u32 2147483647, %v5569_v12 }
 0x3af   : > { %v5676_v37 = vsel %vm8417_vm13, inf, %v8590_v19  ;;  %v2092_v13 = vand.u32 2147483648, %v5569_v12  ;;  %vm1200_vm5 = vcmp.eq.f32.partialorder %v4578_v49, inf  ;;  %vm1188_vm0 = vcmp.eq.f32.partialorder %v8573_v51, inf  ;;  %vm5691_vm13 = vmor %vm1286_vm2, %vm1287_vm15 }
 0x3b0   : > { %8591 = vst [vmem:[#allocation13_spill] sm:$0xff] %v5676_v37  ;;  %v5683_v9 = vadd.s32 %v1826_v41, %v1824_v21  ;;  %v2365_v27 = vsel %vm752_vm3, %v5676_v37, inf  ;;  %v2084_v23 = vmul.f32 %v5642_v57, %v2083_v7  ;;  %vm2087_vm8 = vweird.f32 %v5642_v57  ;;  %v1808_v41 = vpop.xlane.xlu2 %1807 }
 0x3b1   : > { %v1811_v19 = vshll.u32 %v1810_v0, 16  ;;  %2366 = vmin.xlane.f32.xlu2 %v2365_v27  ;;  %v1289_v21 = vsel %vm5691_vm13, %v5547_v36, %v1285_v52  ;;  %vm5701_vm4 = vcmp.eq.f32.partialorder %v1290_v16, 8.507059e+37  ;;  %v1297_v61 = vmul.f32 %v5665_v11, %v5591_v1  ;;  %v8597_v0 = vld [vmem:[#allocation21_spill] sm:$0xff] }
 0x3b2   : > { %8592 = vst [vmem:[#allocation6_spill] sm:$0xff] %v5683_v9  ;;  %v1809_v6 = vcvt.f32.s32 %v1808_v41  ;;  %vm8425_vm2 = vcmp.eq.s32.totalorder %v4563_v39, %v5683_v9  ;;  %v2085_v7 = vadd.f32 %v5642_v57, %v2084_v23  ;;  %vm2086_vm15 = vweird.f32 %v5569_v12 }
 0x3b3   : > { %4138 = vrcp.f32 %v5670_v2  ;;  %v5716_v36 = vsel %vm8425_vm2, inf, %v8597_v0  ;;  %v1293_v16 = vor.u32 1.1754944e-38, %v1292_v3  ;;  %vm2088_vm13 = vmor %vm2086_vm15, %vm2087_vm8  ;;  %v2093_v52 = vor.u32 1.1754944e-38, %v2092_v13 }
 0x3b4   : > { %8598 = vst [vmem:[#allocation18_spill] sm:$0xff] %v5716_v36  ;;  %v5720_v27 = vadd.s32 %v1811_v19, %v1809_v6  ;;  %v2389_v38 = vsel %vm752_vm3, %v5716_v36, inf  ;;  %v2089_v12 = vsel %vm2088_vm13, %v5642_v57, %v2085_v7  ;;  %vm2091_vm6 = vcmp.eq.f32.partialorder %v2090_v34, 8.507059e+37  ;;  %v8603_v34 = vld [vmem:[#allocation24_spill] sm:$0xff] }
 0x3b5   : > { %v5726_v23 = vmul.f32 0.5, %v5630_v55  ;;  %2390 = vmin.xlane.f32.xlu1 %v2389_v38  ;;  %v5730_v41 = vsel %vm5701_vm4, %v1293_v16, %v1289_v21  ;;  %v1298_v3 = vsub.f32 1.0, %v1297_v61  ;;  %v5732_v0 = vsel %vm2091_vm6, %v2093_v52, %v2089_v12 }
 0x3b6   : > { %8599 = vst [vmem:[#allocation17_spill] sm:$0xff] %v5720_v27  ;;  %v1223_v6 = vmul.f32 %v5627_v63, %v8575_v15  ;;  %v1735_v13 = vcvt.f32.s32 %v5371_v28  ;;  %vm8424_vm8 = vcmp.eq.s32.totalorder %v4563_v39, %v5720_v27  ;;  %v5741_v55 = vadd.f32 %v5732_v0, %v5730_v41 }
 0x3b7   : > { %8600 = vst [vmem:[#allocation22_spill] sm:$0xff] %v5730_v41  ;;  %v5744_v57 = vmul.f32 0.5, %v5634_v35  ;;  %v1159_v46 = vmul.f32 %v5599_v25, %v5638_v59  ;;  %v5752_v63 = vsel %vm8424_vm8, inf, %v8603_v34  ;;  %v1649_v28 = vand.u32 65535, %v5376_v20 }
 0x3b8   : > { %8601 = vst [vmem:[#allocation21_spill] sm:$0xff] %v5732_v0  ;;  %v1249_v19 = vsel %vm1248_vm1, %v4576_v47, %v5561_v44  ;;  %vm1250_vm6 = vcmp.eq.f32.partialorder %v4576_v47, 0.0  ;;  %vm1262_vm4 = vcmp.eq.f32.partialorder %v4595_v60, 0.0  ;;  %v1101_v59 = vsub.f32 1.5, %v5652_v17  ;;  %v1733_v7 = vpop.xlane.xlu2 %1732 }
 0x3b9   : > { %8602 = vst [vmem:[#allocation61_spill] sm:$0xff] %v5741_v55  ;;  %v2386_v21 = vsel %vm752_vm3, %v5752_v63, inf  ;;  %v5765_v61 = vpop.eup %4138  ;;  %v5771_v20 = vsel %vm1200_vm5, %v4578_v49, %v5576_v62  ;;  %v1261_v44 = vsel %vm1260_vm14, %v4595_v60, %v5616_v54  ;;  %v5781_v17 = vsel %vm1188_vm0, %v8573_v51, %v5619_v5  ;;  %v5792_v5 = vpop.xlane.xlu0 %1653 }
 0x3ba   : > { %8604 = vst [vmem:[#allocation24_spill] sm:$0xff] %v5752_v63  ;;  %2387 = vmin.xlane.f32.xlu0 %v2386_v21  ;;  %v1299_v16 = vmul.f32 %v5665_v11, %v1298_v3  ;;  %v1225_v62 = vsel %vm1224_vm12, %v8575_v15, %v1223_v6  ;;  %v1736_v38 = vshll.u32 %v1735_v13, 16  ;;  %v1734_v12 = vcvt.f32.s32 %v1733_v7 }
 0x3bb   : > { %v5789_v34 = vmul.f32 0.5, %v1159_v46  ;;  %8605 = vst [vmem:[#allocation62_spill] sm:$0xff] %v5792_v5  ;;  %v1651_v21 = vcvt.s32.f32 %v1649_v28  ;;  %vm1226_vm14 = vcmp.eq.f32.partialorder %v8575_v15, 0.0  ;;  %v1102_v3 = vmul.f32 %v5573_v10, %v1101_v59 }
 0x3bc   : > { %vm1104_vm0 = vcmp.eq.f32.partialorder %v8581_v58, inf  ;;  %v5797_v6 = vadd.s32 %v1736_v38, %v1734_v12  ;;  %vm1655_vm12 = vcmp.eq.f32.partialorder %v5383_v24, %v5792_v5  ;;  %v2097_v13 = vmul.f32 %v5765_v61, %v5670_v2  ;;  %v8607_v38 = vld [vmem:[#allocation26_spill] sm:$0xff] }
 0x3bd   : > { %v1656_v46 = vsel %vm1655_vm12, %v1651_v21, inf  ;;  %v1300_v7 = vadd.f32 %v5665_v11, %v1299_v16  ;;  %vm1301_vm5 = vweird.f32 %v5591_v1  ;;  %vm1302_vm1 = vweird.f32 %v5665_v11 }
 0x3be   : > { %8606 = vst [vmem:[#allocation63_spill] sm:$0xff] %v5797_v6  ;;  %v1720_v28 = vcvt.f32.s32 %v5392_v31  ;;  %1657 = vmin.xlane.f32.xlu1 %v1656_v46  ;;  %vm8428_vm15 = vcmp.eq.s32.totalorder %v4563_v39, %v5797_v6  ;;  %v1305_v10 = vand.u32 2147483647, %v5591_v1  ;;  %v2098_v59 = vsub.f32 1.0, %v2097_v13  ;;  %vm5823_vm8 = vmor %vm1301_vm5, %vm1302_vm1 }
 0x3bf   : > { %vm1238_vm13 = vcmp.eq.f32.partialorder %v4565_v40, 0.0  ;;  %v1765_v24 = vcvt.f32.s32 %v5388_v22  ;;  %v5816_v16 = vsel %vm8428_vm15, inf, %v8607_v38  ;;  %v1307_v12 = vand.u32 2147483648, %v5591_v1 }
 0x3c0   : > { %8608 = vst [vmem:[#allocation26_spill] sm:$0xff] %v5816_v16  ;;  %v2107_v31 = vand.u32 2147483648, %v5670_v2  ;;  %vm1106_vm12 = vcmp.eq.f32.partialorder %v8581_v58, 0.0  ;;  %v2371_v21 = vsel %vm752_vm3, %v5816_v16, inf  ;;  %v2099_v22 = vmul.f32 %v5765_v61, %v2098_v59  ;;  %v1718_v1 = vpop.xlane.xlu2 %1717 }
 0x3c1   : > { %vm2102_vm2 = vweird.f32 %v5765_v61  ;;  %v2105_v46 = vand.u32 2147483647, %v5670_v2  ;;  %v1103_v38 = vmul.f32 %v1102_v3, %v8581_v58  ;;  %v8611_v35 = vand.u32 2147483648, %v4576_v47  ;;  %v1763_v47 = vpop.xlane.xlu0 %1762 }
 0x3c2   : > { %2372 = vmin.xlane.f32.xlu0 %v2371_v21  ;;  %v8612_v52 = vand.u32 2147483648, %v4595_v60  ;;  %v1304_v59 = vsel %vm5823_vm8, %v5665_v11, %v1300_v7  ;;  %v1721_v41 = vshll.u32 %v1720_v28, 16  ;;  %v1719_v55 = vcvt.f32.s32 %v1718_v1  ;;  %v8625_v1 = vld [vmem:[#allocation29_spill] sm:$0xff] }
 0x3c3   : > { %v1252_v54 = vsel %vm1250_vm6, %v8611_v35, %v1249_v19  ;;  %v2100_v3 = vadd.f32 %v5765_v61, %v2099_v22  ;;  %vm2101_vm5 = vweird.f32 %v5670_v2  ;;  %vm1202_vm1 = vcmp.eq.f32.partialorder %v4578_v49, 0.0 }
 0x3c4   : > { %v1264_v0 = vsel %vm1262_vm4, %v8612_v52, %v1261_v44  ;;  %v1766_v21 = vshll.u32 %v1765_v24, 16  ;;  %vm1306_vm6 = vcmp.eq.f32.partialorder %v1305_v10, 8.507059e+37  ;;  %v1308_v19 = vor.u32 1.1754944e-38, %v1307_v12  ;;  %vm2103_vm15 = vmor %vm2101_vm5, %vm2102_vm2 }
 0x3c5   : > { %v2108_v60 = vor.u32 1.1754944e-38, %v2107_v31  ;;  %v5847_v35 = vadd.s32 %v1721_v41, %v1719_v55  ;;  %v1764_v44 = vcvt.f32.s32 %v1763_v47  ;;  %v2104_v11 = vsel %vm2103_vm15, %v5765_v61, %v2100_v3 }
 0x3c6   : > { %vm2106_vm8 = vcmp.eq.f32.partialorder %v2105_v46, 8.507059e+37  ;;  %vm1190_vm4 = vcmp.eq.f32.partialorder %v8573_v51, 0.0  ;;  %v5851_v52 = vmax.f32 %v1252_v54, 1e-10  ;;  %v8614_v2 = vand.u32 2147483648, %v8575_v15 }
 0x3c7   : > { %8613 = vst [vmem:[#allocation64_spill] sm:$0xff] %v5847_v35  ;;  %v5857_v28 = vsel %vm1306_vm6, %v1308_v19, %v1304_v59  ;;  %v5859_v10 = vsel %vm2106_vm8, %v2108_v60, %v2104_v11  ;;  %v1675_v41 = vcvt.f32.s32 %v5415_v29  ;;  %v5862_v55 = vadd.s32 %v1766_v21, %v1764_v44 }
 0x3c8   : > { %v1228_v7 = vsel %vm1226_vm14, %v8614_v2, %v1225_v62  ;;  %8615 = vst [vmem:[#allocation65_spill] sm:$0xff] %v5857_v28  ;;  %vm8448_vm2 = vcmp.eq.s32.totalorder %v4563_v39, %v5847_v35  ;;  %v5868_v61 = vadd.f32 %v5859_v10, %v5857_v28  ;;  %v1161_v54 = vsub.f32 1.5, %v5789_v34  ;;  %v8619_v62 = vld [vmem:[#allocation30_spill] sm:$0xff] }
 0x3c9   : > { %8616 = vst [vmem:[#allocation66_spill] sm:$0xff] %v5859_v10  ;;  %v1105_v15 = vsel %vm1104_vm0, %v8581_v58, %v1103_v38  ;;  %v5878_v29 = vsel %vm8448_vm2, inf, %v8619_v62  ;;  %v5880_v24 = vmax.f32 %v1264_v0, 1e-10  ;;  %v1750_v12 = vcvt.f32.s32 %v5411_v4  ;;  %v1673_v38 = vpop.xlane.xlu2 %1672  ;;  %v1748_v21 = vpop.xlane.xlu0 %1747 }
 0x3ca   : > { %8617 = vst [vmem:[#allocation67_spill] sm:$0xff] %v5862_v55  ;;  %v2368_v31 = vsel %vm752_vm3, %v5878_v29, inf  ;;  %vm8452_vm14 = vcmp.eq.s32.totalorder %v4563_v39, %v5862_v55  ;;  %v8621_v34 = vand.u32 2147483648, %v4565_v40  ;;  %v8622_v22 = vsub.f32 1.5, %v5726_v23 }
 0x3cb   : > { %8618 = vst [vmem:[#allocation68_spill] sm:$0xff] %v5868_v61  ;;  %v8624_v0 = vsub.f32 1.5, %v5744_v57  ;;  %2369 = vmin.xlane.f32.xlu0 %v2368_v31  ;;  %v5904_v59 = vsel %vm8452_vm14, inf, %v8625_v1  ;;  %v5906_v3 = vmax.f32 %v1228_v7, 1e-10  ;;  %v1676_v40 = vshll.u32 %v1675_v41, 16 }
 0x3cc   : > { %8620 = vst [vmem:[#allocation30_spill] sm:$0xff] %v5878_v29  ;;  %v1240_v13 = vsel %vm1238_vm13, %v8621_v34, %v5509_v56  ;;  %v5895_v46 = vmul.f32 %v5542_v53, %v8622_v22  ;;  %v1674_v56 = vcvt.f32.s32 %v1673_v38  ;;  %v2377_v53 = vsel %vm752_vm3, %v5904_v59, inf  ;;  %v8636_v22 = vld [vmem:[#allocation40_spill] sm:$0xff]  ;;  %v8650_v29 = vld [vmem:[#allocation41_spill] sm:$0xff] }
 0x3cd   : > { %v1174_v4 = vmul.f32 %v5566_v26, %v8624_v0  ;;  %8626 = vst [vmem:[#allocation29_spill] sm:$0xff] %v5904_v59  ;;  %4140 = vrcp.f32 %v5851_v52  ;;  %v1162_v23 = vmul.f32 %v5599_v25, %v1161_v54  ;;  %v8627_v26 = vand.u32 2147483648, %v8581_v58  ;;  %2378 = vmin.xlane.f32.xlu1 %v2377_v53  ;;  %v8630_v58 = vld [vmem:[#allocation39_spill] sm:$0xff]  ;;  %v8637_v0 = vld [vmem:[#allocation33_spill] sm:$0xff]  ;;  %v8639_v1 = vld [vmem:[#allocation8_spill] sm:$0xff] }
 0x3ce   : > { %8623 = vst [vmem:[#allocation69_spill] sm:$0xff] %v5895_v46  ;;  %4142 = vrcp.f32 %v5880_v24  ;;  %v5917_v47 = vmax.f32 %v1240_v13, 1e-10  ;;  %v1751_v19 = vshll.u32 %v1750_v12, 16  ;;  %v5919_v60 = vadd.s32 %v1676_v40, %v1674_v56 }
 0x3cf   : > { %v1108_v57 = vsel %vm1106_vm12, %v8627_v26, %v1105_v15  ;;  %v1749_v44 = vcvt.f32.s32 %v1748_v21  ;;  %v8629_v11 = vand.u32 2147483648, %v4578_v49  ;;  %v1175_v2 = vmul.f32 %v1174_v4, %v8580_v30  ;;  %v8634_v15 = vld [vmem:[#allocation34_spill] sm:$0xff] }
 0x3d0   : > { %8628 = vst [vmem:[#allocation70_spill] sm:$0xff] %v5919_v60  ;;  %vm1176_vm0 = vcmp.eq.f32.partialorder %v8580_v30, inf  ;;  %vm1164_vm15 = vcmp.eq.f32.partialorder %v8584_v14, inf  ;;  %4144 = vrsqrt.f32 %v8630_v58  ;;  %vm8443_vm13 = vcmp.eq.s32.totalorder %v4563_v39, %v5919_v60 }
 0x3d1   : > { %v1204_v25 = vsel %vm1202_vm1, %v8629_v11, %v5771_v20  ;;  %v5930_v7 = vadd.s32 %v1751_v19, %v1749_v44  ;;  %4146 = vrcp.f32 %v5906_v3  ;;  %v8632_v41 = vand.u32 2147483648, %v8573_v51 }
 0x3d2   : > { %vm1178_vm12 = vcmp.eq.f32.partialorder %v8580_v30, 0.0  ;;  %v1163_v20 = vmul.f32 %v1162_v23, %v8584_v14  ;;  %v5942_v54 = vmax.f32 %v1108_v57, 1e-10  ;;  %v5948_v62 = vsel %vm8443_vm13, inf, %v8634_v15  ;;  %v1688_v57 = vpop.xlane.xlu0 %1687 }
 0x3d3   : > { %8631 = vst [vmem:[#allocation39_spill] sm:$0xff] %v5930_v7  ;;  %v1192_v49 = vsel %vm1190_vm4, %v8632_v41, %v5781_v17  ;;  %v5950_v12 = vmax.f32 %v1204_v25, 1e-10  ;;  %v5952_v31 = vpop.eup %4140  ;;  %v1690_v34 = vcvt.f32.s32 %v5431_v43  ;;  %v2359_v51 = vsel %vm752_vm3, %v5948_v62, inf }
 0x3d4   : > { %8633 = vst [vmem:[#allocation71_spill] sm:$0xff] %v5942_v54  ;;  %vm8449_vm5 = vcmp.eq.s32.totalorder %v4563_v39, %v5930_v7  ;;  %4148 = vrcp.f32 %v5917_v47  ;;  %v5960_v17 = vpop.eup %4142  ;;  %v1179_v13 = vand.u32 2147483648, %v8580_v30  ;;  %2360 = vmin.xlane.f32.xlu0 %v2359_v51  ;;  %v5970_v4 = vmax.f32 %v1192_v49, 1e-10  ;;  %v8640_v51 = vld [vmem:[#allocation43_spill] sm:$0xff] }
 0x3d5   : > { %8635 = vst [vmem:[#allocation34_spill] sm:$0xff] %v5948_v62  ;;  %4150 = vrsqrt.f32 %v8636_v22  ;;  %v5968_v43 = vsel %vm8449_vm5, inf, %v8637_v0  ;;  %v1502_v56 = vand.u32 2147483648, %v5851_v52  ;;  %v1177_v23 = vsel %vm1176_vm0, %v8580_v30, %v1175_v2 }
 0x3d6   : > { %8638 = vst [vmem:[#allocation40_spill] sm:$0xff] %v5968_v43  ;;  %4152 = vrsqrt.f32 %v8639_v1  ;;  %v2374_v40 = vsel %vm752_vm3, %v5968_v43, inf  ;;  %v5977_v53 = vpop.eup %4144  ;;  %v5985_v26 = vsel %vm1164_vm15, %v8584_v14, %v1163_v20  ;;  %v1492_v21 = vmul.f32 %v5952_v31, %v5851_v52 }
 0x3d7   : > { %2375 = vmin.xlane.f32.xlu1 %v2374_v40  ;;  %4154 = vrcp.f32 %v5950_v12  ;;  %v5990_v19 = vpop.eup %4146  ;;  %v1691_v44 = vshll.u32 %v1690_v34, 16  ;;  %v1689_v11 = vcvt.f32.s32 %v1688_v57  ;;  %v1517_v25 = vand.u32 2147483648, %v5880_v24  ;;  %v8642_v57 = vld [vmem:[#allocation37_spill] sm:$0xff] }
 0x3d8   : > { %4156 = vrcp.f32 %v5942_v54  ;;  %v1500_v2 = vand.u32 2147483647, %v5851_v52  ;;  %v1507_v41 = vmul.f32 %v5960_v17, %v5880_v24  ;;  %v1515_v49 = vand.u32 2147483647, %v5880_v24 }
 0x3d9   : > { %4158 = vrcp.f32 %v5970_v4  ;;  %v2042_v15 = vmul.f32 %v5977_v53, %v8630_v58  ;;  %v6004_v34 = vadd.s32 %v1691_v44, %v1689_v11  ;;  %v6006_v0 = vor.u32 1.1754944e-38, %v1502_v56 }
 0x3da   : > { %v5999_v20 = vpop.eup %4148  ;;  %4160 = vrsqrt.f32 %v8640_v51  ;;  %v1493_v38 = vsub.f32 1.0, %v1492_v21  ;;  %v1462_v10 = vmul.f32 %v5990_v19, %v5906_v3  ;;  %v1472_v28 = vand.u32 2147483648, %v5906_v3  ;;  %v8644_v21 = vld [vmem:[#allocation36_spill] sm:$0xff] }
 0x3db   : > { %8641 = vst [vmem:[#allocation33_spill] sm:$0xff] %v6004_v34  ;;  %v6008_v40 = vpop.eup %4150  ;;  %4162 = vrsqrt.f32 %v8642_v57  ;;  %vm1166_vm1 = vcmp.eq.f32.partialorder %v8584_v14, 0.0  ;;  %vm8441_vm6 = vcmp.eq.s32.totalorder %v4563_v39, %v6004_v34  ;;  %v6019_v44 = vor.u32 1.1754944e-38, %v1517_v25 }
 0x3dc   : > { %v6014_v61 = vpop.eup %4152  ;;  %v1470_v56 = vand.u32 2147483647, %v5906_v3  ;;  %v1487_v11 = vand.u32 2147483648, %v5917_v47  ;;  %v6029_v35 = vsel %vm8441_vm6, inf, %v8644_v21  ;;  %vm1496_vm8 = vweird.f32 %v5851_v52 }
 0x3dd   : > { %8643 = vst [vmem:[#allocation43_spill] sm:$0xff] %v6014_v61  ;;  %v6023_v60 = vpop.eup %4154  ;;  %v1508_v7 = vsub.f32 1.0, %v1507_v41  ;;  %v1477_v46 = vmul.f32 %v5999_v20, %v5917_v47  ;;  %v1485_v25 = vand.u32 2147483647, %v5917_v47  ;;  %v2043_v61 = vmul.f32 %v5977_v53, %v2042_v15 }
 0x3de   : > { %8645 = vst [vmem:[#allocation37_spill] sm:$0xff] %v6029_v35  ;;  %v6035_v6 = vpop.eup %4156  ;;  %v2054_v1 = vmul.f32 %v6008_v40, %v8636_v22  ;;  %v2362_v34 = vsel %vm752_vm3, %v6029_v35, inf  ;;  %v1180_v21 = vsel %vm1178_vm12, %v1179_v13, %v1177_v23  ;;  %v1494_v41 = vmul.f32 %v5952_v31, %v1493_v38 }
 0x3df   : > { %8646 = vst [vmem:[#allocation36_spill] sm:$0xff] %v6035_v6  ;;  %v6044_v55 = vpop.eup %4158  ;;  %2363 = vmin.xlane.f32.xlu1 %v2362_v34  ;;  %vm1497_vm4 = vweird.f32 %v5952_v31  ;;  %v1463_v27 = vsub.f32 1.0, %v1462_v10  ;;  %v6048_v9 = vor.u32 1.1754944e-38, %v1472_v28  ;;  %vm1511_vm0 = vweird.f32 %v5880_v24  ;;  %v8647_v34 = vld [vmem:[#allocation38_spill] sm:$0xff] }
 0x3e0   : > { %v6050_v15 = vpop.eup %4160  ;;  %vm1512_vm15 = vweird.f32 %v5960_v17  ;;  %v6054_v33 = vor.u32 1.1754944e-38, %v1487_v11  ;;  %v1432_v30 = vmul.f32 %v6023_v60, %v5950_v12  ;;  %v1440_v13 = vand.u32 2147483647, %v5950_v12  ;;  %vm6097_vm11 = vmor %vm1496_vm8, %vm1497_vm4 }
 0x3e1   : > { %v6059_v23 = vpop.eup %4162  ;;  %vm1466_vm12 = vweird.f32 %v5906_v3  ;;  %vm1467_vm6 = vweird.f32 %v5990_v19  ;;  %v1478_v28 = vsub.f32 1.0, %v1477_v46  ;;  %v1442_v10 = vand.u32 2147483648, %v5950_v12 }
 0x3e2   : > { %v6064_v38 = vmax.f32 %v1180_v21, 1e-10  ;;  %4164 = vrsqrt.f32 %v8647_v34  ;;  %v2044_v11 = vmul.f32 0.5, %v2043_v61  ;;  %v2055_v35 = vmul.f32 %v6008_v40, %v2054_v1  ;;  %v8651_v1 = vld [vmem:[#allocation48_spill] sm:$0xff]  ;;  %vm6151_vm4 = vmor %vm1466_vm12, %vm1467_vm6 }
 0x3e3   : > { %vm6068_vm13 = vcmp.eq.f32.partialorder %v1500_v2, 8.507059e+37  ;;  %v1509_v43 = vmul.f32 %v5960_v17, %v1508_v7  ;;  %4166 = vrsqrt.f32 %v8650_v29  ;;  %v2018_v46 = vmul.f32 %v6050_v15, %v8640_v51 }
 0x3e4   : > { %v1495_v59 = vadd.f32 %v5952_v31, %v1494_v41  ;;  %v1464_v21 = vmul.f32 %v5990_v19, %v1463_v27  ;;  %vm1481_vm2 = vweird.f32 %v5917_v47  ;;  %v2030_v61 = vmul.f32 %v6059_v23, %v8642_v57 }
 0x3e5   : > { %4168 = vrsqrt.f32 %v8651_v1  ;;  %vm6082_vm5 = vcmp.eq.f32.partialorder %v1515_v49, 8.507059e+37  ;;  %v1433_v7 = vsub.f32 1.0, %v1432_v30  ;;  %v1417_v16 = vmul.f32 %v6044_v55, %v5970_v4  ;;  %v8662_v49 = vld [vmem:[#allocation50_spill] sm:$0xff] }
 0x3e6   : > { %v1479_v63 = vmul.f32 %v5999_v20, %v1478_v28  ;;  %vm1482_vm14 = vweird.f32 %v5999_v20  ;;  %v6090_v27 = vor.u32 1.1754944e-38, %v1442_v10  ;;  %4170 = vrcp.f32 %v6064_v38 }
 0x3e7   : > { %v2045_v41 = vsub.f32 1.5, %v2044_v11  ;;  %v2056_v5 = vmul.f32 0.5, %v2055_v35  ;;  %v1510_v30 = vadd.f32 %v5960_v17, %v1509_v43  ;;  %vm6102_vm9 = vcmp.eq.f32.partialorder %v1470_v56, 8.507059e+37  ;;  %vm6180_vm6 = vmor %vm1481_vm2, %vm1482_vm14 }
 0x3e8   : > { %vm1436_vm10 = vweird.f32 %v5950_v12  ;;  %v1425_v10 = vand.u32 2147483647, %v5970_v4  ;;  %v2019_v35 = vmul.f32 %v6050_v15, %v2018_v46  ;;  %v1499_v52 = vsel %vm6097_vm11, %v5952_v31, %v1495_v59  ;;  %v6118_v56 = vpop.eup %4164  ;;  %vm6134_vm11 = vmor %vm1511_vm0, %vm1512_vm15 }
 0x3e9   : > { %v1465_v11 = vadd.f32 %v5990_v19, %v1464_v21  ;;  %v8658_v36 = vand.u32 2147483648, %v8584_v14  ;;  %v2031_v37 = vmul.f32 %v6059_v23, %v2030_v61  ;;  %4172 = vrsqrt.f32 %v8659_v32  ;;  %v6127_v21 = vpop.eup %4166 }
 0x3ea   : > { %vm6122_vm8 = vcmp.eq.f32.partialorder %v1485_v25, 8.507059e+37  ;;  %v1434_v59 = vmul.f32 %v6023_v60, %v1433_v7  ;;  %v1418_v31 = vsub.f32 1.0, %v1417_v16  ;;  %4174 = vrsqrt.f32 %v8662_v49 }
 0x3eb   : > { %v1168_v43 = vsel %vm1166_vm1, %v8658_v36, %v5985_v26  ;;  %v1480_v36 = vadd.f32 %v5999_v20, %v1479_v63  ;;  %vm1437_vm1 = vweird.f32 %v6023_v60  ;;  %v1427_v26 = vand.u32 2147483648, %v5970_v4  ;;  %v6141_v25 = vpop.eup %4168 }
 0x3ec   : > { %v2046_v16 = vmul.f32 %v5977_v53, %v2045_v41  ;;  %v2057_v61 = vsub.f32 1.5, %v2056_v5  ;;  %v1514_v7 = vsel %vm6134_vm11, %v5960_v17, %v1510_v30  ;;  %vm6155_vm0 = vcmp.eq.f32.partialorder %v1440_v13, 8.507059e+37  ;;  %v6162_v5 = vpop.eup %4170  ;;  %vm6217_vm2 = vmor %vm1436_vm10, %vm1437_vm1 }
 0x3ed   : > { %vm1421_vm15 = vweird.f32 %v5970_v4  ;;  %v6160_v53 = vmax.f32 %v1168_v43, 1e-10  ;;  %v1994_v17 = vmul.f32 %v6118_v56, %v8647_v34  ;;  %v2020_v41 = vmul.f32 0.5, %v2019_v35 }
 0x3ee   : > { %v6169_v3 = vsel %vm6068_vm13, %v6006_v0, %v1499_v52  ;;  %v1469_v13 = vsel %vm6151_vm4, %v5990_v19, %v1465_v11  ;;  %v2032_v30 = vmul.f32 0.5, %v2031_v37  ;;  %v1982_v43 = vmul.f32 %v6127_v21, %v8650_v29 }
 0x3ef   : > { %v1435_v62 = vadd.f32 %v6023_v60, %v1434_v59  ;;  %v1419_v0 = vmul.f32 %v6044_v55, %v1418_v31  ;;  %v1970_v35 = vmul.f32 %v6141_v25, %v8651_v1  ;;  %v6191_v37 = vsel %vm6082_vm5, %v6019_v44, %v1514_v7  ;;  %v6198_v52 = vpop.eup %4172 }
 0x3f0   : > { %v1484_v47 = vsel %vm6180_vm6, %v5999_v20, %v1480_v36  ;;  %v6196_v19 = vor.u32 1.1754944e-38, %v1427_v26  ;;  %v2047_v11 = vmul.f32 %v2046_v16, %v8630_v58  ;;  %v2058_v59 = vmul.f32 %v6008_v40, %v2057_v61  ;;  %v6205_v2 = vpop.eup %4174 }
 0x3f1   : > { %v1402_v31 = vmul.f32 %v6162_v5, %v6064_v38  ;;  %4176 = vrcp.f32 %v6160_v53  ;;  %v1995_v44 = vmul.f32 %v6118_v56, %v1994_v17  ;;  %v2021_v7 = vsub.f32 1.5, %v2020_v41 }
 0x3f2   : > { %v6211_v20 = vsel %vm6102_vm9, %v6048_v9, %v1469_v13  ;;  %vm1422_vm14 = vweird.f32 %v6044_v55  ;;  %v2033_v36 = vsub.f32 1.5, %v2032_v30  ;;  %v1983_v26 = vmul.f32 %v6127_v21, %v1982_v43 }
 0x3f3   : > { %v1439_v16 = vsel %vm6217_vm2, %v6023_v60, %v1435_v62  ;;  %v6227_v9 = vadd.f32 %v6044_v55, %v1419_v0  ;;  %vm2048_vm9 = vcmp.eq.f32.partialorder %v8630_v58, inf  ;;  %v1971_v12 = vmul.f32 %v6141_v25, %v1970_v35  ;;  %vm6253_vm10 = vmor %vm1421_vm15, %vm1422_vm14 }
 0x3f4   : > { %v1958_v28 = vmul.f32 %v6198_v52, %v8659_v32  ;;  %v6236_v61 = vsel %vm6122_vm8, %v6054_v33, %v1484_v47  ;;  %v2049_v24 = vsel %vm2048_vm9, %v8630_v58, %v2047_v11  ;;  %v2059_v17 = vmul.f32 %v2058_v59, %v8636_v22 }
 0x3f5   : > { %v1898_v60 = vmul.f32 %v6205_v2, %v8662_v49  ;;  %v1403_v41 = vsub.f32 1.0, %v1402_v31  ;;  %v1996_v13 = vmul.f32 0.5, %v1995_v44  ;;  %v2051_v30 = vand.u32 2147483648, %v8630_v58 }
 0x3f6   : > { %v2022_v43 = vmul.f32 %v6050_v15, %v2021_v7  ;;  %v6247_v14 = vsel %vm6155_vm0, %v6090_v27, %v1439_v16  ;;  %v2034_v62 = vmul.f32 %v6059_v23, %v2033_v36  ;;  %vm2050_vm13 = vcmp.eq.f32.partialorder %v8630_v58, 0.0 }
 0x3f7   : > { %v6257_v46 = vpop.eup %4176  ;;  %v1984_v15 = vmul.f32 0.5, %v1983_v26  ;;  %v1424_v27 = vsel %vm6253_vm10, %v6044_v55, %v6227_v9  ;;  %v2052_v63 = vsel %vm2050_vm13, %v2051_v30, %v2049_v24  ;;  %vm2060_vm5 = vcmp.eq.f32.partialorder %v8636_v22, inf }
 0x3f8   : > { %v1972_v0 = vmul.f32 0.5, %v1971_v12  ;;  %v1959_v35 = vmul.f32 %v6198_v52, %v1958_v28  ;;  %v2061_v47 = vsel %vm2060_vm5, %v8636_v22, %v2059_v17  ;;  %v1899_v11 = vmul.f32 %v6205_v2, %v1898_v60 }
 0x3f9   : > { %v1404_v23 = vmul.f32 %v6162_v5, %v1403_v41  ;;  %vm1406_vm12 = vweird.f32 %v6064_v38  ;;  %v1997_v58 = vsub.f32 1.5, %v1996_v13  ;;  %v2063_v59 = vand.u32 2147483648, %v8636_v22 }
 0x3fa   : > { %v2023_v31 = vmul.f32 %v2022_v43, %v8640_v51  ;;  %v1387_v44 = vmul.f32 %v6257_v46, %v6160_v53  ;;  %v6275_v7 = vmax.f32 %v2052_v63, 1e-10  ;;  %v1985_v40 = vsub.f32 1.5, %v1984_v15 }
 0x3fb   : > { %vm2062_vm8 = vcmp.eq.f32.partialorder %v8636_v22, 0.0  ;;  %vm1407_vm11 = vweird.f32 %v6162_v5  ;;  %v2035_v36 = vmul.f32 %v2034_v62, %v8642_v57  ;;  %v1973_v16 = vsub.f32 1.5, %v1972_v0 }
 0x3fc   : > { %v2064_v26 = vsel %vm2062_vm8, %v2063_v59, %v2061_v47  ;;  %v1960_v12 = vmul.f32 0.5, %v1959_v35  ;;  %vm2024_vm1 = vcmp.eq.f32.partialorder %v8640_v51, inf  ;;  %v1900_v28 = vmul.f32 0.5, %v1899_v11  ;;  %vm6297_vm0 = vmor %vm1406_vm12, %vm1407_vm11 }
 0x3fd   : > { %v6282_v24 = vadd.f32 %v6162_v5, %v1404_v23  ;;  %v1412_v17 = vand.u32 2147483648, %v6064_v38  ;;  %vm2036_vm4 = vcmp.eq.f32.partialorder %v8642_v57, inf  ;;  %v1998_v60 = vmul.f32 %v6118_v56, %v1997_v58 }
 0x3fe   : > { %v2025_v22 = vsel %vm2024_vm1, %v8640_v51, %v2023_v31  ;;  %v1388_v41 = vsub.f32 1.0, %v1387_v44  ;;  %4178 = vrcp.f32 %v6275_v7  ;;  %v1986_v13 = vmul.f32 %v6127_v21, %v1985_v40 }
 0x3ff   : > { %v6290_v30 = vmax.f32 %v2064_v26, 1e-10  ;;  %v2027_v43 = vand.u32 2147483648, %v8640_v51  ;;  %v2037_v56 = vsel %vm2036_vm4, %v8642_v57, %v2035_v36  ;;  %vm2026_vm15 = vcmp.eq.f32.partialorder %v8640_v51, 0.0 }
 0x400   : > { %v1974_v15 = vmul.f32 %v6141_v25, %v1973_v16  ;;  %v1961_v63 = vsub.f32 1.5, %v1960_v12  ;;  %v2039_v21 = vand.u32 2147483648, %v8642_v57  ;;  %v1901_v35 = vsub.f32 1.5, %v1900_v28 }
 0x401   : > { %v2028_v0 = vsel %vm2026_vm15, %v2027_v43, %v2025_v22  ;;  %v1410_v47 = vand.u32 2147483647, %v6064_v38  ;;  %vm2038_vm6 = vcmp.eq.f32.partialorder %v8642_v57, 0.0  ;;  %v1409_v11 = vsel %vm6297_vm0, %v6162_v5, %v6282_v24 }
 0x402   : > { %v6311_v23 = vor.u32 1.1754944e-38, %v1412_v17  ;;  %v1397_v51 = vand.u32 2147483648, %v6160_v53  ;;  %v2040_v58 = vsel %vm2038_vm6, %v2039_v21, %v2037_v56  ;;  %v1999_v25 = vmul.f32 %v1998_v60, %v8647_v34 }
 0x403   : > { %v1987_v59 = vmul.f32 %v1986_v13, %v8650_v29  ;;  %4180 = vrcp.f32 %v6290_v30  ;;  %v6317_v31 = vmax.f32 %v2028_v0, 1e-10  ;;  %v1975_v57 = vmul.f32 %v1974_v15, %v8651_v1 }
 0x404   : > { %v1962_v38 = vmul.f32 %v6198_v52, %v1961_v63  ;;  %v1389_v44 = vmul.f32 %v6257_v46, %v1388_v41  ;;  %v6322_v40 = vpop.eup %4178  ;;  %v1902_v36 = vmul.f32 %v6205_v2, %v1901_v35  ;;  %vm1391_vm2 = vweird.f32 %v6160_v53 }
 0x405   : > { %vm1392_vm14 = vweird.f32 %v6257_v46  ;;  %v1395_v26 = vand.u32 2147483647, %v6160_v53  ;;  %v6328_v16 = vmax.f32 %v2040_v58, 1e-10  ;;  %vm2000_vm9 = vcmp.eq.f32.partialorder %v8647_v34, inf }
 0x406   : > { %v2003_v12 = vand.u32 2147483648, %v8647_v34  ;;  %vm1988_vm13 = vcmp.eq.f32.partialorder %v8650_v29, inf  ;;  %vm6333_vm5 = vcmp.eq.f32.partialorder %v1410_v47, 8.507059e+37  ;;  %v2001_v2 = vsel %vm2000_vm9, %v8647_v34, %v1999_v25 }
 0x407   : > { %v1989_v28 = vsel %vm1988_vm13, %v8650_v29, %v1987_v59  ;;  %v1991_v17 = vand.u32 2147483648, %v8650_v29  ;;  %vm1976_vm12 = vcmp.eq.f32.partialorder %v8651_v1, inf  ;;  %4182 = vrcp.f32 %v6317_v31 }
 0x408   : > { %v1977_v60 = vsel %vm1976_vm12, %v8651_v1, %v1975_v57  ;;  %v1963_v22 = vmul.f32 %v1962_v38, %v8659_v32  ;;  %v2292_v41 = vmul.f32 %v6322_v40, %v6275_v7  ;;  %vm6348_vm8 = vcmp.eq.f32.partialorder %v1425_v10, 8.507059e+37 }
 0x409   : > { %v6352_v43 = vpop.eup %4180  ;;  %vm2002_vm11 = vcmp.eq.f32.partialorder %v8647_v34, 0.0  ;;  %vm1990_vm1 = vcmp.eq.f32.partialorder %v8650_v29, 0.0  ;;  %v1979_v56 = vand.u32 2147483648, %v8651_v1  ;;  %v1903_v15 = vmul.f32 %v1902_v36, %v8662_v49  ;;  %v6358_v63 = vpop.xlane.xlu2 %2393 }
 0x40a   : > { %4184 = vrcp.f32 %v6328_v16  ;;  %v2004_v21 = vsel %vm2002_vm11, %v2003_v12, %v2001_v2  ;;  %v1992_v4 = vsel %vm1990_vm1, %v1991_v17, %v1989_v28  ;;  %vm1978_vm4 = vcmp.eq.f32.partialorder %v8651_v1, 0.0  ;;  %vm6397_vm11 = vmor %vm1391_vm2, %vm1392_vm14 }
 0x40b   : > { %v1980_v10 = vsel %vm1978_vm4, %v1979_v56, %v1977_v60  ;;  %vm1964_vm15 = vcmp.eq.f32.partialorder %v8659_v32, inf  ;;  %vm1904_vm6 = vcmp.eq.f32.partialorder %v8662_v49, inf  ;;  %vm2414_vm9 = vcmp.le.f32.partialorder %v5480_v8, %v6358_v63 }
 0x40c   : > { %v1965_v29 = vsel %vm1964_vm15, %v8659_v32, %v1963_v22  ;;  %v2430_v34 = vsel %vm2414_vm9, %v4563_v39, 8  ;;  %v2293_v0 = vsub.f32 1.0, %v2292_v41  ;;  %v2307_v35 = vmul.f32 %v6352_v43, %v6290_v30 }
 0x40d   : > { %v6370_v47 = vmax.f32 %v2004_v21, 1e-10  ;;  %v1967_v1 = vand.u32 2147483648, %v8659_v32  ;;  %v1905_v58 = vsel %vm1904_vm6, %v8662_v49, %v1903_v15  ;;  %v6375_v25 = vsel %vm752_vm3, %v2430_v34, 2147483647  ;;  %v6377_v59 = vpop.eup %4182 }
 0x40e   : > { %v6379_v8 = vmax.f32 %v1992_v4, 1e-10  ;;  %vm1966_vm13 = vcmp.eq.f32.partialorder %v8659_v32, 0.0  ;;  %v1907_v57 = vand.u32 2147483648, %v8662_v49  ;;  %v2630_v38 = vshra.s32 %v6375_v25, 16 }
 0x40f   : > { %v6384_v36 = vmax.f32 %v1980_v10, 1e-10  ;;  %v1968_v12 = vsel %vm1966_vm13, %v1967_v1, %v1965_v29  ;;  %vm1906_vm12 = vcmp.eq.f32.partialorder %v8662_v49, 0.0  ;;  %v1390_v2 = vadd.f32 %v6257_v46, %v1389_v44 }
 0x410   : > { %v6388_v28 = vpop.eup %4184  ;;  %v1908_v17 = vsel %vm1906_vm12, %v1907_v57, %v1905_v58  ;;  %v6390_v60 = vcvt.s32.f32 %v2630_v38  ;;  %v2294_v22 = vmul.f32 %v6322_v40, %v2293_v0  ;;  %v2308_v41 = vsub.f32 1.0, %v2307_v35 }
 0x411   : > { %4186 = vrcp.f32 %v6370_v47  ;;  %v2262_v49 = vmul.f32 %v6377_v59, %v6317_v31  ;;  %v6412_v44 = vsel %vm6333_vm5, %v6311_v23, %v1409_v11  ;;  %v6422_v56 = vsel %vm6348_vm8, %v6196_v19, %v1424_v27  ;;  %v6437_v9 = vpop.xlane.xlu2 %2384 }
 0x412   : > { %8683 = vst [vmem:[#allocation38_spill] sm:$0xff] %v6412_v44  ;;  %4188 = vrcp.f32 %v6379_v8  ;;  %v6425_v62 = vmax.f32 %v1968_v12, 1e-10  ;;  %2633 = vmin.xlane.f32.xlu0 %v6390_v60  ;;  %v1398_v5 = vor.u32 1.1754944e-38, %v1397_v51  ;;  %v6432_v33 = vmul.f32 %v6035_v6, %v5942_v54 }
 0x413   : > { %8684 = vst [vmem:[#allocation41_spill] sm:$0xff] %v6422_v56  ;;  %4190 = vrcp.f32 %v6384_v36  ;;  %v6435_v55 = vmax.f32 %v1908_v17, 1e-10  ;;  %v1394_v19 = vsel %vm6397_vm11, %v6257_v46, %v1390_v2  ;;  %vm6444_vm10 = vcmp.eq.f32.partialorder %v1395_v26, 8.507059e+37 }
 0x414   : > { %8685 = vst [vmem:[#allocation48_spill] sm:$0xff] %v6432_v33  ;;  %v2295_v24 = vadd.f32 %v6322_v40, %v2294_v22  ;;  %vm2297_vm0 = vweird.f32 %v6322_v40  ;;  %v2300_v11 = vand.u32 2147483647, %v6275_v7  ;;  %v2309_v23 = vmul.f32 %v6352_v43, %v2308_v41  ;;  %v6486_v35 = vpop.xlane.xlu0 %2396 }
 0x415   : > { %8686 = vst [vmem:[#allocation49_spill] sm:$0xff] %v6435_v55  ;;  %vm2411_vm2 = vcmp.le.f32.partialorder %v5529_v48, %v6437_v9  ;;  %v2302_v51 = vand.u32 2147483648, %v6275_v7  ;;  %v2263_v46 = vsub.f32 1.0, %v2262_v49  ;;  %v2277_v53 = vmul.f32 %v6388_v28, %v6328_v16 }
 0x416   : > { %4192 = vrcp.f32 %v6425_v62  ;;  %v2427_v26 = vsel %vm2411_vm2, %v4563_v39, 8  ;;  %vm2296_vm14 = vweird.f32 %v6275_v7  ;;  %v2315_v52 = vand.u32 2147483647, %v6290_v30 }
 0x417   : > { %v6461_v13 = vpop.eup %4186  ;;  %4194 = vrcp.f32 %v6435_v55  ;;  %v6465_v48 = vsel %vm752_vm3, %v2427_v26, 2147483647  ;;  %vm6467_vm5 = vmor %vm2296_vm14, %vm2297_vm0  ;;  %v2317_v21 = vand.u32 2147483648, %v6290_v30  ;;  %v6474_v4 = vsel %vm6444_vm10, %v1398_v5, %v1394_v19 }
 0x418   : > { %8691 = vst [vmem:[#allocation50_spill] sm:$0xff] %v6474_v4  ;;  %v6476_v7 = vpop.eup %4188  ;;  %v2585_v10 = vshra.s32 %v6465_v48, 16  ;;  %v2299_v29 = vsel %vm6467_vm5, %v6322_v40, %v2295_v24  ;;  %v2310_v34 = vadd.f32 %v6352_v43, %v2309_v23  ;;  %vm2312_vm8 = vweird.f32 %v6352_v43 }
 0x419   : > { %v6484_v0 = vpop.eup %4190  ;;  %vm2301_vm1 = vcmp.eq.f32.partialorder %v2300_v11, 8.507059e+37  ;;  %v2303_v1 = vor.u32 1.1754944e-38, %v2302_v51  ;;  %v2264_v58 = vmul.f32 %v6377_v59, %v2263_v46  ;;  %v2278_v57 = vsub.f32 1.0, %v2277_v53 }
 0x41a   : > { %vm2311_vm4 = vweird.f32 %v6290_v30  ;;  %vm6490_vm15 = vcmp.eq.f32.partialorder %v2315_v52, 8.507059e+37  ;;  %vm2266_vm6 = vweird.f32 %v6317_v31  ;;  %v2232_v40 = vmul.f32 %v6461_v13, %v6370_v47 }
 0x41b   : > { %v6497_v12 = vcvt.s32.f32 %v2585_v10  ;;  %vm2415_vm9 = vcmp.le.f32.partialorder %v5558_v18, %v6486_v35  ;;  %v6501_v2 = vsel %vm2301_vm1, %v2303_v1, %v2299_v29  ;;  %vm6503_vm13 = vmor %vm2311_vm4, %vm2312_vm8  ;;  %v2318_v30 = vor.u32 1.1754944e-38, %v2317_v21  ;;  %v6554_v10 = vpop.xlane.xlu2 %2381  ;;  %v6556_v29 = vpop.xlane.xlu1 %2399 }
 0x41c   : > { %v6507_v22 = vpop.eup %4192  ;;  %v2431_v41 = vsel %vm2415_vm9, %v4563_v39, 8  ;;  %v2314_v32 = vsel %vm6503_vm13, %v6352_v43, %v2310_v34  ;;  %vm2267_vm12 = vweird.f32 %v6377_v59  ;;  %v2270_v49 = vand.u32 2147483647, %v6317_v31 }
 0x41d   : > { %v6515_v18 = vpop.eup %4194  ;;  %2588 = vmin.xlane.f32.xlu0 %v6497_v12  ;;  %v6519_v5 = vsel %vm752_vm3, %v2431_v41, 2147483647  ;;  %v2265_v19 = vadd.f32 %v6377_v59, %v2264_v58  ;;  %v2272_v27 = vand.u32 2147483648, %v6317_v31  ;;  %v2279_v24 = vmul.f32 %v6388_v28, %v2278_v57  ;;  %vm6545_vm10 = vmor %vm2266_vm6, %vm2267_vm12 }
 0x41e   : > { %8696 = vst [vmem:[#allocation72_spill] sm:$0xff] %v6515_v18  ;;  %v2645_v11 = vshra.s32 %v6519_v5, 16  ;;  %v6527_v43 = vadd.f32 %v6501_v2, %v6169_v3  ;;  %v2233_v23 = vsub.f32 1.0, %v2232_v40  ;;  %v2217_v51 = vmul.f32 %v6476_v7, %v6379_v8 }
 0x41f   : > { %4196 = vrsqrt.f32 %v6358_v63  ;;  %v6534_v46 = vsel %vm6490_vm15, %v2318_v30, %v2314_v32  ;;  %vm2281_vm11 = vweird.f32 %v6328_v16  ;;  %v2285_v53 = vand.u32 2147483647, %v6328_v16 }
 0x420   : > { %4198 = vrsqrt.f32 %v6486_v35  ;;  %v6539_v26 = vcvt.s32.f32 %v2645_v11  ;;  %vm6549_vm0 = vcmp.eq.f32.partialorder %v2270_v49, 8.507059e+37  ;;  %v2287_v21 = vand.u32 2147483648, %v6328_v16  ;;  %v1643_v16 = vpop.xlane.xlu0 %1642 }
 0x421   : > { %v2269_v34 = vsel %vm6545_vm10, %v6377_v59, %v2265_v19  ;;  %v2273_v1 = vor.u32 1.1754944e-38, %v2272_v27  ;;  %v2280_v31 = vadd.f32 %v6388_v28, %v2279_v24  ;;  %vm2282_vm2 = vweird.f32 %v6388_v28 }
 0x422   : > { %2648 = vmin.xlane.f32.xlu1 %v6539_v26  ;;  %v6566_v58 = vadd.f32 %v6534_v46, %v6191_v37  ;;  %v2234_v57 = vmul.f32 %v6461_v13, %v2233_v23  ;;  %vm2236_vm14 = vweird.f32 %v6370_v47  ;;  %v2218_v38 = vsub.f32 1.0, %v2217_v51  ;;  %vm6587_vm15 = vmor %vm2281_vm11, %vm2282_vm2 }
 0x423   : > { %v1645_v40 = vcvt.f32.s32 %v5645_v42  ;;  %vm6571_vm5 = vcmp.eq.f32.partialorder %v2285_v53, 8.507059e+37  ;;  %vm2237_vm8 = vweird.f32 %v6461_v13  ;;  %v2240_v17 = vand.u32 2147483647, %v6370_v47 }
 0x424   : > { %vm2410_vm1 = vcmp.le.f32.partialorder %v5607_v50, %v6554_v10  ;;  %vm2416_vm4 = vcmp.le.f32.partialorder %v5613_v45, %v6556_v29  ;;  %v6583_v30 = vsel %vm6549_vm0, %v2273_v1, %v2269_v34  ;;  %v2288_v41 = vor.u32 1.1754944e-38, %v2287_v21  ;;  %vm6628_vm6 = vmor %vm2236_vm14, %vm2237_vm8 }
 0x425   : > { %v6591_v32 = vpop.eup %4196  ;;  %v2426_v49 = vsel %vm2410_vm1, %v4563_v39, 8  ;;  %v2432_v50 = vsel %vm2416_vm4, %v4563_v39, 8  ;;  %v2284_v45 = vsel %vm6587_vm15, %v6388_v28, %v2280_v31  ;;  %v2242_v19 = vand.u32 2147483648, %v6370_v47 }
 0x426   : > { %v6599_v27 = vpop.eup %4198  ;;  %v6602_v24 = vsel %vm752_vm3, %v2426_v49, 2147483647  ;;  %v6605_v11 = vsel %vm752_vm3, %v2432_v50, 2147483647  ;;  %v2235_v23 = vadd.f32 %v6461_v13, %v2234_v57  ;;  %v2219_v51 = vmul.f32 %v6476_v7, %v2218_v38  ;;  %v6642_v50 = vpop.xlane.xlu2 %2366 }
 0x427   : > { %v1646_v53 = vshll.u32 %v1645_v40, 16  ;;  %v1644_v52 = vcvt.f32.s32 %v1643_v16  ;;  %v2570_v15 = vshra.s32 %v6602_v24, 16  ;;  %v2202_v28 = vmul.f32 %v6484_v0, %v6384_v36  ;;  %8710 = vst [vmem:[#allocation76_spill] sm:$0xff] %v6642_v50 }
 0x428   : > { %v2830_v21 = vmul.f32 %v6591_v32, %v6358_v63  ;;  %4200 = vrsqrt.f32 %v6437_v9  ;;  %v2660_v34 = vshra.s32 %v6605_v11, 16  ;;  %v6618_v1 = vsel %vm6571_vm5, %v2288_v41, %v2284_v45 }
 0x429   : > { %v2842_v31 = vmul.f32 %v6599_v27, %v6486_v35  ;;  %v6622_v57 = vadd.s32 %v1646_v53, %v1644_v52  ;;  %vm2222_vm9 = vweird.f32 %v6476_v7  ;;  %v2225_v40 = vand.u32 2147483647, %v6379_v8 }
 0x42a   : > { %v6634_v59 = vcvt.s32.f32 %v2570_v15  ;;  %v6636_v42 = vcvt.s32.f32 %v2660_v34  ;;  %v2239_v41 = vsel %vm6628_vm6, %v6461_v13, %v2235_v23  ;;  %v2220_v49 = vadd.f32 %v6476_v7, %v2219_v51  ;;  %v8711_v51 = vld [vmem:[#allocation45_spill] sm:$0xff] }
 0x42b   : > { %8705 = vst [vmem:[#allocation73_spill] sm:$0xff] %v6622_v57  ;;  %vm2321_vm13 = vcmp.eq.s32.totalorder %v4563_v39, %v6622_v57  ;;  %v2243_v47 = vor.u32 1.1754944e-38, %v2242_v19  ;;  %v2203_v45 = vsub.f32 1.0, %v2202_v28  ;;  %v2227_v16 = vand.u32 2147483648, %v6379_v8 }
 0x42c   : > { %8708 = vst [vmem:[#allocation74_spill] sm:$0xff] %v6634_v59  ;;  %v2831_v53 = vmul.f32 %v6591_v32, %v2830_v21  ;;  %2573 = vmin.xlane.f32.xlu0 %v6634_v59  ;;  %2663 = vmin.xlane.f32.xlu2 %v6636_v42  ;;  %v6652_v13 = vadd.f32 %v6618_v1, %v6236_v61  ;;  %vm2241_vm12 = vcmp.eq.f32.partialorder %v2240_v17, 8.507059e+37  ;;  %vm2221_vm11 = vweird.f32 %v6379_v8  ;;  %v8717_v21 = vld [vmem:[#allocation13_spill] sm:$0xff] }
 0x42d   : > { %8709 = vst [vmem:[#allocation75_spill] sm:$0xff] %v6636_v42  ;;  %v2843_v23 = vmul.f32 %v6599_v27, %v2842_v31  ;;  %v6660_v19 = vsel %vm2321_vm13, inf, %v8711_v51  ;;  %v6662_v52 = vsel %vm2241_vm12, %v2243_v47, %v2239_v41  ;;  %vm6666_vm10 = vmor %vm2221_vm11, %vm2222_vm9  ;;  %vm6670_vm0 = vcmp.eq.f32.partialorder %v2225_v40, 8.507059e+37  ;;  %v6684_v31 = vpop.xlane.xlu1 %2390  ;;  %v6713_v54 = vpop.xlane.xlu0 %2387 }
 0x42e   : > { %8712 = vst [vmem:[#allocation45_spill] sm:$0xff] %v6660_v19  ;;  %v6674_v8 = vpop.eup %4200  ;;  %4202 = vrsqrt.f32 %v6556_v29  ;;  %v2353_v28 = vsel %vm752_vm3, %v6660_v19, inf  ;;  %vm2405_vm2 = vcmp.le.f32.partialorder %v8717_v21, %v6642_v50  ;;  %v2224_v34 = vsel %vm6666_vm10, %v6476_v7, %v2220_v49 }
 0x42f   : > { %2354 = vmin.xlane.f32.xlu1 %v2353_v28  ;;  %v2421_v38 = vsel %vm2405_vm2, %v4563_v39, 8  ;;  %v2204_v40 = vmul.f32 %v6484_v0, %v2203_v45  ;;  %v2228_v41 = vor.u32 1.1754944e-38, %v2227_v16  ;;  %v2187_v47 = vmul.f32 %v6507_v22, %v6425_v62 }
 0x430   : > { %v2832_v51 = vmul.f32 0.5, %v2831_v53  ;;  %4204 = vrsqrt.f32 %v6554_v10  ;;  %v6693_v21 = vadd.f32 %v6662_v52, %v6247_v14  ;;  %v2210_v7 = vand.u32 2147483647, %v6384_v36  ;;  %v8720_v53 = vld [vmem:[#allocation18_spill] sm:$0xff] }
 0x431   : > { %v2794_v49 = vmul.f32 %v6674_v8, %v6437_v9  ;;  %v2844_v15 = vmul.f32 0.5, %v2843_v23  ;;  %v6699_v28 = vsel %vm752_vm3, %v2421_v38, 2147483647  ;;  %v6703_v45 = vsel %vm6670_vm0, %v2228_v41, %v2224_v34  ;;  %v8721_v41 = vld [vmem:[#allocation62_spill] sm:$0xff] }
 0x432   : > { %8718 = vst [vmem:[#allocation13_spill] sm:$0xff] %v6699_v28  ;;  %v2495_v16 = vshra.s32 %v6699_v28, 16  ;;  %vm2413_vm14 = vcmp.le.f32.partialorder %v8720_v53, %v6684_v31  ;;  %v6710_v57 = vadd.f32 %v6583_v30, %v6211_v20  ;;  %v2212_v50 = vand.u32 2147483648, %v6384_v36 }
 0x433   : > { %8719 = vst [vmem:[#allocation77_spill] sm:$0xff] %v6703_v45  ;;  %v2429_v23 = vsel %vm2413_vm14, %v4563_v39, 8  ;;  %v2205_v38 = vadd.f32 %v6484_v0, %v2204_v40  ;;  %vm2207_vm5 = vweird.f32 %v6484_v0  ;;  %v2188_v17 = vsub.f32 1.0, %v2187_v47 }
 0x434   : > { %v6718_v34 = vpop.eup %4202  ;;  %v1660_v6 = vcvt.f32.s32 %v8721_v41  ;;  %v2833_v53 = vsub.f32 1.5, %v2832_v51  ;;  %vm2206_vm8 = vweird.f32 %v6384_v36  ;;  %vm6722_vm1 = vcmp.eq.f32.partialorder %v2210_v7, 8.507059e+37  ;;  %v8726_v51 = vld [vmem:[#allocation24_spill] sm:$0xff] }
 0x435   : > { %v2795_v55 = vmul.f32 %v6674_v8, %v2794_v49  ;;  %v2845_v33 = vsub.f32 1.5, %v2844_v15  ;;  %4206 = vrsqrt.f32 %v6684_v31  ;;  %v6728_v40 = vcvt.s32.f32 %v2495_v16  ;;  %vm6737_vm15 = vmor %vm2206_vm8, %vm2207_vm5 }
 0x436   : > { %v6730_v19 = vpop.eup %4204  ;;  %v6733_v47 = vsel %vm752_vm3, %v2429_v23, 2147483647  ;;  %vm2412_vm4 = vcmp.le.f32.partialorder %v8726_v51, %v6713_v54  ;;  %v2213_v7 = vor.u32 1.1754944e-38, %v2212_v50  ;;  %v6743_v49 = vadd.f32 %v6703_v45, %v6422_v56  ;;  %v1658_v45 = vpop.xlane.xlu1 %1657 }
 0x437   : > { %8724 = vst [vmem:[#allocation18_spill] sm:$0xff] %v6728_v40  ;;  %v2854_v15 = vmul.f32 %v6718_v34, %v6556_v29  ;;  %2498 = vmin.xlane.f32.xlu0 %v6728_v40  ;;  %v2209_v16 = vsel %vm6737_vm15, %v6484_v0, %v2205_v38  ;;  %v2189_v23 = vmul.f32 %v6507_v22, %v2188_v17  ;;  %v2195_v41 = vand.u32 2147483647, %v6425_v62 }
 0x438   : > { %8725 = vst [vmem:[#allocation62_spill] sm:$0xff] %v6733_v47  ;;  %v1661_v51 = vshll.u32 %v1660_v6, 16  ;;  %v2834_v50 = vmul.f32 %v6591_v32, %v2833_v53  ;;  %v2615_v42 = vshra.s32 %v6733_v47, 16  ;;  %v2428_v56 = vsel %vm2412_vm4, %v4563_v39, 8 }
 0x439   : > { %8729 = vst [vmem:[#allocation24_spill] sm:$0xff] %v6743_v49  ;;  %v2796_v59 = vmul.f32 0.5, %v2795_v55  ;;  %v2846_v49 = vmul.f32 %v6599_v27, %v2845_v33  ;;  %v2782_v40 = vmul.f32 %v6730_v19, %v6554_v10  ;;  %v1659_v36 = vcvt.f32.s32 %v1658_v45  ;;  %v6774_v27 = vpop.xlane.xlu0 %2372 }
 0x43a   : > { %v6759_v0 = vcvt.s32.f32 %v2615_v42  ;;  %v6762_v38 = vsel %vm752_vm3, %v2428_v56, 2147483647  ;;  %v6766_v6 = vsel %vm6722_vm1, %v2213_v7, %v2209_v16  ;;  %vm2191_vm6 = vweird.f32 %v6425_v62 }
 0x43b   : > { %8731 = vst [vmem:[#allocation79_spill] sm:$0xff] %v6762_v38  ;;  %v6769_v32 = vpop.eup %4206  ;;  %v2855_v55 = vmul.f32 %v6718_v34, %v2854_v15  ;;  %v6772_v33 = vadd.s32 %v1661_v51, %v1659_v36  ;;  %vm6776_vm9 = vcmp.eq.f32.partialorder %v2195_v41, 8.507059e+37  ;;  %v2197_v56 = vand.u32 2147483648, %v6425_v62  ;;  %v8737_v51 = vld [vmem:[#allocation26_spill] sm:$0xff] }
 0x43c   : > { %8730 = vst [vmem:[#allocation78_spill] sm:$0xff] %v6759_v0  ;;  %v2835_v18 = vmul.f32 %v2834_v50, %v6358_v63  ;;  %2618 = vmin.xlane.f32.xlu2 %v6759_v0  ;;  %v2600_v45 = vshra.s32 %v6762_v38, 16  ;;  %v2190_v17 = vadd.f32 %v6507_v22, %v2189_v23  ;;  %vm2192_vm12 = vweird.f32 %v6507_v22  ;;  %v8738_v23 = vld [vmem:[#allocation47_spill] sm:$0xff] }
 0x43d   : > { %8732 = vst [vmem:[#allocation80_spill] sm:$0xff] %v6766_v6  ;;  %v2797_v53 = vsub.f32 1.5, %v2796_v59  ;;  %v2847_v7 = vmul.f32 %v2846_v49, %v6486_v35  ;;  %v2783_v15 = vmul.f32 %v6730_v19, %v2782_v40  ;;  %4208 = vrsqrt.f32 %v6713_v54  ;;  %vm6806_vm2 = vmor %vm2191_vm6, %vm2192_vm12 }
 0x43e   : > { %8733 = vst [vmem:[#allocation81_spill] sm:$0xff] %v6772_v33  ;;  %v2818_v16 = vmul.f32 %v6769_v32, %v6684_v31  ;;  %v6791_v41 = vcvt.s32.f32 %v2600_v45  ;;  %vm2322_vm11 = vcmp.eq.s32.totalorder %v4563_v39, %v6772_v33  ;;  %vm2407_vm10 = vcmp.le.f32.partialorder %v8737_v51, %v6774_v27 }
 0x43f   : > { %vm2836_vm0 = vcmp.eq.f32.partialorder %v6358_v63, inf  ;;  %v2856_v59 = vmul.f32 0.5, %v2855_v55  ;;  %v6802_v40 = vsel %vm2322_vm11, inf, %v8738_v23  ;;  %v2198_v50 = vor.u32 1.1754944e-38, %v2197_v56 }
 0x440   : > { %8736 = vst [vmem:[#allocation82_spill] sm:$0xff] %v6791_v41  ;;  %v2837_v36 = vsel %vm2836_vm0, %v6358_v63, %v2835_v18  ;;  %vm2848_vm14 = vcmp.eq.f32.partialorder %v6486_v35, inf  ;;  %2603 = vmin.xlane.f32.xlu1 %v6791_v41  ;;  %v2423_v55 = vsel %vm2407_vm10, %v4563_v39, 8  ;;  %v2194_v45 = vsel %vm6806_vm2, %v6507_v22, %v2190_v17 }
 0x441   : > { %8739 = vst [vmem:[#allocation26_spill] sm:$0xff] %v6802_v40  ;;  %v2798_v51 = vmul.f32 %v6674_v8, %v2797_v53  ;;  %v2784_v62 = vmul.f32 0.5, %v2783_v15  ;;  %v2356_v23 = vsel %vm752_vm3, %v6802_v40, inf  ;;  %v6821_v56 = vsel %vm752_vm3, %v2423_v55, 2147483647  ;;  %v6842_v55 = vpop.xlane.xlu0 %2369 }
 0x442   : > { %8742 = vst [vmem:[#allocation47_spill] sm:$0xff] %v6821_v56  ;;  %v2839_v18 = vand.u32 2147483648, %v6358_v63  ;;  %v2849_v33 = vsel %vm2848_vm14, %v6486_v35, %v2847_v7  ;;  %v2819_v41 = vmul.f32 %v6769_v32, %v2818_v16  ;;  %v2525_v0 = vshra.s32 %v6821_v56, 16 }
 0x443   : > { %v6827_v47 = vpop.eup %4208  ;;  %vm2838_vm5 = vcmp.eq.f32.partialorder %v6358_v63, 0.0  ;;  %v2851_v22 = vand.u32 2147483648, %v6486_v35  ;;  %v2857_v8 = vsub.f32 1.5, %v2856_v59  ;;  %v6833_v17 = vsel %vm6776_vm9, %v2198_v50, %v2194_v45  ;;  %v6840_v63 = vpop.xlane.xlu1 %2378  ;;  %8745 = vst [vmem:[#allocation85_spill] sm:$0xff] %v6842_v55  ;;  %v8748_v45 = vld [vmem:[#allocation29_spill] sm:$0xff] }
 0x444   : > { %8743 = vst [vmem:[#allocation83_spill] sm:$0xff] %v6833_v17  ;;  %v2840_v53 = vsel %vm2838_vm5, %v2839_v18, %v2837_v36  ;;  %vm2850_vm8 = vcmp.eq.f32.partialorder %v6486_v35, 0.0  ;;  %4210 = vrsqrt.f32 %v6774_v27  ;;  %2357 = vmin.xlane.f32.xlu2 %v2356_v23  ;;  %v6837_v7 = vcvt.s32.f32 %v2525_v0 }
 0x445   : > { %v2799_v15 = vmul.f32 %v2798_v51, %v6437_v9  ;;  %v2852_v16 = vsel %vm2850_vm8, %v2851_v22, %v2849_v33  ;;  %v2785_v49 = vsub.f32 1.5, %v2784_v62  ;;  %v6846_v42 = vadd.f32 %v6766_v6, %v6412_v44  ;;  %v8749_v51 = vld [vmem:[#allocation30_spill] sm:$0xff] }
 0x446   : > { %8744 = vst [vmem:[#allocation84_spill] sm:$0xff] %v6837_v7  ;;  %v2820_v59 = vmul.f32 0.5, %v2819_v41  ;;  %v2806_v35 = vmul.f32 %v6827_v47, %v6713_v54  ;;  %4212 = vrsqrt.f32 %v6840_v63  ;;  %v6853_v0 = vadd.f32 %v6833_v17, %v6474_v4 }
 0x447   : > { %8746 = vst [vmem:[#allocation86_spill] sm:$0xff] %v6846_v42  ;;  %v6855_v33 = vmax.f32 %v2840_v53, 1e-10  ;;  %vm2800_vm1 = vcmp.eq.f32.partialorder %v6437_v9, inf  ;;  %vm2802_vm4 = vcmp.eq.f32.partialorder %v6437_v9, 0.0  ;;  %v2858_v50 = vmul.f32 %v6718_v34, %v2857_v8 }
 0x448   : > { %8747 = vst [vmem:[#allocation87_spill] sm:$0xff] %v6853_v0  ;;  %v2803_v36 = vand.u32 2147483648, %v6437_v9  ;;  %v6861_v41 = vmax.f32 %v2852_v16, 1e-10  ;;  %2528 = vmin.xlane.f32.xlu1 %v6837_v7  ;;  %vm2409_vm15 = vcmp.le.f32.partialorder %v8748_v45, %v6840_v63  ;;  %vm2406_vm6 = vcmp.le.f32.partialorder %v8749_v51, %v6842_v55 }
 0x449   : > { %v2801_v62 = vsel %vm2800_vm1, %v6437_v9, %v2799_v15  ;;  %v2786_v23 = vmul.f32 %v6730_v19, %v2785_v49  ;;  %v2425_v18 = vsel %vm2409_vm15, %v4563_v39, 8  ;;  %v2422_v34 = vsel %vm2406_vm6, %v4563_v39, 8 }
 0x44a   : > { %v6872_v22 = vpop.eup %4210  ;;  %v2821_v8 = vsub.f32 1.5, %v2820_v59  ;;  %v2807_v53 = vmul.f32 %v6827_v47, %v2806_v35  ;;  %v6876_v16 = vsel %vm752_vm3, %v2425_v18, 2147483647  ;;  %v6879_v45 = vsel %vm752_vm3, %v2422_v34, 2147483647 }
 0x44b   : > { %8750 = vst [vmem:[#allocation29_spill] sm:$0xff] %v6876_v16  ;;  %4214 = vrcp.f32 %v6855_v33  ;;  %v2859_v19 = vmul.f32 %v2858_v50, %v6556_v29  ;;  %v2555_v49 = vshra.s32 %v6876_v16, 16  ;;  %v2804_v59 = vsel %vm2802_vm4, %v2803_v36, %v2801_v62  ;;  %v6899_v17 = vpop.xlane.xlu1 %2375 }
 0x44c   : > { %8751 = vst [vmem:[#allocation30_spill] sm:$0xff] %v6879_v45  ;;  %v6885_v51 = vpop.eup %4212  ;;  %4216 = vrcp.f32 %v6861_v41  ;;  %vm2788_vm9 = vcmp.eq.f32.partialorder %v6554_v10, inf  ;;  %v2510_v35 = vshra.s32 %v6879_v45, 16  ;;  %v2787_v18 = vmul.f32 %v2786_v23, %v6554_v10 }
 0x44d   : > { %v2746_v34 = vmul.f32 %v6872_v22, %v6774_v27  ;;  %v2770_v50 = vmul.f32 %v6885_v51, %v6840_v63  ;;  %v6897_v15 = vcvt.s32.f32 %v2555_v49  ;;  %vm2860_vm12 = vcmp.eq.f32.partialorder %v6556_v29, inf }
 0x44e   : > { %v2822_v9 = vmul.f32 %v6769_v32, %v2821_v8  ;;  %v2808_v36 = vmul.f32 0.5, %v2807_v53  ;;  %v2629_v62 = vand.u32 65535, %v6375_v25  ;;  %v6904_v4 = vmax.f32 %v2804_v59, 1e-10  ;;  %v6923_v53 = vpop.xlane.xlu0 %2360 }
 0x44f   : > { %8752 = vst [vmem:[#allocation88_spill] sm:$0xff] %v6897_v15  ;;  %v2861_v23 = vsel %vm2860_vm12, %v6556_v29, %v2859_v19  ;;  %v2771_v45 = vmul.f32 %v6885_v51, %v2770_v50  ;;  %2558 = vmin.xlane.f32.xlu2 %v6897_v15  ;;  %v6909_v16 = vcvt.s32.f32 %v2510_v35  ;;  %vm2790_vm10 = vcmp.eq.f32.partialorder %v6554_v10, 0.0  ;;  %v8754_v19 = vld [vmem:[#allocation40_spill] sm:$0xff] }
 0x450   : > { %v2791_v49 = vand.u32 2147483648, %v6554_v10  ;;  %v2863_v7 = vand.u32 2147483648, %v6556_v29  ;;  %4218 = vrsqrt.f32 %v6899_v17  ;;  %v2789_v25 = vsel %vm2788_vm9, %v6554_v10, %v2787_v18 }
 0x451   : > { %8753 = vst [vmem:[#allocation89_spill] sm:$0xff] %v6909_v16  ;;  %v6915_v32 = vpop.eup %4214  ;;  %vm2862_vm0 = vcmp.eq.f32.partialorder %v6556_v29, 0.0  ;;  %v2747_v8 = vmul.f32 %v6872_v22, %v2746_v34  ;;  %2513 = vmin.xlane.f32.xlu1 %v6909_v16  ;;  %vm2408_vm2 = vcmp.le.f32.partialorder %v8754_v19, %v6899_v17  ;;  %v2823_v50 = vmul.f32 %v2822_v9, %v6684_v31  ;;  %v8756_v19 = vld [vmem:[#allocation34_spill] sm:$0xff] }
 0x452   : > { %v6927_v59 = vpop.eup %4216  ;;  %v2864_v35 = vsel %vm2862_vm0, %v2863_v7, %v2861_v23  ;;  %v2809_v15 = vsub.f32 1.5, %v2808_v36  ;;  %v2424_v6 = vsel %vm2408_vm2, %v4563_v39, 8  ;;  %4220 = vrcp.f32 %v6904_v4 }
 0x453   : > { %v2772_v18 = vmul.f32 0.5, %v2771_v45  ;;  %v6933_v34 = vcvt.s32.f32 %v2629_v62  ;;  %vm2824_vm14 = vcmp.eq.f32.partialorder %v6684_v31, inf  ;;  %v6937_v16 = vsel %vm752_vm3, %v2424_v6, 2147483647 }
 0x454   : > { %8755 = vst [vmem:[#allocation40_spill] sm:$0xff] %v6937_v16  ;;  %vm2403_vm5 = vcmp.le.f32.partialorder %v8756_v19, %v6923_v53  ;;  %v2644_v7 = vand.u32 65535, %v6519_v5  ;;  %v2792_v9 = vsel %vm2790_vm10, %v2791_v49, %v2789_v25  ;;  %v6944_v36 = vmax.f32 %v2864_v35, 1e-10  ;;  %v6956_v25 = vpop.xlane.xlu1 %2363 }
 0x455   : > { %vm2826_vm8 = vcmp.eq.f32.partialorder %v6684_v31, 0.0  ;;  %v2748_v45 = vmul.f32 0.5, %v2747_v8  ;;  %v2825_v23 = vsel %vm2824_vm14, %v6684_v31, %v2823_v50  ;;  %v2810_v6 = vmul.f32 %v6827_v47, %v2809_v15  ;;  %8757 = vst [vmem:[#allocation34_spill] sm:$0xff] %v6956_v25 }
 0x456   : > { %v6947_v62 = vpop.eup %4218  ;;  %v2540_v29 = vshra.s32 %v6937_v16, 16  ;;  %v3092_v19 = vmul.f32 %v6927_v59, %v6861_v41  ;;  %v2827_v5 = vand.u32 2147483648, %v6684_v31  ;;  %v2773_v49 = vsub.f32 1.5, %v2772_v18 }
 0x457   : > { %v2419_v8 = vsel %vm2403_vm5, %v4563_v39, 8  ;;  %v6959_v35 = vmax.f32 %v2792_v9, 1e-10  ;;  %vm2812_vm1 = vcmp.eq.f32.partialorder %v6713_v54, inf  ;;  %v6964_v47 = vcvt.s32.f32 %v2644_v7  ;;  %v8760_v7 = vld [vmem:[#allocation37_spill] sm:$0xff] }
 0x458   : > { %v6962_v50 = vcvt.s32.f32 %v2540_v29  ;;  %v6966_v15 = vpop.eup %4220  ;;  %4222 = vrcp.f32 %v6944_v36  ;;  %v2828_v10 = vsel %vm2826_vm8, %v2827_v5, %v2825_v23  ;;  %v2749_v18 = vsub.f32 1.5, %v2748_v45 }
 0x459   : > { %v2758_v16 = vmul.f32 %v6947_v62, %v6899_v17  ;;  %v2811_v9 = vmul.f32 %v2810_v6, %v6713_v54  ;;  %v6976_v29 = vsel %vm752_vm3, %v2419_v8, 2147483647  ;;  %vm2404_vm4 = vcmp.le.f32.partialorder %v8760_v7, %v6956_v25 }
 0x45a   : > { %8758 = vst [vmem:[#allocation90_spill] sm:$0xff] %v6962_v50  ;;  %2543 = vmin.xlane.f32.xlu2 %v6962_v50  ;;  %v3093_v44 = vsub.f32 1.0, %v3092_v19  ;;  %vm2814_vm15 = vcmp.eq.f32.partialorder %v6713_v54, 0.0  ;;  %v2815_v31 = vand.u32 2147483648, %v6713_v54  ;;  %v2774_v45 = vmul.f32 %v6885_v51, %v2773_v49 }
 0x45b   : > { %8759 = vst [vmem:[#allocation91_spill] sm:$0xff] %v6976_v29  ;;  %4224 = vrsqrt.f32 %v6842_v55  ;;  %v6984_v23 = vmax.f32 %v2828_v10, 1e-10  ;;  %v2465_v6 = vshra.s32 %v6976_v29, 16  ;;  %v2420_v5 = vsel %vm2404_vm4, %v4563_v39, 8 }
 0x45c   : > { %v8761_v8 = vand.u32 65535, %v6465_v48  ;;  %4226 = vrcp.f32 %v6959_v35  ;;  %v2750_v19 = vmul.f32 %v6872_v22, %v2749_v18  ;;  %v2759_v7 = vmul.f32 %v6947_v62, %v2758_v16 }
 0x45d   : > { %v2659_v51 = vand.u32 65535, %v6605_v11  ;;  %v2813_v10 = vsel %vm2812_vm1, %v6713_v54, %v2811_v9  ;;  %v6999_v49 = vcvt.s32.f32 %v2465_v6  ;;  %v7002_v25 = vsel %vm752_vm3, %v2420_v5, 2147483647 }
 0x45e   : > { %v6990_v50 = vcvt.s32.f32 %v8761_v8  ;;  %8763 = vst [vmem:[#allocation92_spill] sm:$0xff] %v7002_v25  ;;  %v3094_v48 = vmul.f32 %v6927_v59, %v3093_v44  ;;  %v7005_v8 = vpop.eup %4222  ;;  %vm2752_vm6 = vcmp.eq.f32.partialorder %v6774_v27, inf  ;;  %v2775_v22 = vmul.f32 %v2774_v45, %v6840_v63 }
 0x45f   : > { %8762 = vst [vmem:[#allocation37_spill] sm:$0xff] %v6999_v49  ;;  %v2480_v11 = vshra.s32 %v7002_v25, 16  ;;  %4228 = vrcp.f32 %v6984_v23  ;;  %vm2754_vm9 = vcmp.eq.f32.partialorder %v6774_v27, 0.0  ;;  %vm2776_vm12 = vcmp.eq.f32.partialorder %v6840_v63, inf  ;;  %2468 = vmin.xlane.f32.xlu1 %v6999_v49 }
 0x460   : > { %v3095_v44 = vadd.f32 %v6927_v59, %v3094_v48  ;;  %v2816_v18 = vsel %vm2814_vm15, %v2815_v31, %v2813_v10  ;;  %v2751_v9 = vmul.f32 %v2750_v19, %v6774_v27  ;;  %v2760_v45 = vmul.f32 0.5, %v2759_v7 }
 0x461   : > { %v7016_v16 = vpop.eup %4224  ;;  %v7021_v6 = vcvt.s32.f32 %v2480_v11  ;;  %vm3096_vm10 = vweird.f32 %v6861_v41  ;;  %vm3097_vm0 = vweird.f32 %v6927_v59  ;;  %v3100_v5 = vand.u32 2147483647, %v6861_v41 }
 0x462   : > { %8764 = vst [vmem:[#allocation93_spill] sm:$0xff] %v7016_v16  ;;  %v3102_v29 = vand.u32 2147483648, %v6861_v41  ;;  %v7027_v49 = vpop.eup %4226  ;;  %v2755_v48 = vand.u32 2147483648, %v6774_v27  ;;  %v2777_v54 = vsel %vm2776_vm12, %v6840_v63, %v2775_v22  ;;  %v2779_v31 = vand.u32 2147483648, %v6840_v63  ;;  %vm3098_vm2 = vmor %vm3096_vm10, %vm3097_vm0 }
 0x463   : > { %8765 = vst [vmem:[#allocation94_spill] sm:$0xff] %v7021_v6  ;;  %2483 = vmin.xlane.f32.xlu2 %v7021_v6  ;;  %v3107_v19 = vmul.f32 %v7005_v8, %v6944_v36  ;;  %v7035_v7 = vmax.f32 %v2816_v18, 1e-10  ;;  %v2734_v10 = vmul.f32 %v7016_v16, %v6842_v55  ;;  %v3099_v41 = vsel %vm3098_vm2, %v6927_v59, %v3095_v44 }
 0x464   : > { %v3103_v11 = vor.u32 1.1754944e-38, %v3102_v29  ;;  %v2753_v22 = vsel %vm2752_vm6, %v6774_v27, %v2751_v9  ;;  %vm2778_vm14 = vcmp.eq.f32.partialorder %v6840_v63, 0.0  ;;  %vm3101_vm5 = vcmp.eq.f32.partialorder %v3100_v5, 8.507059e+37 }
 0x465   : > { %v3108_v6 = vsub.f32 1.0, %v3107_v19  ;;  %v7044_v25 = vpop.eup %4228  ;;  %v2780_v40 = vsel %vm2778_vm14, %v2779_v31, %v2777_v54  ;;  %v2761_v0 = vsub.f32 1.5, %v2760_v45  ;;  %v3117_v38 = vand.u32 2147483648, %v6944_v36 }
 0x466   : > { %v7046_v18 = vsel %vm3101_vm5, %v3103_v11, %v3099_v41  ;;  %vm3112_vm8 = vweird.f32 %v7005_v8  ;;  %v3115_v59 = vand.u32 2147483647, %v6944_v36  ;;  %4230 = vrcp.f32 %v7035_v7 }
 0x467   : > { %v3109_v28 = vmul.f32 %v7005_v8, %v3108_v6  ;;  %v7054_v29 = vadd.f32 %v6527_v43, %v7046_v18  ;;  %v2735_v44 = vmul.f32 %v7016_v16, %v2734_v10  ;;  %v7059_v9 = vcvt.s32.f32 %v2659_v51 }
 0x468   : > { %v2756_v45 = vsel %vm2754_vm9, %v2755_v48, %v2753_v22  ;;  %vm3111_vm1 = vweird.f32 %v6944_v36  ;;  %v7066_v5 = vmax.f32 %v2780_v40, 1e-10  ;;  %v2762_v43 = vmul.f32 %v6947_v62, %v2761_v0 }
 0x469   : > { %v3110_v6 = vadd.f32 %v7005_v8, %v3109_v28  ;;  %4232 = vrcp.f32 %v7054_v29  ;;  %vm3113_vm4 = vmor %vm3111_vm1, %vm3112_vm8  ;;  %v3118_v54 = vor.u32 1.1754944e-38, %v3117_v38  ;;  %v3062_v31 = vmul.f32 %v7044_v25, %v6984_v23 }
 0x46a   : > { %4234 = vrsqrt.f32 %v6923_v53  ;;  %vm3116_vm15 = vcmp.eq.f32.partialorder %v3115_v59, 8.507059e+37  ;;  %v7074_v28 = vmul.f32 0.5, %v2735_v44  ;;  %v3070_v48 = vand.u32 2147483647, %v6984_v23 }
 0x46b   : > { %v3114_v27 = vsel %vm3113_vm4, %v7005_v8, %v3110_v6  ;;  %v3063_v40 = vsub.f32 1.0, %v3062_v31  ;;  %v7079_v0 = vmax.f32 %v2756_v45, 1e-10  ;;  %v3372_v62 = vand.u32 2147483647, %v7054_v29 }
 0x46c   : > { %v7076_v36 = vsel %vm3116_vm15, %v3118_v54, %v3114_v27  ;;  %v3077_v19 = vmul.f32 %v6915_v32, %v6855_v33  ;;  %v7088_v8 = vpop.eup %4230  ;;  %4236 = vrcp.f32 %v7066_v5  ;;  %v7092_v10 = vmul.f32 %v2762_v43, %v6899_v17 }
 0x46d   : > { %v7083_v38 = vadd.f32 %v6566_v58, %v7076_v36  ;;  %v3064_v41 = vmul.f32 %v7044_v25, %v3063_v40  ;;  %vm3066_vm6 = vweird.f32 %v6984_v23  ;;  %vm3368_vm9 = vweird.f32 %v7054_v29 }
 0x46e   : > { %v3374_v58 = vand.u32 2147483648, %v7054_v29  ;;  %v3072_v22 = vand.u32 2147483648, %v6984_v23  ;;  %vm3067_vm12 = vweird.f32 %v7044_v25  ;;  %vm7102_vm10 = vcmp.eq.f32.partialorder %v3070_v48, 8.507059e+37 }
 0x46f   : > { %v4233_v11 = vpop.eup %4232  ;;  %4238 = vrcp.f32 %v7083_v38  ;;  %v3078_v45 = vsub.f32 1.0, %v3077_v19  ;;  %vm7108_vm0 = vcmp.eq.f32.partialorder %v3372_v62, 8.507059e+37  ;;  %v3065_v54 = vadd.f32 %v7044_v25, %v3064_v41  ;;  %vm7127_vm8 = vmor %vm3066_vm6, %vm3067_vm12 }
 0x470   : > { %v3364_v59 = vmul.f32 %v4233_v11, %v7054_v29  ;;  %v7106_v6 = vpop.eup %4234  ;;  %vm3082_vm2 = vweird.f32 %v6915_v32  ;;  %v3087_v31 = vand.u32 2147483648, %v6855_v33  ;;  %v3085_v48 = vand.u32 2147483647, %v6855_v33 }
 0x471   : > { %v3079_v40 = vmul.f32 %v6915_v32, %v3078_v45  ;;  %v3032_v19 = vmul.f32 %v6966_v15, %v6904_v4  ;;  %v3375_v63 = vor.u32 1.1754944e-38, %v3374_v58  ;;  %v3387_v62 = vand.u32 2147483647, %v7083_v38 }
 0x472   : > { %v3365_v27 = vsub.f32 1.0, %v3364_v59  ;;  %v3073_v51 = vor.u32 1.1754944e-38, %v3072_v22  ;;  %vm3081_vm14 = vweird.f32 %v6855_v33  ;;  %v7121_v56 = vpop.eup %4236  ;;  %vm3369_vm5 = vweird.f32 %v4233_v11 }
 0x473   : > { %v3080_v45 = vadd.f32 %v6915_v32, %v3079_v40  ;;  %v3033_v58 = vsub.f32 1.0, %v3032_v19  ;;  %vm3383_vm1 = vweird.f32 %v7083_v38  ;;  %v3389_v33 = vand.u32 2147483648, %v7083_v38  ;;  %vm3083_vm4 = vmor %vm3081_vm14, %vm3082_vm2 }
 0x474   : > { %v3366_v41 = vmul.f32 %v4233_v11, %v3365_v27  ;;  %v3069_v22 = vsel %vm7127_vm8, %v7044_v25, %v3065_v54  ;;  %v3088_v23 = vor.u32 1.1754944e-38, %v3087_v31  ;;  %vm3086_vm15 = vcmp.eq.f32.partialorder %v3085_v48, 8.507059e+37  ;;  %vm3370_vm6 = vmor %vm3368_vm9, %vm3369_vm5 }
 0x475   : > { %v4239_v42 = vpop.eup %4238  ;;  %v3084_v16 = vsel %vm3083_vm4, %v6915_v32, %v3080_v45  ;;  %vm7143_vm12 = vcmp.eq.f32.partialorder %v3387_v62, 8.507059e+37  ;;  %v3034_v25 = vmul.f32 %v6966_v15, %v3033_v58  ;;  %v3047_v54 = vmul.f32 %v7088_v8, %v7035_v7 }
 0x476   : > { %v3367_v27 = vadd.f32 %v4233_v11, %v3366_v41  ;;  %v3379_v55 = vmul.f32 %v4239_v42, %v7083_v38  ;;  %v7147_v19 = vsel %vm3086_vm15, %v3088_v23, %v3084_v16  ;;  %vm2764_vm2 = vcmp.eq.f32.partialorder %v6899_v17, inf }
 0x477   : > { %v7155_v32 = vsel %vm7102_vm10, %v3073_v51, %v3069_v22  ;;  %v7159_v29 = vadd.f32 %v6652_v13, %v7147_v19  ;;  %vm3384_vm9 = vweird.f32 %v4239_v42  ;;  %vm3037_vm14 = vweird.f32 %v6966_v15 }
 0x478   : > { %v3371_v31 = vsel %vm3370_vm6, %v4233_v11, %v3367_v27  ;;  %v3380_v41 = vsub.f32 1.0, %v3379_v55  ;;  %v3042_v48 = vand.u32 2147483648, %v6904_v4  ;;  %vm2766_vm10 = vcmp.eq.f32.partialorder %v6899_v17, 0.0  ;;  %vm3385_vm5 = vmor %vm3383_vm1, %vm3384_vm9 }
 0x479   : > { %v3376_v16 = vsel %vm7108_vm0, %v3375_v63, %v3371_v31  ;;  %v7173_v13 = vadd.f32 %v6710_v57, %v7155_v32  ;;  %4240 = vrcp.f32 %v7159_v29  ;;  %v3035_v63 = vadd.f32 %v6966_v15, %v3034_v25 }
 0x47a   : > { %v3381_v62 = vmul.f32 %v4239_v42, %v3380_v41  ;;  %v3407_v11 = vmul.f32 %v3376_v16, %v6169_v3  ;;  %v3439_v55 = vmul.f32 %v3376_v16, %v6501_v2  ;;  %v7168_v51 = vmul.f32 %v3376_v16, %v7046_v18  ;;  %v8775_v2 = vld [vmem:[#allocation10_spill] sm:$0xff] }
 0x47b   : > { %v3048_v44 = vsub.f32 1.0, %v3047_v54  ;;  %vm8776_vm0 = vcmp.eq.s32.totalorder %v4563_v39, %v8775_v2  ;;  %v3040_v45 = vand.u32 2147483647, %v6904_v4  ;;  %v3390_v57 = vor.u32 1.1754944e-38, %v3389_v33 }
 0x47c   : > { %v3382_v43 = vadd.f32 %v4239_v42, %v3381_v62  ;;  %v3423_v3 = vsel %vm1535_vm7, %v3407_v11, 0.0  ;;  %v3455_v18 = vsel %vm8776_vm0, %v3439_v55, 0.0  ;;  %4242 = vrcp.f32 %v7173_v13 }
 0x47d   : > { %v7187_v58 = vadd.f32 %v3455_v18, %v3423_v3  ;;  %vm3036_vm8 = vweird.f32 %v6904_v4  ;;  %v3043_v23 = vor.u32 1.1754944e-38, %v3042_v48  ;;  %vm3052_vm4 = vweird.f32 %v7088_v8 }
 0x47e   : > { %v3386_v22 = vsel %vm3385_vm5, %v4239_v42, %v3382_v43  ;;  %vm3038_vm7 = vmor %vm3036_vm8, %vm3037_vm14  ;;  %v3057_v27 = vand.u32 2147483648, %v7035_v7  ;;  %v3049_v25 = vmul.f32 %v7088_v8, %v3048_v44  ;;  %v3055_v54 = vand.u32 2147483647, %v7035_v7 }
 0x47f   : > { %v3391_v38 = vsel %vm7143_vm12, %v3390_v57, %v3386_v22  ;;  %v3039_v33 = vsel %vm3038_vm7, %v6966_v15, %v3035_v63  ;;  %vm3041_vm1 = vcmp.eq.f32.partialorder %v3040_v45, 8.507059e+37  ;;  %v4241_v41 = vpop.eup %4240  ;;  %v2765_v40 = vsel %vm2764_vm2, %v6899_v17, %v7092_v10  ;;  %v8782_v57 = vld [vmem:[#allocation54_spill] sm:$0xff] }
 0x480   : > { %v3408_v4 = vmul.f32 %v3391_v38, %v6191_v37  ;;  %v3440_v42 = vmul.f32 %v3391_v38, %v6534_v46  ;;  %v7203_v31 = vmul.f32 %v3391_v38, %v7076_v36  ;;  %v7209_v16 = vsel %vm3041_vm1, %v3043_v23, %v3039_v33  ;;  %v8777_v37 = vld [vmem:[#allocation15_spill] sm:$0xff]  ;;  %v8779_v36 = vld [vmem:[#allocation5_spill] sm:$0xff] }
 0x481   : > { %v3050_v15 = vadd.f32 %v7088_v8, %v3049_v25  ;;  %vm3051_vm15 = vweird.f32 %v7035_v7  ;;  %vm8778_vm6 = vcmp.eq.s32.totalorder %v4563_v39, %v8777_v37  ;;  %vm8780_vm12 = vcmp.eq.s32.totalorder %v4563_v39, %v8779_v36 }
 0x482   : > { %v3424_v46 = vsel %vm8778_vm6, %v3408_v4, 0.0  ;;  %v3456_v48 = vsel %vm8780_vm12, %v3440_v42, 0.0  ;;  %v3349_v62 = vmul.f32 %v4241_v41, %v7159_v29  ;;  %vm3053_vm9 = vmor %vm3051_vm15, %vm3052_vm4  ;;  %v3058_v10 = vor.u32 1.1754944e-38, %v3057_v27  ;;  %v4243_v11 = vpop.eup %4242 }
 0x483   : > { %v7222_v55 = vadd.f32 %v3456_v48, %v3424_v46  ;;  %v3054_v63 = vsel %vm3053_vm9, %v7088_v8, %v3050_v15  ;;  %vm3056_vm2 = vcmp.eq.f32.partialorder %v3055_v54, 8.507059e+37  ;;  %v7227_v7 = vadd.f32 %v6693_v21, %v7209_v16 }
 0x484   : > { %v8781_v44 = vand.u32 2147483648, %v6899_v17  ;;  %v3334_v59 = vmul.f32 %v4243_v11, %v7173_v13  ;;  %v3350_v3 = vsub.f32 1.0, %v3349_v62  ;;  %v7234_v2 = vsel %vm3056_vm2, %v3058_v10, %v3054_v63 }
 0x485   : > { %v7236_v18 = vpop.xlane.xlu0 %2633  ;;  %v3357_v45 = vand.u32 2147483647, %v7159_v29  ;;  %v3359_v8 = vand.u32 2147483648, %v7159_v29  ;;  %v7242_v21 = vadd.f32 %v8782_v57, %v7234_v2  ;;  %4244 = vrcp.f32 %v7227_v7 }
 0x486   : > { %v2768_v43 = vsel %vm2766_vm10, %v8781_v44, %v2765_v40  ;;  %vm2635_vm14 = vcmp.eq.f32.partialorder %v6390_v60, %v7236_v18  ;;  %v3335_v17 = vsub.f32 1.0, %v3334_v59  ;;  %v3351_v22 = vmul.f32 %v4241_v41, %v3350_v3 }
 0x487   : > { %vm3354_vm10 = vweird.f32 %v4241_v41  ;;  %v2636_v23 = vsel %vm2635_vm14, %v6933_v34, inf  ;;  %v3342_v27 = vand.u32 2147483647, %v7173_v13  ;;  %v3344_v38 = vand.u32 2147483648, %v7173_v13 }
 0x488   : > { %4246 = vrcp.f32 %v7242_v21  ;;  %2637 = vmin.xlane.f32.xlu1 %v2636_v23  ;;  %v3336_v33 = vmul.f32 %v4243_v11, %v3335_v17  ;;  %vm3339_vm0 = vweird.f32 %v4243_v11  ;;  %v3352_v25 = vadd.f32 %v4241_v41, %v3351_v22  ;;  %v8788_v22 = vld [vmem:[#allocation19_spill] sm:$0xff]  ;;  %v8790_v23 = vld [vmem:[#allocation6_spill] sm:$0xff] }
 0x489   : > { %vm3353_vm5 = vweird.f32 %v7159_v29  ;;  %4248 = vrcp.f32 %v7079_v0  ;;  %v7253_v60 = vmax.f32 %v2768_v43, 1e-10  ;;  %v7257_v54 = vmul.f32 %v7106_v6, %v6923_v53 }
 0x48a   : > { %vm3355_vm8 = vmor %vm3353_vm5, %vm3354_vm10  ;;  %v3360_v34 = vor.u32 1.1754944e-38, %v3359_v8  ;;  %v3337_v4 = vadd.f32 %v4243_v11, %v3336_v33  ;;  %vm3338_vm7 = vweird.f32 %v7173_v13  ;;  %vm3358_vm4 = vcmp.eq.f32.partialorder %v3357_v45, 8.507059e+37 }
 0x48b   : > { %v3356_v42 = vsel %vm3355_vm8, %v4241_v41, %v3352_v25  ;;  %v4245_v40 = vpop.eup %4244  ;;  %vm3340_vm1 = vmor %vm3338_vm7, %vm3339_vm0  ;;  %vm3343_vm15 = vcmp.eq.f32.partialorder %v3342_v27, 8.507059e+37  ;;  %v3345_v15 = vor.u32 1.1754944e-38, %v3344_v38  ;;  %v3312_v37 = vand.u32 2147483647, %v7227_v7 }
 0x48c   : > { %v3361_v29 = vsel %vm3358_vm4, %v3360_v34, %v3356_v42  ;;  %v3341_v46 = vsel %vm3340_vm1, %v4243_v11, %v3337_v4  ;;  %v3304_v13 = vmul.f32 %v4245_v40, %v7227_v7  ;;  %v3314_v41 = vand.u32 2147483648, %v7227_v7  ;;  %v8783_v11 = vld [vmem:[#allocation9_spill] sm:$0xff] }
 0x48d   : > { %v3406_v36 = vmul.f32 %v3361_v29, %v6236_v61  ;;  %v3438_v48 = vmul.f32 %v3361_v29, %v6618_v1  ;;  %v7264_v62 = vmul.f32 %v3361_v29, %v7147_v19  ;;  %v3346_v63 = vsel %vm3343_vm15, %v3345_v15, %v3341_v46  ;;  %v8785_v19 = vld [vmem:[#allocation2_spill] sm:$0xff] }
 0x48e   : > { %v4247_v10 = vpop.eup %4246  ;;  %v3002_v44 = vmul.f32 %v7121_v56, %v7066_v5  ;;  %v3405_v43 = vmul.f32 %v3346_v63, %v6211_v20  ;;  %vm8784_vm6 = vcmp.eq.s32.totalorder %v4563_v39, %v8783_v11  ;;  %v3437_v1 = vmul.f32 %v3346_v63, %v6583_v30 }
 0x48f   : > { %v3422_v61 = vsel %vm8784_vm6, %v3406_v36, 0.0  ;;  %vm8786_vm12 = vcmp.eq.s32.totalorder %v4563_v39, %v8785_v19  ;;  %v7278_v3 = vpop.eup %4248  ;;  %v7283_v8 = vmul.f32 %v3346_v63, %v7155_v32  ;;  %v3305_v57 = vsub.f32 1.0, %v3304_v13 }
 0x490   : > { %v3454_v59 = vsel %vm8786_vm12, %v3438_v48, 0.0  ;;  %v3319_v20 = vmul.f32 %v4247_v10, %v7242_v21  ;;  %v7286_v17 = vpop.xlane.xlu0 %2588  ;;  %vm8789_vm9 = vcmp.eq.s32.totalorder %v4563_v39, %v8788_v22  ;;  %vm8791_vm2 = vcmp.eq.s32.totalorder %v4563_v39, %v8790_v23 }
 0x491   : > { %v7280_v45 = vadd.f32 %v3454_v59, %v3422_v61  ;;  %8787 = vst [vmem:[#allocation11_spill] sm:$0xff] %v7283_v8  ;;  %v3421_v30 = vsel %vm8789_vm9, %v3405_v43, 0.0  ;;  %v3453_v27 = vsel %vm8791_vm2, %v3437_v1, 0.0  ;;  %v3327_v38 = vand.u32 2147483647, %v7242_v21 }
 0x492   : > { %v3329_v33 = vand.u32 2147483648, %v7242_v21  ;;  %vm2590_vm14 = vcmp.eq.f32.partialorder %v6497_v12, %v7286_v17  ;;  %v7298_v32 = vadd.f32 %v3453_v27, %v3421_v30  ;;  %v3306_v25 = vmul.f32 %v4245_v40, %v3305_v57 }
 0x493   : > { %vm3309_vm10 = vweird.f32 %v4245_v40  ;;  %4250 = vrcp.f32 %v7253_v60  ;;  %v2591_v34 = vsel %vm2590_vm14, %v6990_v50, inf  ;;  %v3320_v4 = vsub.f32 1.0, %v3319_v20  ;;  %v8800_v20 = vld [vmem:[#allocation53_spill] sm:$0xff] }
 0x494   : > { %8792 = vst [vmem:[#allocation10_spill] sm:$0xff] %v7298_v32  ;;  %v3003_v42 = vsub.f32 1.0, %v3002_v44  ;;  %2592 = vmin.xlane.f32.xlu1 %v2591_v34  ;;  %v3307_v15 = vadd.f32 %v4245_v40, %v3306_v25  ;;  %vm3308_vm0 = vweird.f32 %v7227_v7  ;;  %vm3313_vm5 = vcmp.eq.f32.partialorder %v3312_v37, 8.507059e+37  ;;  %v8804_v34 = vld [vmem:[#allocation17_spill] sm:$0xff] }
 0x495   : > { %v3017_v29 = vmul.f32 %v7027_v49, %v6959_v35  ;;  %vm3310_vm8 = vmor %vm3308_vm0, %vm3309_vm10  ;;  %v3315_v12 = vor.u32 1.1754944e-38, %v3314_v41  ;;  %v3321_v46 = vmul.f32 %v4247_v10, %v3320_v4  ;;  %vm3323_vm7 = vweird.f32 %v7242_v21  ;;  %v7306_v36 = vpop.xlane.xlu1 %2648 }
 0x496   : > { %vm3324_vm4 = vweird.f32 %v4247_v10  ;;  %v3311_v48 = vsel %vm3310_vm8, %v4245_v40, %v3307_v15  ;;  %vm7308_vm1 = vcmp.eq.f32.partialorder %v3327_v38, 8.507059e+37  ;;  %v3330_v63 = vor.u32 1.1754944e-38, %v3329_v33  ;;  %v8802_v33 = vld [vmem:[#allocation23_spill] sm:$0xff] }
 0x497   : > { %v3018_v13 = vsub.f32 1.0, %v3017_v29  ;;  %vm2650_vm15 = vcmp.eq.f32.partialorder %v6539_v26, %v7306_v36  ;;  %v3316_v7 = vsel %vm3313_vm5, %v3315_v12, %v3311_v48  ;;  %v3322_v37 = vadd.f32 %v4247_v10, %v3321_v46  ;;  %vm3325_vm6 = vmor %vm3323_vm7, %vm3324_vm4 }
 0x498   : > { %v3004_v41 = vmul.f32 %v7121_v56, %v3003_v42  ;;  %v2651_v44 = vsel %vm2650_vm15, %v6964_v47, inf  ;;  %v3403_v21 = vmul.f32 %v3316_v7, %v6247_v14  ;;  %v3435_v40 = vmul.f32 %v3316_v7, %v6662_v52  ;;  %v8795_v14 = vld [vmem:[#allocation12_spill] sm:$0xff] }
 0x499   : > { %v7319_v43 = vmul.f32 %v3316_v7, %v7209_v16  ;;  %v7321_v11 = vpop.eup %4250  ;;  %2652 = vmin.xlane.f32.xlu2 %v2651_v44  ;;  %v3326_v61 = vsel %vm3325_vm6, %v4247_v10, %v3322_v37  ;;  %v3019_v26 = vmul.f32 %v7027_v49, %v3018_v13  ;;  %vm3022_vm12 = vweird.f32 %v7027_v49  ;;  %v8797_v16 = vld [vmem:[#allocation3_spill] sm:$0xff]  ;;  %v8799_v10 = vld [vmem:[#allocation52_spill] sm:$0xff] }
 0x49a   : > { %v3027_v1 = vand.u32 2147483648, %v6959_v35  ;;  %v3331_v47 = vsel %vm7308_vm1, %v3330_v63, %v3326_v61  ;;  %vm8796_vm9 = vcmp.eq.s32.totalorder %v4563_v39, %v8795_v14  ;;  %vm8798_vm2 = vcmp.eq.s32.totalorder %v4563_v39, %v8797_v16 }
 0x49b   : > { %v3419_v52 = vsel %vm8796_vm9, %v3403_v21, 0.0  ;;  %v3451_v19 = vsel %vm8798_vm2, %v3435_v40, 0.0  ;;  %v3025_v59 = vand.u32 2147483647, %v6959_v35  ;;  %v3404_v57 = vmul.f32 %v3331_v47, %v8799_v10  ;;  %v8812_v21 = vld [vmem:[#allocation75_spill] sm:$0xff]  ;;  %v8816_v10 = vld [vmem:[#allocation45_spill] sm:$0xff] }
 0x49c   : > { %v3436_v22 = vmul.f32 %v3331_v47, %v8800_v20  ;;  %v7337_v30 = vadd.f32 %v3451_v19, %v3419_v52  ;;  %v7340_v23 = vmul.f32 %v3331_v47, %v7234_v2  ;;  %vm3007_vm14 = vweird.f32 %v7121_v56  ;;  %v8814_v19 = vld [vmem:[#allocation85_spill] sm:$0xff] }
 0x49d   : > { %v3020_v27 = vadd.f32 %v7027_v49, %v3019_v26  ;;  %vm3021_vm10 = vweird.f32 %v6959_v35  ;;  %v2972_v38 = vmul.f32 %v7278_v3, %v7079_v0  ;;  %vm8803_vm0 = vcmp.eq.s32.totalorder %v4563_v39, %v8802_v33 }
 0x49e   : > { %8801 = vst [vmem:[#allocation15_spill] sm:$0xff] %v7340_v23  ;;  %v3420_v25 = vsel %vm8803_vm0, %v3404_v57, 0.0  ;;  %vm8805_vm5 = vcmp.eq.s32.totalorder %v4563_v39, %v8804_v34  ;;  %v3005_v2 = vadd.f32 %v7121_v56, %v3004_v41  ;;  %vm3023_vm8 = vmor %vm3021_vm10, %vm3022_vm12  ;;  %v3028_v42 = vor.u32 1.1754944e-38, %v3027_v1  ;;  %v8810_v41 = vld [vmem:[#allocation24_spill] sm:$0xff] }
 0x49f   : > { %v3452_v4 = vsel %vm8805_vm5, %v3436_v22, 0.0  ;;  %v3024_v35 = vsel %vm3023_vm8, %v7027_v49, %v3020_v27  ;;  %vm3026_vm7 = vcmp.eq.f32.partialorder %v3025_v59, 8.507059e+37  ;;  %v2973_v29 = vsub.f32 1.0, %v2972_v38  ;;  %v7366_v63 = vpop.xlane.xlu2 %2663  ;;  %v7368_v13 = vpop.xlane.xlu0 %2573 }
 0x4a0   : > { %v7356_v15 = vadd.f32 %v3452_v4, %v3420_v25  ;;  %v2699_v12 = vmul.f32 %v7106_v6, %v7257_v54  ;;  %vm3006_vm4 = vweird.f32 %v7066_v5  ;;  %v3012_v46 = vand.u32 2147483648, %v7066_v5 }
 0x4a1   : > { %v7363_v48 = vsel %vm3026_vm7, %v3028_v42, %v3024_v35  ;;  %v2737_v50 = vsub.f32 1.5, %v7074_v28  ;;  %v8807_v7 = vand.u32 65535, %v6602_v24  ;;  %vm7374_vm1 = vmor %vm3006_vm4, %vm3007_vm14  ;;  %v3010_v54 = vand.u32 2147483647, %v7066_v5  ;;  %v8811_v28 = vld [vmem:[#allocation74_spill] sm:$0xff] }
 0x4a2   : > { %8806 = vst [vmem:[#allocation5_spill] sm:$0xff] %v7356_v15  ;;  %v7381_v44 = vadd.f32 %v8810_v41, %v7363_v48  ;;  %vm2575_vm15 = vcmp.eq.f32.partialorder %v8811_v28, %v7368_v13  ;;  %vm2665_vm6 = vcmp.eq.f32.partialorder %v8812_v21, %v7366_v63  ;;  %v3009_v24 = vsel %vm7374_vm1, %v7121_v56, %v3005_v2  ;;  %v7394_v47 = vpop.xlane.xlu1 %2354  ;;  %v8813_v56 = vld [vmem:[#allocation93_spill] sm:$0xff]  ;;  %v8817_v35 = vld [vmem:[#allocation86_spill] sm:$0xff]  ;;  %v8821_v21 = vld [vmem:[#allocation79_spill] sm:$0xff] }
 0x4a3   : > { %v2571_v49 = vcvt.s32.f32 %v8807_v7  ;;  %v2974_v40 = vmul.f32 %v7278_v3, %v2973_v29  ;;  %v2666_v61 = vsel %vm2665_vm6, %v7059_v9, inf  ;;  %v2982_v5 = vand.u32 2147483648, %v7079_v0  ;;  %v8815_v9 = vld [vmem:[#allocation62_spill] sm:$0xff] }
 0x4a4   : > { %4252 = vrcp.f32 %v7381_v44  ;;  %v2700_v1 = vmul.f32 0.5, %v2699_v12  ;;  %2667 = vmin.xlane.f32.xlu0 %v2666_v61  ;;  %v3013_v14 = vor.u32 1.1754944e-38, %v3012_v46  ;;  %vm2977_vm12 = vweird.f32 %v7278_v3 }
 0x4a5   : > { %v2576_v26 = vsel %vm2575_vm15, %v2571_v49, inf  ;;  %v2980_v52 = vand.u32 2147483647, %v7079_v0  ;;  %v2738_v16 = vmul.f32 %v8813_v56, %v2737_v50  ;;  %vm2740_vm9 = vcmp.eq.f32.partialorder %v8814_v19, inf  ;;  %v8818_v49 = vld [vmem:[#allocation57_spill] sm:$0xff] }
 0x4a6   : > { %2577 = vmin.xlane.f32.xlu1 %v2576_v26  ;;  %v2614_v59 = vand.u32 65535, %v8815_v9  ;;  %vm3011_vm2 = vcmp.eq.f32.partialorder %v3010_v54, 8.507059e+37  ;;  %vm2401_vm14 = vcmp.le.f32.partialorder %v8816_v10, %v7394_v47  ;;  %v2975_v20 = vadd.f32 %v7278_v3, %v2974_v40  ;;  %v8819_v54 = vld [vmem:[#allocation13_spill] sm:$0xff] }
 0x4a7   : > { %v7403_v57 = vsel %vm3011_vm2, %v3013_v14, %v3009_v24  ;;  %vm2976_vm10 = vweird.f32 %v7079_v0  ;;  %v2743_v22 = vand.u32 2147483648, %v8814_v19  ;;  %v2417_v27 = vsel %vm2401_vm14, %v4563_v39, 8  ;;  %v8823_v14 = vld [vmem:[#allocation18_spill] sm:$0xff] }
 0x4a8   : > { %vm2978_vm0 = vmor %vm2976_vm10, %vm2977_vm12  ;;  %v2983_v38 = vor.u32 1.1754944e-38, %v2982_v5  ;;  %v2987_v33 = vmul.f32 %v7321_v11, %v7253_v60  ;;  %vm2742_vm5 = vcmp.eq.f32.partialorder %v8814_v19, 0.0  ;;  %v2701_v25 = vsub.f32 1.5, %v2700_v1 }
 0x4a9   : > { %v7413_v34 = vsel %vm752_vm3, %v2417_v27, 2147483647  ;;  %v2979_v4 = vsel %vm2978_vm0, %v7278_v3, %v2975_v20  ;;  %vm2981_vm8 = vcmp.eq.f32.partialorder %v2980_v52, 8.507059e+37  ;;  %v2616_v42 = vcvt.s32.f32 %v2614_v59 }
 0x4aa   : > { %v4253_v2 = vpop.eup %4252  ;;  %v2435_v0 = vshra.s32 %v7413_v34, 16  ;;  %v7419_v29 = vadd.f32 %v8817_v35, %v7403_v57  ;;  %v7421_v12 = vsel %vm2981_vm8, %v2983_v38, %v2979_v4  ;;  %v2739_v46 = vmul.f32 %v2738_v16, %v8814_v19  ;;  %v7438_v26 = vpop.xlane.xlu0 %2498 }
 0x4ab   : > { %v3289_v50 = vmul.f32 %v4253_v2, %v7381_v44  ;;  %v2988_v7 = vsub.f32 1.0, %v2987_v33  ;;  %v7427_v37 = vadd.f32 %v8818_v49, %v7421_v12  ;;  %v8820_v41 = vand.u32 65535, %v8819_v54 }
 0x4ac   : > { %v7429_v3 = vcvt.s32.f32 %v2435_v0  ;;  %v8822_v24 = vand.u32 65535, %v8821_v21  ;;  %4254 = vrcp.f32 %v7419_v29  ;;  %v2702_v61 = vmul.f32 %v7106_v6, %v2701_v25 }
 0x4ad   : > { %v2496_v28 = vcvt.s32.f32 %v8820_v41  ;;  %vm2704_vm7 = vcmp.eq.f32.partialorder %v6923_v53, inf  ;;  %v3290_v5 = vsub.f32 1.0, %v3289_v50  ;;  %v2989_v1 = vmul.f32 %v7321_v11, %v2988_v7  ;;  %v8826_v50 = vld [vmem:[#allocation78_spill] sm:$0xff] }
 0x4ae   : > { %v2601_v40 = vcvt.s32.f32 %v8822_v24  ;;  %2438 = vmin.xlane.f32.xlu2 %v7429_v3  ;;  %vm2500_vm4 = vcmp.eq.f32.partialorder %v8823_v14, %v7438_v26  ;;  %vm2992_vm1 = vweird.f32 %v7321_v11  ;;  %v2997_v52 = vand.u32 2147483648, %v7253_v60 }
 0x4af   : > { %4256 = vrcp.f32 %v7427_v37  ;;  %v2741_v6 = vsel %vm2740_vm9, %v8814_v19, %v2739_v46  ;;  %v2501_v56 = vsel %vm2500_vm4, %v2496_v28, inf  ;;  %v3291_v16 = vmul.f32 %v4253_v2, %v3290_v5  ;;  %v7465_v0 = vpop.xlane.xlu2 %2618 }
 0x4b0   : > { %v2995_v9 = vand.u32 2147483647, %v7253_v60  ;;  %2502 = vmin.xlane.f32.xlu1 %v2501_v56  ;;  %vm3294_vm15 = vweird.f32 %v4253_v2  ;;  %v3299_v59 = vand.u32 2147483648, %v7381_v44  ;;  %v2990_v10 = vadd.f32 %v7321_v11, %v2989_v1  ;;  %v8828_v1 = vld [vmem:[#allocation82_spill] sm:$0xff]  ;;  %v8829_v56 = vld [vmem:[#allocation41_spill] sm:$0xff] }
 0x4b1   : > { %vm2991_vm6 = vweird.f32 %v7253_v60  ;;  %v2703_v20 = vmul.f32 %v2702_v61, %v6923_v53  ;;  %vm2706_vm12 = vcmp.eq.f32.partialorder %v6923_v53, 0.0  ;;  %v3292_v27 = vadd.f32 %v4253_v2, %v3291_v16 }
 0x4b2   : > { %v3297_v38 = vand.u32 2147483647, %v7381_v44  ;;  %vm7459_vm9 = vmor %vm2991_vm6, %vm2992_vm1  ;;  %v4255_v25 = vpop.eup %4254  ;;  %v2744_v4 = vsel %vm2742_vm5, %v2743_v22, %v2741_v6  ;;  %vm3293_vm2 = vweird.f32 %v7381_v44  ;;  %v2998_v35 = vor.u32 1.1754944e-38, %v2997_v52 }
 0x4b3   : > { %v2994_v60 = vsel %vm7459_vm9, %v7321_v11, %v2990_v10  ;;  %v2707_v46 = vand.u32 2147483648, %v6923_v53  ;;  %vm2620_vm14 = vcmp.eq.f32.partialorder %v8826_v50, %v7465_v0  ;;  %v3274_v7 = vmul.f32 %v4255_v25, %v7419_v29  ;;  %vm3295_vm10 = vmor %vm3293_vm2, %vm3294_vm15  ;;  %v7485_v21 = vpop.xlane.xlu1 %2603  ;;  %v8835_v50 = vld [vmem:[#allocation14_spill] sm:$0xff] }
 0x4b4   : > { %vm2996_vm0 = vcmp.eq.f32.partialorder %v2995_v9, 8.507059e+37  ;;  %v2621_v22 = vsel %vm2620_vm14, %v2616_v42, inf  ;;  %v3296_v49 = vsel %vm3295_vm10, %v4253_v2, %v3292_v27  ;;  %v3300_v44 = vor.u32 1.1754944e-38, %v3299_v59  ;;  %v8827_v42 = vld [vmem:[#allocation87_spill] sm:$0xff]  ;;  %v8830_v9 = vld [vmem:[#allocation77_spill] sm:$0xff] }
 0x4b5   : > { %v7476_v19 = vpop.eup %4256  ;;  %v7478_v54 = vsel %vm2996_vm0, %v2998_v35, %v2994_v60  ;;  %v7480_v41 = vmax.f32 %v2744_v4, 1e-10  ;;  %v2705_v11 = vsel %vm2704_vm7, %v6923_v53, %v2703_v20  ;;  %2622 = vmin.xlane.f32.xlu0 %v2621_v22  ;;  %v3275_v28 = vsub.f32 1.0, %v3274_v7  ;;  %v8831_v20 = vld [vmem:[#allocation47_spill] sm:$0xff] }
 0x4b6   : > { %vm3298_vm5 = vcmp.eq.f32.partialorder %v3297_v38, 8.507059e+37  ;;  %v3282_v24 = vand.u32 2147483647, %v7419_v29  ;;  %v7490_v2 = vadd.f32 %v8827_v42, %v7478_v54  ;;  %v3244_v5 = vmul.f32 %v7476_v19, %v7427_v37 }
 0x4b7   : > { %v3301_v61 = vsel %vm3298_vm5, %v3300_v44, %v3296_v49  ;;  %vm2605_vm8 = vcmp.eq.f32.partialorder %v8828_v1, %v7485_v21  ;;  %v3276_v14 = vmul.f32 %v4255_v25, %v3275_v28  ;;  %vm3279_vm7 = vweird.f32 %v4255_v25  ;;  %v7507_v35 = vpop.xlane.xlu2 %2357 }
 0x4b8   : > { %v3284_v52 = vand.u32 2147483648, %v7419_v29  ;;  %v2606_v6 = vsel %vm2605_vm8, %v2601_v40, inf  ;;  %v3402_v16 = vmul.f32 %v3301_v61, %v8829_v56  ;;  %v3434_v59 = vmul.f32 %v3301_v61, %v8830_v9  ;;  %v8833_v40 = vld [vmem:[#allocation16_spill] sm:$0xff] }
 0x4b9   : > { %v7500_v10 = vmul.f32 %v3301_v61, %v7363_v48  ;;  %4258 = vrcp.f32 %v7480_v41  ;;  %2607 = vmin.xlane.f32.xlu2 %v2606_v6  ;;  %v8832_v27 = vand.u32 65535, %v8831_v20  ;;  %v3277_v33 = vadd.f32 %v4255_v25, %v3276_v14  ;;  %v8840_v14 = vld [vmem:[#allocation80_spill] sm:$0xff] }
 0x4ba   : > { %v3245_v4 = vsub.f32 1.0, %v3244_v5  ;;  %v2708_v60 = vsel %vm2706_vm12, %v2707_v46, %v2705_v11  ;;  %vm3278_vm4 = vweird.f32 %v7419_v29  ;;  %vm8834_vm1 = vcmp.eq.s32.totalorder %v4563_v39, %v8833_v40  ;;  %v8837_v46 = vld [vmem:[#allocation26_spill] sm:$0xff]  ;;  %v8842_v56 = vld [vmem:[#allocation84_spill] sm:$0xff] }
 0x4bb   : > { %v2526_v38 = vcvt.s32.f32 %v8832_v27  ;;  %v3418_v48 = vsel %vm8834_vm1, %v3402_v16, 0.0  ;;  %vm8836_vm15 = vcmp.eq.s32.totalorder %v4563_v39, %v8835_v50  ;;  %vm3280_vm6 = vmor %vm3278_vm4, %vm3279_vm7  ;;  %vm3283_vm9 = vcmp.eq.f32.partialorder %v3282_v24, 8.507059e+37  ;;  %v7527_v24 = vpop.xlane.xlu1 %2528  ;;  %v8839_v5 = vld [vmem:[#allocation38_spill] sm:$0xff]  ;;  %v8843_v27 = vld [vmem:[#allocation27_spill] sm:$0xff] }
 0x4bc   : > { %v3450_v7 = vsel %vm8836_vm15, %v3434_v59, 0.0  ;;  %v3285_v22 = vor.u32 1.1754944e-38, %v3284_v52  ;;  %vm3248_vm2 = vweird.f32 %v7427_v37  ;;  %v3254_v53 = vand.u32 2147483648, %v7427_v37  ;;  %v8849_v50 = vld [vmem:[#allocation8_spill] sm:$0xff] }
 0x4bd   : > { %vm2402_vm12 = vcmp.le.f32.partialorder %v8837_v46, %v7507_v35  ;;  %v3281_v29 = vsel %vm3280_vm6, %v4255_v25, %v3277_v33  ;;  %v7521_v49 = vadd.f32 %v3450_v7, %v3418_v48  ;;  %v3252_v44 = vand.u32 2147483647, %v7427_v37  ;;  %v8850_v7 = vld [vmem:[#allocation43_spill] sm:$0xff] }
 0x4be   : > { %v2418_v11 = vsel %vm2402_vm12, %v4563_v39, 8  ;;  %v3286_v28 = vsel %vm3283_vm9, %v3285_v22, %v3281_v29  ;;  %v3246_v61 = vmul.f32 %v7476_v19, %v3245_v4  ;;  %vm3249_vm14 = vweird.f32 %v7476_v19  ;;  %v8845_v4 = vld [vmem:[#allocation67_spill] sm:$0xff]  ;;  %v8852_v29 = vld [vmem:[#allocation30_spill] sm:$0xff] }
 0x4bf   : > { %v7530_v42 = vsel %vm752_vm3, %v2418_v11, 2147483647  ;;  %v3401_v1 = vmul.f32 %v3286_v28, %v8839_v5  ;;  %v3433_v25 = vmul.f32 %v3286_v28, %v8840_v14  ;;  %v7535_v52 = vmul.f32 %v3286_v28, %v7403_v57  ;;  %v7537_v6 = vpop.eup %4258  ;;  %vm3250_vm8 = vmor %vm3248_vm2, %vm3249_vm14 }
 0x4c0   : > { %8838 = vst [vmem:[#allocation54_spill] sm:$0xff] %v7530_v42  ;;  %vm2530_vm10 = vcmp.eq.f32.partialorder %v8842_v56, %v7527_v24  ;;  %v2450_v16 = vshra.s32 %v7530_v42, 16  ;;  %v3247_v9 = vadd.f32 %v7476_v19, %v3246_v61  ;;  %v3255_v59 = vor.u32 1.1754944e-38, %v3254_v53  ;;  %v8851_v53 = vld [vmem:[#allocation29_spill] sm:$0xff]  ;;  %v8853_v61 = vld [vmem:[#allocation55_spill] sm:$0xff]  ;;  %v8878_v42 = vld [vmem:[#allocation50_spill] sm:$0xff] }
 0x4c1   : > { %8841 = vst [vmem:[#allocation9_spill] sm:$0xff] %v7535_v52  ;;  %v2531_v20 = vsel %vm2530_vm10, %v2526_v38, inf  ;;  %vm8844_vm0 = vcmp.eq.s32.totalorder %v4563_v39, %v8843_v27  ;;  %vm8846_vm5 = vcmp.eq.s32.totalorder %v4563_v39, %v8845_v4  ;;  %4260 = vrcp.f32 %v7490_v2  ;;  %v8863_v27 = vld [vmem:[#allocation72_spill] sm:$0xff] }
 0x4c2   : > { %v3417_v33 = vsel %vm8844_vm0, %v3401_v1, 0.0  ;;  %v3449_v57 = vsel %vm8846_vm5, %v3433_v25, 0.0  ;;  %v7552_v40 = vcvt.s32.f32 %v2450_v16  ;;  %2532 = vmin.xlane.f32.xlu2 %v2531_v20  ;;  %v3251_v38 = vsel %vm3250_vm8, %v7476_v19, %v3247_v9  ;;  %v8854_v1 = vld [vmem:[#allocation56_spill] sm:$0xff]  ;;  %v7570_v56 = vpop.xlane.xlu2 %2558  ;;  %v8858_v16 = vld [vmem:[#allocation25_spill] sm:$0xff] }
 0x4c3   : > { %v7554_v48 = vadd.f32 %v3449_v57, %v3417_v33  ;;  %vm3253_vm7 = vcmp.eq.f32.partialorder %v3252_v44, 8.507059e+37  ;;  %v1110_v22 = vmul.f32 %v8850_v7, %v8849_v50  ;;  %v2554_v46 = vand.u32 65535, %v8851_v53  ;;  %v8856_v19 = vld [vmem:[#allocation48_spill] sm:$0xff]  ;;  %8857 = vst [vmem:[#allocation12_spill] sm:$0xff] %v7570_v56  ;;  %v8862_v20 = vld [vmem:[#allocation49_spill] sm:$0xff] }
 0x4c4   : > { %8847 = vst [vmem:[#allocation2_spill] sm:$0xff] %v7552_v40  ;;  %v2509_v11 = vand.u32 65535, %v8852_v29  ;;  %v3256_v28 = vsel %vm3253_vm7, %v3255_v59, %v3251_v38  ;;  %v7561_v37 = vmax.f32 %v2708_v60, 1e-10  ;;  %2453 = vmin.xlane.f32.xlu0 %v7552_v40  ;;  %v1313_v44 = vsub.f32 1.0, %v8856_v19  ;;  %v8860_v60 = vld [vmem:[#allocation63_spill] sm:$0xff] }
 0x4c5   : > { %8848 = vst [vmem:[#allocation19_spill] sm:$0xff] %v7554_v48  ;;  %v3399_v5 = vmul.f32 %v3256_v28, %v8853_v61  ;;  %v3431_v14 = vmul.f32 %v3256_v28, %v8854_v1  ;;  %v7567_v25 = vmul.f32 %v3256_v28, %v7421_v12  ;;  %vm8859_vm4 = vcmp.eq.s32.totalorder %v4563_v39, %v8858_v16  ;;  %v8864_v57 = vld [vmem:[#allocation4_spill] sm:$0xff]  ;;  %v8865_v38 = vld [vmem:[#allocation69_spill] sm:$0xff] }
 0x4c6   : > { %vm8861_vm1 = vcmp.eq.s32.totalorder %v4563_v39, %v8860_v60  ;;  %v2112_v33 = vmul.f32 %v8863_v27, %v8862_v20  ;;  %v7582_v12 = vmul.f32 %v8865_v38, %v8864_v57  ;;  %v8866_v53 = vld [vmem:[#allocation88_spill] sm:$0xff]  ;;  %v2556_v29 = vcvt.s32.f32 %v2554_v46  ;;  %v8869_v19 = vld [vmem:[#allocation89_spill] sm:$0xff] }
 0x4c7   : > { %8855 = vst [vmem:[#allocation6_spill] sm:$0xff] %v7567_v25  ;;  %v3415_v9 = vsel %vm8859_vm4, %v3399_v5, 0.0  ;;  %v3447_v59 = vsel %vm8861_vm1, %v3431_v14, 0.0  ;;  %v4261_v4 = vpop.eup %4260  ;;  %vm2560_vm15 = vcmp.eq.f32.partialorder %v8866_v53, %v7570_v56  ;;  %v7589_v61 = vmul.f32 %v8850_v7, %v1110_v22  ;;  %v7592_v5 = vpop.xlane.xlu1 %2513  ;;  %v8870_v60 = vld [vmem:[#allocation36_spill] sm:$0xff]  ;;  %v8871_v53 = vld [vmem:[#allocation71_spill] sm:$0xff] }
 0x4c8   : > { %v7586_v28 = vadd.f32 %v3447_v59, %v3415_v9  ;;  %4262 = vrcp.f32 %v7561_v37  ;;  %8868 = vst [vmem:[#allocation52_spill] sm:$0xff] %v7592_v5  ;;  %v2511_v1 = vcvt.s32.f32 %v2509_v11  ;;  %v3259_v14 = vmul.f32 %v4261_v4, %v7490_v2  ;;  %v8872_v52 = vld [vmem:[#allocation44_spill] sm:$0xff] }
 0x4c9   : > { %vm2515_vm6 = vcmp.eq.f32.partialorder %v8869_v19, %v7592_v5  ;;  %v2561_v16 = vsel %vm2560_vm15, %v2556_v29, inf  ;;  %v1314_v38 = vmul.f32 %v8870_v60, %v1313_v44  ;;  %v2113_v48 = vsub.f32 1.0, %v2112_v33  ;;  %v8873_v29 = vld [vmem:[#allocation40_spill] sm:$0xff] }
 0x4ca   : > { %8867 = vst [vmem:[#allocation3_spill] sm:$0xff] %v7586_v28  ;;  %v2516_v9 = vsel %vm2515_vm6, %v2511_v1, inf  ;;  %v3260_v59 = vsub.f32 1.0, %v3259_v14  ;;  %4264 = vrsqrt.f32 %v8872_v52  ;;  %v3269_v11 = vand.u32 2147483648, %v7490_v2  ;;  %v8874_v14 = vld [vmem:[#allocation51_spill] sm:$0xff]  ;;  %v8875_v25 = vld [vmem:[#allocation76_spill] sm:$0xff] }
 0x4cb   : > { %2517 = vmin.xlane.f32.xlu2 %v2516_v9  ;;  %v2957_v28 = vmul.f32 %v7537_v6, %v7480_v41  ;;  %vm1317_vm9 = vweird.f32 %v8870_v60  ;;  %v2539_v19 = vand.u32 65535, %v8873_v29  ;;  %vm3264_vm2 = vweird.f32 %v4261_v4 }
 0x4cc   : > { %2562 = vmin.xlane.f32.xlu0 %v2561_v16  ;;  %v3261_v44 = vmul.f32 %v4261_v4, %v3260_v59  ;;  %v3267_v1 = vand.u32 2147483647, %v7490_v2  ;;  %4266 = vrsqrt.f32 %v8874_v14  ;;  %v7609_v22 = vadd.f32 %v8870_v60, %v1314_v38 }
 0x4cd   : > { %v2958_v33 = vsub.f32 1.0, %v2957_v28  ;;  %vm1316_vm12 = vweird.f32 %v8871_v53  ;;  %vm2117_vm14 = vweird.f32 %v8863_v27  ;;  %vm3263_vm10 = vweird.f32 %v7490_v2  ;;  %v7624_v2 = vpop.xlane.xlu2 %2543 }
 0x4ce   : > { %v7613_v9 = vpop.eup %4262  ;;  %v3262_v46 = vadd.f32 %v4261_v4, %v3261_v44  ;;  %v2967_v16 = vand.u32 2147483648, %v7480_v41  ;;  %v2114_v59 = vmul.f32 %v8863_v27, %v2113_v48  ;;  %vm3265_vm0 = vmor %vm3263_vm10, %vm3264_vm2  ;;  %v3270_v29 = vor.u32 1.1754944e-38, %v3269_v11  ;;  %8876 = vst [vmem:[#allocation53_spill] sm:$0xff] %v7624_v2 }
 0x4cf   : > { %v2959_v28 = vmul.f32 %v7537_v6, %v2958_v33  ;;  %vm2962_vm5 = vweird.f32 %v7537_v6  ;;  %v2965_v38 = vand.u32 2147483647, %v7480_v41  ;;  %4268 = vrsqrt.f32 %v8875_v25  ;;  %v8877_v33 = vld [vmem:[#allocation90_spill] sm:$0xff] }
 0x4d0   : > { %v2541_v40 = vcvt.s32.f32 %v2539_v19  ;;  %v3266_v15 = vsel %vm3265_vm0, %v4261_v4, %v3262_v46  ;;  %vm3268_vm8 = vcmp.eq.f32.partialorder %v3267_v1, 8.507059e+37  ;;  %v7622_v44 = vpop.eup %4264  ;;  %vm2961_vm7 = vweird.f32 %v7480_v41  ;;  %v8879_v19 = vld [vmem:[#allocation83_spill] sm:$0xff]  ;;  %vm7667_vm0 = vmor %vm1316_vm12, %vm1317_vm9 }
 0x4d1   : > { %v3271_v23 = vsel %vm3268_vm8, %v3270_v29, %v3266_v15  ;;  %v2960_v48 = vadd.f32 %v7537_v6, %v2959_v28  ;;  %v2912_v11 = vmul.f32 %v7613_v9, %v7561_v37  ;;  %vm2545_vm4 = vcmp.eq.f32.partialorder %v8877_v33, %v7624_v2  ;;  %vm2963_vm1 = vmor %vm2961_vm7, %vm2962_vm5  ;;  %v8881_v28 = vld [vmem:[#allocation31_spill] sm:$0xff] }
 0x4d2   : > { %v3400_v32 = vmul.f32 %v3271_v23, %v8878_v42  ;;  %v3432_v4 = vmul.f32 %v3271_v23, %v8879_v19  ;;  %v2968_v46 = vor.u32 1.1754944e-38, %v2967_v16  ;;  %v7636_v1 = vpop.eup %4266  ;;  %v2546_v15 = vsel %vm2545_vm4, %v2541_v40, inf  ;;  %v8883_v33 = vld [vmem:[#allocation39_spill] sm:$0xff] }
 0x4d3   : > { %v7639_v29 = vmul.f32 %v3271_v23, %v7478_v54  ;;  %v2964_v41 = vsel %vm2963_vm1, %v7537_v6, %v2960_v48  ;;  %vm2966_vm15 = vcmp.eq.f32.partialorder %v2965_v38, 8.507059e+37  ;;  %vm8882_vm6 = vcmp.eq.s32.totalorder %v4563_v39, %v8881_v28  ;;  %v8885_v40 = vld [vmem:[#allocation91_spill] sm:$0xff]  ;;  %v8887_v54 = vld [vmem:[#allocation60_spill] sm:$0xff] }
 0x4d4   : > { %2547 = vmin.xlane.f32.xlu0 %v2546_v15  ;;  %v3416_v42 = vsel %vm8882_vm6, %v3400_v32, 0.0  ;;  %vm8884_vm2 = vcmp.eq.s32.totalorder %v4563_v39, %v8883_v33  ;;  %v7648_v2 = vsel %vm2966_vm15, %v2968_v46, %v2964_v41  ;;  %v2115_v16 = vadd.f32 %v8863_v27, %v2114_v59  ;;  %v8888_v32 = vld [vmem:[#allocation92_spill] sm:$0xff] }
 0x4d5   : > { %8880 = vst [vmem:[#allocation23_spill] sm:$0xff] %v7639_v29  ;;  %v3448_v19 = vsel %vm8884_vm2, %v3432_v4, 0.0  ;;  %v2464_v8 = vand.u32 65535, %v8885_v40  ;;  %v7656_v6 = vadd.f32 %v8887_v54, %v7648_v2  ;;  %v2122_v38 = vand.u32 2147483648, %v8862_v20  ;;  %v7659_v48 = vpop.eup %4268 }
 0x4d6   : > { %v7652_v23 = vadd.f32 %v3448_v19, %v3416_v42  ;;  %vm1128_vm10 = vcmp.eq.f32.partialorder %v8864_v57, inf  ;;  %v2479_v4 = vand.u32 65535, %v8888_v32  ;;  %vm2116_vm5 = vweird.f32 %v8862_v20  ;;  %v7676_v42 = vpop.xlane.xlu1 %2468  ;;  %v7704_v56 = vpop.xlane.xlu2 %2483 }
 0x4d7   : > { %v2120_v46 = vand.u32 2147483647, %v8862_v20  ;;  %v2913_v15 = vsub.f32 1.0, %v2912_v11  ;;  %v1112_v41 = vmul.f32 0.5, %v7589_v61  ;;  %v1922_v28 = vmul.f32 %v7622_v44, %v8872_v52  ;;  %vm7687_vm12 = vmor %vm2116_vm5, %vm2117_vm14  ;;  %v8896_v61 = vld [vmem:[#allocation37_spill] sm:$0xff]  ;;  %8898 = vst [vmem:[#allocation24_spill] sm:$0xff] %v7704_v56 }
 0x4d8   : > { %8886 = vst [vmem:[#allocation17_spill] sm:$0xff] %v7652_v23  ;;  %4270 = vrcp.f32 %v7656_v6  ;;  %v8891_v33 = vand.u32 2147483647, %v8871_v53  ;;  %vm2470_vm8 = vcmp.eq.f32.partialorder %v8896_v61, %v7676_v42  ;;  %v1319_v11 = vsel %vm7667_vm0, %v8870_v60, %v7609_v22  ;;  %v8899_v22 = vld [vmem:[#allocation94_spill] sm:$0xff] }
 0x4d9   : > { %v8897_v40 = vand.u32 2147483648, %v8871_v53  ;;  %v2119_v32 = vsel %vm7687_vm12, %v8863_v27, %v2115_v16  ;;  %v2123_v23 = vor.u32 1.1754944e-38, %v2122_v38  ;;  %v2914_v29 = vmul.f32 %v7613_v9, %v2913_v15  ;;  %v8900_v15 = vld [vmem:[#allocation34_spill] sm:$0xff] }
 0x4da   : > { %vm7681_vm9 = vcmp.eq.f32.partialorder %v8891_v33, 8.507059e+37  ;;  %v2466_v33 = vcvt.s32.f32 %v2464_v8  ;;  %v2922_v5 = vand.u32 2147483648, %v7561_v37  ;;  %v2481_v61 = vcvt.s32.f32 %v2479_v4 }
 0x4db   : > { %v1323_v54 = vor.u32 1.1754944e-38, %v8897_v40  ;;  %vm2121_vm14 = vcmp.eq.f32.partialorder %v2120_v46, 8.507059e+37  ;;  %vm2917_vm7 = vweird.f32 %v7613_v9  ;;  %v2920_v60 = vand.u32 2147483647, %v7561_v37 }
 0x4dc   : > { %v1923_v53 = vmul.f32 %v7622_v44, %v1922_v28  ;;  %vm2485_vm4 = vcmp.eq.f32.partialorder %v8899_v22, %v7704_v56  ;;  %v2471_v27 = vsel %vm2470_vm8, %v2466_v33, inf  ;;  %v7711_v8 = vsel %vm2121_vm14, %v2123_v23, %v2119_v32  ;;  %v8902_v56 = vld [vmem:[#allocation58_spill] sm:$0xff] }
 0x4dd   : > { %v2722_v16 = vmul.f32 %v7659_v48, %v8875_v25  ;;  %2472 = vmin.xlane.f32.xlu0 %v2471_v27  ;;  %v2486_v38 = vsel %vm2485_vm4, %v2481_v61, inf  ;;  %v2915_v4 = vadd.f32 %v7613_v9, %v2914_v29  ;;  %vm2916_vm1 = vweird.f32 %v7561_v37 }
 0x4de   : > { %v4271_v59 = vpop.eup %4270  ;;  %v1910_v46 = vmul.f32 %v7636_v1, %v8874_v14  ;;  %4272 = vrsqrt.f32 %v8900_v15  ;;  %2487 = vmin.xlane.f32.xlu1 %v2486_v38  ;;  %v7722_v23 = vsel %vm7681_vm9, %v1323_v54, %v1319_v11  ;;  %vm2918_vm15 = vmor %vm2916_vm1, %vm2917_vm7  ;;  %v2923_v28 = vor.u32 1.1754944e-38, %v2922_v5 }
 0x4df   : > { %v3229_v20 = vmul.f32 %v4271_v59, %v7656_v6  ;;  %v2919_v29 = vsel %vm2918_vm15, %v7613_v9, %v2915_v4  ;;  %vm2921_vm6 = vcmp.eq.f32.partialorder %v2920_v60, 8.507059e+37  ;;  %v3123_v37 = vadd.f32 %v7711_v8, %v7722_v23 }
 0x4e0   : > { %vm1130_vm2 = vcmp.eq.f32.partialorder %v8864_v57, 0.0  ;;  %v1924_v40 = vmul.f32 0.5, %v1923_v53  ;;  %v7731_v32 = vsel %vm2921_vm6, %v2923_v28, %v2919_v29  ;;  %v1131_v19 = vand.u32 2147483648, %v8864_v57 }
 0x4e1   : > { %v2723_v11 = vmul.f32 %v7659_v48, %v2722_v16  ;;  %v3230_v54 = vsub.f32 1.0, %v3229_v20  ;;  %v7736_v5 = vadd.f32 %v3123_v37, %v7731_v32  ;;  %v1129_v9 = vsel %vm1128_vm10, %v8864_v57, %v7582_v12 }
 0x4e2   : > { %v1113_v33 = vsub.f32 1.5, %v1112_v41  ;;  %v1911_v61 = vmul.f32 %v7636_v1, %v1910_v46  ;;  %v3239_v60 = vand.u32 2147483648, %v7656_v6  ;;  %vm3234_vm0 = vweird.f32 %v4271_v59 }
 0x4e3   : > { %v3231_v53 = vmul.f32 %v4271_v59, %v3230_v54  ;;  %v3237_v22 = vand.u32 2147483647, %v7656_v6  ;;  %4274 = vrcp.f32 %v7736_v5  ;;  %v1925_v16 = vsub.f32 1.5, %v1924_v40 }
 0x4e4   : > { %v7746_v27 = vpop.eup %4272  ;;  %v2724_v38 = vmul.f32 0.5, %v2723_v11  ;;  %vm3233_vm5 = vweird.f32 %v7656_v6  ;;  %v1114_v12 = vmul.f32 %v8850_v7, %v1113_v33  ;;  %v1132_v41 = vsel %vm1130_vm2, %v1131_v19, %v1129_v9 }
 0x4e5   : > { %v3232_v4 = vadd.f32 %v4271_v59, %v3231_v53  ;;  %vm3235_vm10 = vmor %vm3233_vm5, %vm3234_vm0  ;;  %v3240_v46 = vor.u32 1.1754944e-38, %v3239_v60  ;;  %v1912_v28 = vmul.f32 0.5, %v1911_v61  ;;  %v2710_v20 = vmul.f32 %v7746_v27, %v8900_v15  ;;  %v8901_v53 = vld [vmem:[#allocation59_spill] sm:$0xff]  ;;  %v8903_v61 = vld [vmem:[#allocation28_spill] sm:$0xff] }
 0x4e6   : > { %vm3238_vm9 = vcmp.eq.f32.partialorder %v3237_v22, 8.507059e+37  ;;  %v1926_v37 = vmul.f32 %v7622_v44, %v1925_v16  ;;  %v2725_v54 = vsub.f32 1.5, %v2724_v38  ;;  %v1115_v19 = vmul.f32 %v1114_v12, %v8849_v50 }
 0x4e7   : > { %v3236_v29 = vsel %vm3235_vm10, %v4271_v59, %v3232_v4  ;;  %vm1116_vm12 = vcmp.eq.f32.partialorder %v8849_v50, inf  ;;  %v7762_v9 = vmax.f32 %v1132_v41, 1e-10  ;;  %v1913_v33 = vsub.f32 1.5, %v1912_v28 }
 0x4e8   : > { %v3241_v40 = vsel %vm3238_vm9, %v3240_v46, %v3236_v29  ;;  %v2711_v44 = vmul.f32 %v7746_v27, %v2710_v20  ;;  %vm8904_vm8 = vcmp.eq.s32.totalorder %v4563_v39, %v8903_v61  ;;  %v1927_v22 = vmul.f32 %v1926_v37, %v8872_v52 }
 0x4e9   : > { %v4275_v11 = vpop.eup %4274  ;;  %v3398_v6 = vmul.f32 %v3241_v40, %v8901_v53  ;;  %v3430_v7 = vmul.f32 %v3241_v40, %v8902_v56  ;;  %v7758_v57 = vmul.f32 %v3241_v40, %v7648_v2  ;;  %v8905_v56 = vld [vmem:[#allocation64_spill] sm:$0xff]  ;;  %vm1118_vm7 = vcmp.eq.f32.partialorder %v8849_v50, 0.0 }
 0x4ea   : > { %v3184_v59 = vmul.f32 %v4275_v11, %v7736_v5  ;;  %vm8906_vm14 = vcmp.eq.s32.totalorder %v4563_v39, %v8905_v56  ;;  %v1119_v4 = vand.u32 2147483648, %v8849_v50  ;;  %v2726_v12 = vmul.f32 %v7659_v48, %v2725_v54 }
 0x4eb   : > { %v3414_v60 = vsel %vm8904_vm8, %v3398_v6, 0.0  ;;  %v3446_v2 = vsel %vm8906_vm14, %v3430_v7, 0.0  ;;  %v3194_v41 = vand.u32 2147483648, %v7736_v5  ;;  %v1117_v46 = vsel %vm1116_vm12, %v8849_v50, %v1115_v19 }
 0x4ec   : > { %v7773_v16 = vadd.f32 %v3446_v2, %v3414_v60  ;;  %v3185_v38 = vsub.f32 1.0, %v3184_v59  ;;  %vm3189_vm4 = vweird.f32 %v4275_v11  ;;  %v3192_v20 = vand.u32 2147483647, %v7736_v5 }
 0x4ed   : > { %vm1928_vm1 = vcmp.eq.f32.partialorder %v8872_v52, inf  ;;  %v1914_v29 = vmul.f32 %v7636_v1, %v1913_v33  ;;  %v2712_v37 = vmul.f32 0.5, %v2711_v44  ;;  %4276 = vrcp.f32 %v7762_v9 }
 0x4ee   : > { %v3186_v28 = vmul.f32 %v4275_v11, %v3185_v38  ;;  %v1929_v40 = vsel %vm1928_vm1, %v8872_v52, %v1927_v22  ;;  %4278 = vrsqrt.f32 %v7394_v47  ;;  %vm3188_vm15 = vweird.f32 %v7736_v5  ;;  %v8907_v38 = vld [vmem:[#allocation32_spill] sm:$0xff] }
 0x4ef   : > { %v1931_v54 = vand.u32 2147483648, %v8872_v52  ;;  %v2727_v53 = vmul.f32 %v2726_v12, %v8875_v25  ;;  %vm3190_vm6 = vmor %vm3188_vm15, %vm3189_vm4  ;;  %v3195_v6 = vor.u32 1.1754944e-38, %v3194_v41  ;;  %v1120_v7 = vsel %vm1118_vm7, %v1119_v4, %v1117_v46 }
 0x4f0   : > { %v3187_v48 = vadd.f32 %v4275_v11, %v3186_v28  ;;  %vm1930_vm2 = vcmp.eq.f32.partialorder %v8872_v52, 0.0  ;;  %vm3193_vm0 = vcmp.eq.f32.partialorder %v3192_v20, 8.507059e+37  ;;  %v1915_v59 = vmul.f32 %v1914_v29, %v8874_v14 }
 0x4f1   : > { %v1932_v19 = vsel %vm1930_vm2, %v1931_v54, %v1929_v40  ;;  %v2713_v33 = vsub.f32 1.5, %v2712_v37  ;;  %vm2728_vm5 = vcmp.eq.f32.partialorder %v8875_v25, inf  ;;  %v7801_v56 = vmax.f32 %v1120_v7, 1e-10 }
 0x4f2   : > { %v3191_v1 = vsel %vm3190_vm6, %v4275_v11, %v3187_v48  ;;  %v2729_v52 = vsel %vm2728_vm5, %v8875_v25, %v2727_v53  ;;  %v7804_v2 = vmax.f32 %v1932_v19, 1e-10  ;;  %v2731_v22 = vand.u32 2147483648, %v8875_v25 }
 0x4f3   : > { %v3196_v44 = vsel %vm3193_vm0, %v3195_v6, %v3191_v1  ;;  %v7799_v50 = vpop.eup %4276  ;;  %vm8908_vm10 = vcmp.eq.s32.totalorder %v4563_v39, %v8907_v38  ;;  %vm1916_vm12 = vcmp.eq.f32.partialorder %v8874_v14, inf  ;;  %vm2730_vm8 = vcmp.eq.f32.partialorder %v8875_v25, 0.0 }
 0x4f4   : > { %v3395_v5 = vmul.f32 %v3196_v44, %v7722_v23  ;;  %v3427_v61 = vmul.f32 %v3196_v44, %v7711_v8  ;;  %v7797_v60 = vmul.f32 %v3196_v44, %v7731_v32  ;;  %v4279_v11 = vpop.eup %4278  ;;  %v8909_v8 = vld [vmem:[#allocation70_spill] sm:$0xff]  ;;  %v2714_v4 = vmul.f32 %v7746_v27, %v2713_v33 }
 0x4f5   : > { %vm8910_vm9 = vcmp.eq.s32.totalorder %v4563_v39, %v8909_v8  ;;  %v1917_v41 = vsel %vm1916_vm12, %v8874_v14, %v1915_v59  ;;  %v2732_v46 = vsel %vm2730_vm8, %v2731_v22, %v2729_v52  ;;  %v1342_v28 = vmul.f32 %v7799_v50, %v7762_v9 }
 0x4f6   : > { %v3411_v23 = vsel %vm8908_vm10, %v3395_v5, 0.0  ;;  %v3443_v32 = vsel %vm8910_vm9, %v3427_v61, 0.0  ;;  %4280 = vrcp.f32 %v7801_v56  ;;  %v1919_v20 = vand.u32 2147483648, %v8874_v14 }
 0x4f7   : > { %v7816_v12 = vadd.f32 %v3443_v32, %v3411_v23  ;;  %v2674_v29 = vmul.f32 %v4279_v11, %v7394_v47  ;;  %4282 = vrcp.f32 %v7804_v2  ;;  %vm1918_vm14 = vcmp.eq.f32.partialorder %v8874_v14, 0.0 }
 0x4f8   : > { %v1920_v25 = vsel %vm1918_vm14, %v1919_v20, %v1917_v41  ;;  %v7826_v27 = vmax.f32 %v2732_v46, 1e-10  ;;  %v2715_v37 = vmul.f32 %v2714_v4, %v8900_v15  ;;  %v1343_v40 = vsub.f32 1.0, %v1342_v28 }
 0x4f9   : > { %v2675_v48 = vmul.f32 %v4279_v11, %v2674_v29  ;;  %v7829_v54 = vmax.f32 %v1920_v25, 1e-10  ;;  %vm2716_vm7 = vcmp.eq.f32.partialorder %v8900_v15, inf  ;;  %v2719_v14 = vand.u32 2147483648, %v8900_v15 }
 0x4fa   : > { %4284 = vrcp.f32 %v7826_v27  ;;  %v2717_v6 = vsel %vm2716_vm7, %v8900_v15, %v2715_v37  ;;  %v1344_v1 = vmul.f32 %v7799_v50, %v1343_v40  ;;  %vm2718_vm4 = vcmp.eq.f32.partialorder %v8900_v15, 0.0 }
 0x4fb   : > { %4286 = vrsqrt.f32 %v7507_v35  ;;  %v2676_v19 = vmul.f32 0.5, %v2675_v48  ;;  %vm1346_vm1 = vweird.f32 %v7762_v9  ;;  %v2720_v59 = vsel %vm2718_vm4, %v2719_v14, %v2717_v6  ;;  %v2638_v44 = vpop.xlane.xlu1 %2637 }
 0x4fc   : > { %v7832_v53 = vpop.eup %4280  ;;  %4288 = vrcp.f32 %v7829_v54  ;;  %vm1347_vm15 = vweird.f32 %v7799_v50  ;;  %v1352_v5 = vand.u32 2147483648, %v7762_v9  ;;  %v1345_v52 = vadd.f32 %v7799_v50, %v1344_v1 }
 0x4fd   : > { %v7836_v7 = vpop.eup %4282  ;;  %v1327_v33 = vmul.f32 %v7832_v53, %v7801_v56  ;;  %v1350_v15 = vand.u32 2147483647, %v7762_v9  ;;  %v7854_v38 = vmax.f32 %v2720_v59, 1e-10  ;;  %v2677_v23 = vsub.f32 1.5, %v2676_v19  ;;  %vm7856_vm6 = vmor %vm1346_vm1, %vm1347_vm15 }
 0x4fe   : > { %v2142_v61 = vmul.f32 %v7836_v7, %v7804_v2  ;;  %v2640_v4 = vcvt.f32.s32 %v7236_v18  ;;  %v1353_v46 = vor.u32 1.1754944e-38, %v1352_v5  ;;  %v2639_v29 = vcvt.f32.s32 %v2638_v44 }
 0x4ff   : > { %v1328_v41 = vsub.f32 1.0, %v1327_v33  ;;  %v1349_v9 = vsel %vm7856_vm6, %v7799_v50, %v1345_v52  ;;  %vm1351_vm2 = vcmp.eq.f32.partialorder %v1350_v15, 8.507059e+37  ;;  %v1337_v25 = vand.u32 2147483648, %v7801_v56 }
 0x500   : > { %v7852_v22 = vpop.eup %4284  ;;  %v2143_v28 = vsub.f32 1.0, %v2142_v61  ;;  %4290 = vrcp.f32 %v7854_v38  ;;  %v2678_v37 = vmul.f32 %v4279_v11, %v2677_v23  ;;  %v2641_v48 = vshll.u32 %v2640_v4, 16 }
 0x501   : > { %v7860_v32 = vpop.eup %4286  ;;  %v2942_v18 = vmul.f32 %v7852_v22, %v7826_v27  ;;  %v1329_v6 = vmul.f32 %v7832_v53, %v1328_v41  ;;  %v7875_v14 = vsel %vm1351_vm2, %v1353_v46, %v1349_v9  ;;  %v2150_v50 = vand.u32 2147483647, %v7804_v2 }
 0x502   : > { %v7863_v20 = vpop.eup %4288  ;;  %v2686_v40 = vmul.f32 %v7860_v32, %v7507_v35  ;;  %v2144_v1 = vmul.f32 %v7836_v7, %v2143_v28  ;;  %v2655_v11 = vcvt.f32.s32 %v7306_v36  ;;  %v2642_v59 = vadd.s32 %v2641_v48, %v2639_v29 }
 0x503   : > { %v2127_v19 = vmul.f32 %v7863_v20, %v7829_v54  ;;  %v1335_v33 = vand.u32 2147483647, %v7801_v56  ;;  %v7883_v44 = vor.u32 1.1754944e-38, %v1337_v25  ;;  %v2679_v5 = vmul.f32 %v2678_v37, %v7394_v47 }
 0x504   : > { %v2687_v61 = vmul.f32 %v7860_v32, %v2686_v40  ;;  %v2943_v15 = vsub.f32 1.0, %v2942_v18  ;;  %vm1332_vm0 = vweird.f32 %v7832_v53  ;;  %v2595_v23 = vcvt.f32.s32 %v7286_v17 }
 0x505   : > { %vm2146_vm5 = vweird.f32 %v7804_v2  ;;  %v2152_v8 = vand.u32 2147483648, %v7804_v2  ;;  %v7892_v36 = vadd.f32 %v7832_v53, %v1329_v6  ;;  %vm1331_vm10 = vweird.f32 %v7801_v56 }
 0x506   : > { %v7895_v4 = vpop.eup %4290  ;;  %v2145_v41 = vadd.f32 %v7836_v7, %v2144_v1  ;;  %vm2147_vm9 = vweird.f32 %v7836_v7  ;;  %vm7899_vm12 = vcmp.eq.f32.partialorder %v2150_v50, 8.507059e+37  ;;  %v2128_v17 = vsub.f32 1.0, %v2127_v19  ;;  %vm7942_vm2 = vmor %vm1331_vm10, %vm1332_vm0 }
 0x507   : > { %v2593_v52 = vpop.xlane.xlu1 %2592  ;;  %v2656_v28 = vshll.u32 %v2655_v11, 16  ;;  %vm2680_vm8 = vcmp.eq.f32.partialorder %v7394_v47, inf  ;;  %vm3486_vm14 = vcmp.eq.s32.totalorder %v4563_v39, %v2642_v59  ;;  %v2688_v37 = vmul.f32 0.5, %v2687_v61  ;;  %vm7910_vm7 = vmor %vm2146_vm5, %vm2147_vm9 }
 0x508   : > { %v2594_v9 = vcvt.f32.s32 %v2593_v52  ;;  %v2681_v25 = vsel %vm2680_vm8, %v7394_v47, %v2679_v5  ;;  %v2944_v18 = vmul.f32 %v7852_v22, %v2943_v15  ;;  %v2596_v48 = vshll.u32 %v2595_v23, 16 }
 0x509   : > { %v2683_v6 = vand.u32 2147483648, %v7394_v47  ;;  %v2153_v50 = vor.u32 1.1754944e-38, %v2152_v8  ;;  %v2927_v19 = vmul.f32 %v7895_v4, %v7854_v38  ;;  %vm2682_vm4 = vcmp.eq.f32.partialorder %v7394_v47, 0.0 }
 0x50a   : > { %v3518_v59 = vsel %vm3486_vm14, %v7264_v62, 0.0  ;;  %v2149_v5 = vsel %vm7910_vm7, %v7836_v7, %v2145_v41  ;;  %v2597_v52 = vadd.s32 %v2596_v48, %v2594_v9  ;;  %v2129_v15 = vmul.f32 %v7863_v20, %v2128_v17 }
 0x50b   : > { %v2684_v61 = vsel %vm2682_vm4, %v2683_v6, %v2681_v25  ;;  %v7922_v2 = vadd.f32 %v3518_v59, %v7280_v45  ;;  %v2689_v23 = vsub.f32 1.5, %v2688_v37  ;;  %v2945_v8 = vadd.f32 %v7852_v22, %v2944_v18 }
 0x50c   : > { %v2653_v29 = vpop.xlane.xlu2 %2652  ;;  %vm2947_vm15 = vweird.f32 %v7852_v22  ;;  %v2670_v62 = vcvt.f32.s32 %v7366_v63  ;;  %v2952_v7 = vand.u32 2147483648, %v7826_v27  ;;  %v2928_v41 = vsub.f32 1.0, %v2927_v19 }
 0x50d   : > { %v2654_v40 = vcvt.f32.s32 %v2653_v29  ;;  %vm2946_vm6 = vweird.f32 %v7826_v27  ;;  %v2950_v17 = vand.u32 2147483647, %v7826_v27  ;;  %vm3483_vm5 = vcmp.eq.s32.totalorder %v4563_v39, %v2597_v52 }
 0x50e   : > { %vm7951_vm9 = vmor %vm2946_vm6, %vm2947_vm15  ;;  %v1334_v27 = vsel %vm7942_vm2, %v7832_v53, %v7892_v36  ;;  %v2135_v29 = vand.u32 2147483647, %v7829_v54  ;;  %v2690_v9 = vmul.f32 %v7860_v32, %v2689_v23  ;;  %vm2132_vm0 = vweird.f32 %v7863_v20 }
 0x50f   : > { %v2657_v11 = vadd.s32 %v2656_v28, %v2654_v40  ;;  %v7931_v28 = vmax.f32 %v2684_v61, 1e-10  ;;  %v2949_v25 = vsel %vm7951_vm9, %v7852_v22, %v2945_v8  ;;  %v2137_v46 = vand.u32 2147483648, %v7829_v54 }
 0x510   : > { %v2671_v37 = vshll.u32 %v2670_v62, 16  ;;  %v2953_v18 = vor.u32 1.1754944e-38, %v2952_v7  ;;  %v2130_v48 = vadd.f32 %v7863_v20, %v2129_v15  ;;  %v2929_v6 = vmul.f32 %v7895_v4, %v2928_v41 }
 0x511   : > { %vm3487_vm1 = vcmp.eq.s32.totalorder %v4563_v39, %v2657_v11  ;;  %4292 = vrcp.f32 %v7931_v28  ;;  %v3515_v32 = vsel %vm3483_vm5, %v7319_v43, 0.0  ;;  %vm2951_vm10 = vcmp.eq.f32.partialorder %v2950_v17, 8.507059e+37 }
 0x512   : > { %v3519_v47 = vsel %vm3487_vm1, %v7168_v51, 0.0  ;;  %v7949_v51 = vsel %vm7899_vm12, %v2153_v50, %v2149_v5  ;;  %v7973_v22 = vadd.f32 %v3515_v32, %v7337_v30  ;;  %v7975_v36 = vsel %vm2951_vm10, %v2953_v18, %v2949_v25 }
 0x513   : > { %v7934_v45 = vadd.f32 %v3519_v47, %v7187_v58  ;;  %v3125_v1 = vadd.f32 %v7949_v51, %v7875_v14  ;;  %vm7981_vm12 = vcmp.eq.f32.partialorder %v1335_v33, 8.507059e+37  ;;  %vm2131_vm8 = vweird.f32 %v7829_v54 }
 0x514   : > { %v2580_v19 = vcvt.f32.s32 %v7368_v13  ;;  %v2691_v43 = vmul.f32 %v2690_v9, %v7507_v35  ;;  %vm7990_vm14 = vmor %vm2131_vm8, %vm2132_vm0  ;;  %vm7994_vm7 = vcmp.eq.f32.partialorder %v2135_v29, 8.507059e+37  ;;  %v2434_v56 = vand.u32 65535, %v7413_v34 }
 0x515   : > { %v2134_v54 = vsel %vm7990_vm14, %v7863_v20, %v2130_v48  ;;  %v2930_v13 = vadd.f32 %v7895_v4, %v2929_v6  ;;  %vm2932_vm4 = vweird.f32 %v7895_v4  ;;  %v8006_v5 = vadd.f32 %v3125_v1, %v7975_v36 }
 0x516   : > { %v2138_v61 = vor.u32 1.1754944e-38, %v2137_v46  ;;  %v2937_v52 = vand.u32 2147483648, %v7854_v38  ;;  %vm2692_vm15 = vcmp.eq.f32.partialorder %v7507_v35, inf  ;;  %vm2931_vm6 = vweird.f32 %v7854_v38 }
 0x517   : > { %v2668_v40 = vpop.xlane.xlu0 %2667  ;;  %v2935_v20 = vand.u32 2147483647, %v7854_v38  ;;  %v4293_v15 = vpop.eup %4292  ;;  %v2581_v23 = vshll.u32 %v2580_v19, 16  ;;  %v2693_v8 = vsel %vm2692_vm15, %v7507_v35, %v2691_v43  ;;  %vm8021_vm2 = vmor %vm2931_vm6, %vm2932_vm4  ;;  %v2436_v38 = vcvt.s32.f32 %v2434_v56 }
 0x518   : > { %v2669_v53 = vcvt.f32.s32 %v2668_v40  ;;  %v8017_v47 = vsel %vm7994_vm7, %v2138_v61, %v2134_v54  ;;  %v2934_v17 = vsel %vm8021_vm2, %v7895_v4, %v2930_v13  ;;  %vm2694_vm5 = vcmp.eq.f32.partialorder %v7507_v35, 0.0 }
 0x519   : > { %v2578_v33 = vpop.xlane.xlu1 %2577  ;;  %4294 = vrcp.f32 %v8006_v5  ;;  %v2938_v58 = vor.u32 1.1754944e-38, %v2937_v52  ;;  %vm2936_vm0 = vcmp.eq.f32.partialorder %v2935_v20, 8.507059e+37  ;;  %v2882_v9 = vmul.f32 %v4293_v15, %v7931_v28  ;;  %v8929_v52 = vld [vmem:[#allocation61_spill] sm:$0xff]  ;;  %v8930_v20 = vld [vmem:[#allocation12_spill] sm:$0xff] }
 0x51a   : > { %v2672_v11 = vadd.s32 %v2671_v37, %v2669_v53  ;;  %v2579_v41 = vcvt.f32.s32 %v2578_v33  ;;  %v2625_v40 = vcvt.f32.s32 %v7465_v0  ;;  %v2892_v48 = vand.u32 2147483648, %v7931_v28 }
 0x51b   : > { %v8043_v4 = vsel %vm2936_vm0, %v2938_v58, %v2934_v17  ;;  %vm2887_vm10 = vweird.f32 %v4293_v15  ;;  %v2610_v32 = vcvt.f32.s32 %v7485_v21  ;;  %vm2886_vm8 = vweird.f32 %v7931_v28 }
 0x51c   : > { %vm3488_vm1 = vcmp.eq.s32.totalorder %v4563_v39, %v2672_v11  ;;  %v2626_v0 = vshll.u32 %v2625_v40, 16  ;;  %vm2888_vm14 = vmor %vm2886_vm8, %vm2887_vm10  ;;  %v2893_v43 = vor.u32 1.1754944e-38, %v2892_v48  ;;  %v2505_v21 = vcvt.f32.s32 %v7438_v26 }
 0x51d   : > { %v3520_v34 = vsel %vm3488_vm1, %v7203_v31, 0.0  ;;  %v2695_v31 = vand.u32 2147483648, %v7507_v35  ;;  %v8041_v35 = vsel %vm7981_vm12, %v7883_v44, %v1334_v27  ;;  %v2890_v27 = vand.u32 2147483647, %v7931_v28 }
 0x51e   : > { %v3536_v62 = vadd.f32 %v3520_v34, %v7222_v55  ;;  %v3124_v37 = vadd.f32 %v8017_v47, %v8041_v35  ;;  %v2611_v28 = vshll.u32 %v2610_v32, 16  ;;  %v2535_v13 = vcvt.f32.s32 %v7527_v24 }
 0x51f   : > { %v2696_v29 = vsel %vm2694_vm5, %v2695_v31, %v2693_v8  ;;  %v8055_v53 = vpop.eup %4294  ;;  %vm2891_vm7 = vcmp.eq.f32.partialorder %v2890_v27, 8.507059e+37  ;;  %v8932_v8 = vld [vmem:[#allocation11_spill] sm:$0xff]  ;;  %v8084_v17 = vshll.u32 %v2505_v21, 16  ;;  %vm3218_vm15 = vweird.f32 %v8006_v5 }
 0x520   : > { %v3544_v63 = vpack.c.bf16 %v3536_v62, %v7934_v45  ;;  %v2582_v45 = vadd.s32 %v2581_v23, %v2579_v41  ;;  %v8048_v18 = vmax.f32 %v2696_v29, 1e-10  ;;  %v8052_v6 = vadd.f32 %v3124_v37, %v8043_v4  ;;  %v8931_v23 = vld [vmem:[#allocation52_spill] sm:$0xff] }
 0x521   : > { %v8030_v55 = vpop.xlane.xlu2 %2438  ;;  %v3214_v11 = vmul.f32 %v8055_v53, %v8006_v5  ;;  %v2520_v26 = vcvt.f32.s32 %v8931_v23  ;;  %vm3219_vm6 = vweird.f32 %v8055_v53 }
 0x522   : > { %vm2440_vm9 = vcmp.eq.f32.partialorder %v7429_v3, %v8030_v55  ;;  %v3570_v46 = vsel %vm752_vm3, %v3544_v63, 0  ;;  %v2883_v3 = vsub.f32 1.0, %v2882_v9  ;;  %vm3482_vm12 = vcmp.eq.s32.totalorder %v4563_v39, %v2582_v45  ;;  %v8935_v45 = vld [vmem:[#allocation15_spill] sm:$0xff] }
 0x523   : > { %v2441_v25 = vsel %vm2440_vm9, %v2436_v38, inf  ;;  %3572 = vmatpush.bf16.xpose.msra.mxu1 %v3570_v46  ;;  %4296 = vrcp.f32 %v8048_v18  ;;  %v3514_v56 = vsel %vm3482_vm12, %v7500_v10, 0.0  ;;  %v3215_v7 = vsub.f32 1.0, %v3214_v11 }
 0x524   : > { %2442 = vmin.xlane.f32.xlu2 %v2441_v25  ;;  %v2884_v44 = vmul.f32 %v4293_v15, %v2883_v3  ;;  %4298 = vrcp.f32 %v8052_v6  ;;  %v8070_v61 = vadd.f32 %v3514_v56, %v7521_v49  ;;  %v8933_v49 = vld [vmem:[#allocation10_spill] sm:$0xff]  ;;  %v2536_v63 = vshll.u32 %v2535_v13, 16 }
 0x525   : > { %v8088_v29 = vshll.u32 %v2520_v26, 16  ;;  %v8934_v25 = vld [vmem:[#allocation54_spill] sm:$0xff]  ;;  %v3216_v3 = vmul.f32 %v8055_v53, %v3215_v7  ;;  %vm2901_vm9 = vweird.f32 %v8048_v18 }
 0x526   : > { %v2885_v50 = vadd.f32 %v4293_v15, %v2884_v44  ;;  %v2449_v46 = vand.u32 65535, %v8934_v25  ;;  %v8936_v44 = vld [vmem:[#allocation5_spill] sm:$0xff] }
 0x528   : > { %v2623_v1 = vpop.xlane.xlu0 %2622  ;;  %v2889_v30 = vsel %vm2888_vm14, %v4293_v15, %v2885_v50  ;;  %v2565_v15 = vcvt.f32.s32 %v8930_v20  ;;  %v3222_v50 = vand.u32 2147483647, %v8006_v5  ;;  %v2451_v56 = vcvt.s32.f32 %v2449_v46  ;;  %v8940_v46 = vld [vmem:[#allocation53_spill] sm:$0xff]  ;;  %vm8129_vm14 = vmor %vm3218_vm15, %vm3219_vm6 }
 0x529   : > { %v2624_v19 = vcvt.f32.s32 %v2623_v1  ;;  %v8066_v54 = vsel %vm2891_vm7, %v2893_v43, %v2889_v30  ;;  %v4297_v24 = vpop.eup %4296  ;;  %v2907_v30 = vand.u32 2147483648, %v8048_v18 }
 0x52a   : > { %v8074_v34 = vadd.f32 %v8929_v52, %v8066_v54  ;;  %v8082_v38 = vpop.eup %4298  ;;  %v8086_v58 = vshll.u32 %v2565_v15, 16  ;;  %v2897_v40 = vmul.f32 %v4297_v24, %v8048_v18  ;;  %vm2902_vm2 = vweird.f32 %v4297_v24  ;;  %v8937_v52 = vld [vmem:[#allocation2_spill] sm:$0xff] }
 0x52b   : > { %v2627_v59 = vadd.s32 %v2626_v0, %v2624_v19  ;;  %v3199_v32 = vmul.f32 %v8082_v38, %v8052_v6  ;;  %v2905_v19 = vand.u32 2147483647, %v8048_v18  ;;  %vm2903_vm12 = vmor %vm2901_vm9, %vm2902_vm2  ;;  %v2908_v26 = vor.u32 1.1754944e-38, %v2907_v30  ;;  %v8946_v30 = vld [vmem:[#allocation22_spill] sm:$0xff] }
 0x52c   : > { %v2608_v33 = vpop.xlane.xlu2 %2607  ;;  %4300 = vrcp.f32 %v8074_v34  ;;  %v2898_v0 = vsub.f32 1.0, %v2897_v40  ;;  %vm3158_vm7 = vweird.f32 %v8074_v34  ;;  %vm3204_vm6 = vweird.f32 %v8082_v38 }
 0x52d   : > { %vm3485_vm4 = vcmp.eq.s32.totalorder %v4563_v39, %v2627_v59  ;;  %v2609_v10 = vcvt.f32.s32 %v2608_v33  ;;  %v3200_v20 = vsub.f32 1.0, %v3199_v32  ;;  %vm2906_vm0 = vcmp.eq.f32.partialorder %v2905_v19, 8.507059e+37 }
 0x52e   : > { %v3517_v62 = vsel %vm3485_vm4, %v8932_v8, 0.0  ;;  %v2899_v13 = vmul.f32 %v4297_v24, %v2898_v0  ;;  %v3164_v8 = vand.u32 2147483648, %v8074_v34  ;;  %vm8141_vm4 = vcmp.eq.f32.partialorder %v3222_v50, 8.507059e+37 }
 0x52f   : > { %v2612_v31 = vadd.s32 %v2611_v28, %v2609_v10  ;;  %v3533_v41 = vadd.f32 %v3517_v62, %v8933_v49  ;;  %v3217_v28 = vadd.f32 %v8055_v53, %v3216_v3  ;;  %v3162_v10 = vand.u32 2147483647, %v8074_v34  ;;  %v8938_v62 = vld [vmem:[#allocation6_spill] sm:$0xff] }
 0x530   : > { %v3224_v32 = vand.u32 2147483648, %v8006_v5  ;;  %v8947_v5 = vld [vmem:[#allocation21_spill] sm:$0xff]  ;;  %vm3203_vm2 = vweird.f32 %v8052_v6 }
 0x531   : > { %vm3484_vm1 = vcmp.eq.s32.totalorder %v4563_v39, %v2612_v31  ;;  %v3543_v9 = vpack.c.bf16 %v7922_v2, %v3533_v41  ;;  %v8939_v41 = vld [vmem:[#allocation3_spill] sm:$0xff]  ;;  %vm3163_vm15 = vcmp.eq.f32.partialorder %v3162_v10, 8.507059e+37 }
 0x532   : > { %v3516_v37 = vsel %vm3484_vm1, %v8935_v45, 0.0  ;;  %v4301_v1 = vpop.eup %4300  ;;  %v2550_v45 = vcvt.f32.s32 %v8940_v46 }
 0x533   : > { %v3567_v48 = vsel %vm752_vm3, %v3543_v9, 0  ;;  %v3532_v27 = vadd.f32 %v3516_v37, %v8936_v44  ;;  %v3154_v21 = vmul.f32 %v4301_v1, %v8074_v34  ;;  %vm3159_vm8 = vweird.f32 %v4301_v1  ;;  %v8943_v37 = vld [vmem:[#allocation68_spill] sm:$0xff] }
 0x534   : > { %3573 = vmatpush.bf16.xpose.msra.mxu1 %v3567_v48  ;;  %v3201_v9 = vmul.f32 %v8082_v38, %v3200_v20  ;;  %v3221_v44 = vsel %vm8129_vm14, %v8055_v53, %v3217_v28  ;;  %vm3160_vm1 = vmor %vm3158_vm7, %vm3159_vm8  ;;  %v3207_v20 = vand.u32 2147483647, %v8052_v6 }
 0x535   : > { %v2533_v2 = vpop.xlane.xlu2 %2532  ;;  %v3542_v11 = vpack.c.bf16 %v3532_v27, %v7973_v22  ;;  %v2900_v22 = vadd.f32 %v4297_v24, %v2899_v13  ;;  %v3155_v23 = vsub.f32 1.0, %v3154_v21  ;;  %v2503_v13 = vpop.xlane.xlu1 %2502 }
 0x536   : > { %v2534_v43 = vcvt.f32.s32 %v2533_v2  ;;  %v3165_v2 = vor.u32 1.1754944e-38, %v3164_v8  ;;  %v2504_v8 = vcvt.f32.s32 %v2503_v13 }
 0x537   : > { %v8107_v59 = vpop.xlane.xlu0 %2453  ;;  %v2904_v31 = vsel %vm2903_vm12, %v4297_v24, %v2900_v22  ;;  %v3156_v49 = vmul.f32 %v4301_v1, %v3155_v23  ;;  %v3564_v18 = vsel %vm752_vm3, %v3542_v11, 0  ;;  %v3202_v11 = vadd.f32 %v8082_v38, %v3201_v9 }
 0x538   : > { %v2537_v33 = vadd.s32 %v2536_v63, %v2534_v43  ;;  %vm2455_vm5 = vcmp.eq.f32.partialorder %v8937_v52, %v8107_v59  ;;  %v8122_v25 = vsel %vm2906_vm0, %v2908_v26, %v2904_v31  ;;  %v3209_v52 = vand.u32 2147483648, %v8052_v6  ;;  %v8964_v26 = vld [vmem:[#allocation65_spill] sm:$0xff] }
 0x539   : > { %v2456_v15 = vsel %vm2455_vm5, %v2451_v56, inf  ;;  %v8135_v3 = vadd.f32 %v8943_v37, %v8122_v25  ;;  %v3157_v40 = vadd.f32 %v4301_v1, %v3156_v49  ;;  %v2475_v24 = vcvt.f32.s32 %v7676_v42 }
 0x53a   : > { %vm3479_vm10 = vcmp.eq.s32.totalorder %v4563_v39, %v2537_v33  ;;  %2457 = vmin.xlane.f32.xlu0 %v2456_v15  ;;  %v3225_v33 = vor.u32 1.1754944e-38, %v3224_v32  ;;  %v3210_v9 = vor.u32 1.1754944e-38, %v3209_v52 }
 0x53b   : > { %v3511_v7 = vsel %vm3479_vm10, %v8938_v62, 0.0  ;;  %v3161_v43 = vsel %vm3160_vm1, %v4301_v1, %v3157_v40  ;;  %4302 = vrcp.f32 %v8135_v3  ;;  %vm8173_vm10 = vmor %vm3203_vm2, %vm3204_vm6  ;;  %v8953_v62 = vld [vmem:[#allocation9_spill] sm:$0xff] }
 0x53c   : > { %v8119_v63 = vadd.f32 %v3511_v7, %v8939_v41  ;;  %3574 = vmatpush.bf16.xpose.msra.mxu1 %v3564_v18  ;;  %v3166_v53 = vsel %vm3163_vm15, %v3165_v2, %v3161_v43  ;;  %v3206_v49 = vsel %vm8173_vm10, %v8082_v38, %v3202_v11  ;;  %v8954_v18 = vld [vmem:[#allocation19_spill] sm:$0xff]  ;;  %v8955_v38 = vld [vmem:[#allocation24_spill] sm:$0xff]  ;;  %v2507_v2 = vadd.s32 %v8084_v17, %v2504_v8 }
 0x53d   : > { %v3393_v21 = vmul.f32 %v3166_v53, %v8946_v30  ;;  %v3425_v56 = vmul.f32 %v3166_v53, %v8947_v5  ;;  %v8154_v28 = vmul.f32 %v3166_v53, %v8066_v54  ;;  %v8958_v17 = vld [vmem:[#allocation7_spill] sm:$0xff] }
 0x53e   : > { %v2518_v48 = vpop.xlane.xlu2 %2517  ;;  %vm8959_vm7 = vcmp.eq.s32.totalorder %v4563_v39, %v8958_v17  ;;  %vm3477_vm15 = vcmp.eq.s32.totalorder %v4563_v39, %v2507_v2 }
 0x53f   : > { %v2519_v0 = vcvt.f32.s32 %v2518_v48  ;;  %v2563_v19 = vpop.xlane.xlu0 %2562  ;;  %v3441_v54 = vsel %vm2321_vm13, %v3425_v56, 0.0  ;;  %vm3208_vm13 = vcmp.eq.f32.partialorder %v3207_v20, 8.507059e+37 }
 0x540   : > { %v2564_v34 = vcvt.f32.s32 %v2563_v19  ;;  %v3211_v27 = vsel %vm3208_vm13, %v3210_v9, %v3206_v49  ;;  %v3179_v19 = vand.u32 2147483648, %v8135_v3  ;;  %v8968_v9 = vld [vmem:[#allocation46_spill] sm:$0xff]  ;;  %vm8971_vm13 = vcmask 1042432  }
 0x541   : > { %v2522_v50 = vadd.s32 %v8088_v29, %v2519_v0  ;;  %v8948_v29 = vld [vmem:[#allocation42_spill] sm:$0xff]  ;;  %v4303_v10 = vpop.eup %4302  ;;  %v3177_v0 = vand.u32 2147483647, %v8135_v3  ;;  %v3396_v11 = vmul.f32 %v3211_v27, %v8041_v35  ;;  %v3428_v56 = vmul.f32 %v3211_v27, %v8017_v47 }
 0x542   : > { %v2567_v1 = vadd.s32 %v8086_v58, %v2564_v34  ;;  %vm8949_vm9 = vcmp.eq.s32.totalorder %v4563_v39, %v8948_v29  ;;  %v3226_v58 = vsel %vm8141_vm4, %v3225_v33, %v3221_v44  ;;  %v3169_v46 = vmul.f32 %v4303_v10, %v8135_v3  ;;  %v8956_v34 = vld [vmem:[#allocation20_spill] sm:$0xff] }
 0x543   : > { %vm3478_vm5 = vcmp.eq.s32.totalorder %v4563_v39, %v2522_v50  ;;  %v3409_v15 = vsel %vm8949_vm9, %v3393_v21, 0.0  ;;  %v3397_v40 = vmul.f32 %v3226_v58, %v7875_v14  ;;  %v3429_v48 = vmul.f32 %v3226_v58, %v7949_v51  ;;  %v8960_v21 = vld [vmem:[#allocation23_spill] sm:$0xff] }
 0x544   : > { %vm3481_vm0 = vcmp.eq.s32.totalorder %v4563_v39, %v2567_v1  ;;  %v3510_v23 = vsel %vm3478_vm5, %v7758_v57, 0.0  ;;  %v8177_v6 = vadd.f32 %v3441_v54, %v3409_v15  ;;  %v2551_v57 = vshll.u32 %v2550_v45, 16  ;;  %v8961_v1 = vld [vmem:[#allocation17_spill] sm:$0xff]  ;;  %v8962_v15 = vld [vmem:[#allocation35_spill] sm:$0xff] }
 0x545   : > { %v3513_v7 = vsel %vm3481_vm0, %v8953_v62, 0.0  ;;  %v8181_v31 = vadd.f32 %v3510_v23, %v7773_v16  ;;  %v3170_v32 = vsub.f32 1.0, %v3169_v46  ;;  %v2490_v45 = vcvt.f32.s32 %v8955_v38  ;;  %v8965_v62 = vld [vmem:[#allocation66_spill] sm:$0xff] }
 0x546   : > { %v3529_v41 = vadd.f32 %v3513_v7, %v8954_v18  ;;  %vm3174_vm12 = vweird.f32 %v4303_v10  ;;  %v2476_v51 = vshll.u32 %v2475_v24, 16  ;;  %vm8957_vm8 = vcmp.eq.s32.totalorder %v4563_v39, %v8956_v34 }
 0x547   : > { %v2548_v37 = vpop.xlane.xlu0 %2547  ;;  %v3171_v14 = vmul.f32 %v4303_v10, %v3170_v32  ;;  %v3445_v53 = vsel %vm8959_vm7, %v3429_v48, 0.0  ;;  %vm3173_vm4 = vweird.f32 %v8135_v3  ;;  %v2491_v30 = vshll.u32 %v2490_v45, 16 }
 0x548   : > { %v2549_v16 = vcvt.f32.s32 %v2548_v37  ;;  %v3541_v44 = vpack.c.bf16 %v8070_v61, %v3529_v41  ;;  %v3413_v61 = vsel %vm8957_vm8, %v3397_v40, 0.0  ;;  %vm3175_vm1 = vmor %vm3173_vm4, %vm3174_vm12  ;;  %v3180_v13 = vor.u32 1.1754944e-38, %v3179_v19 }
 0x549   : > { %v3172_v50 = vadd.f32 %v4303_v10, %v3171_v14  ;;  %vm3178_vm6 = vcmp.eq.f32.partialorder %v3177_v0, 8.507059e+37  ;;  %v3461_v20 = vadd.f32 %v3445_v53, %v3413_v61  ;;  %v3493_v29 = vmul.f32 %v3226_v58, %v7975_v36 }
 0x54a   : > { %v2552_v42 = vadd.s32 %v2551_v57, %v2549_v16  ;;  %v3561_v43 = vsel %vm752_vm3, %v3541_v44, 0  ;;  %vm8963_vm2 = vcmp.eq.s32.totalorder %v4563_v39, %v8962_v15  ;;  %v8966_v57 = vld [vmem:[#allocation33_spill] sm:$0xff]  ;;  %vm8969_vm9 = vcmp.eq.s32.totalorder %v4563_v39, %v8968_v9  ;;  %v4036_v15 = vld [vmem:[%s8320_s4] sm:$0xff] }
 0x54b   : > { %3575 = vmatpush.bf16.xpose.msra.mxu1 %v3561_v43  ;;  %v3176_v33 = vsel %vm3175_vm1, %v4303_v10, %v3172_v50  ;;  %v3412_v3 = vsel %vm8963_vm2, %v3396_v11, 0.0  ;;  %v3509_v10 = vsel %vm3477_vm15, %v3493_v29, 0.0  ;;  %vm8967_vm5 = vcmp.eq.s32.totalorder %v4563_v39, %v8966_v57 }
 0x54c   : > { %vm3480_vm14 = vcmp.eq.s32.totalorder %v4563_v39, %v2552_v42  ;;  %v3181_v22 = vsel %vm3178_vm6, %v3180_v13, %v3176_v33  ;;  %v3444_v18 = vsel %vm8967_vm5, %v3428_v56, 0.0  ;;  %v3525_v48 = vadd.f32 %v3509_v10, %v3461_v20  ;;  %v3673_v56 = vld [vmem:[%s8322_s6] sm:$0xff]  ;;  %v3675_v13 = vld [vmem:[%s8322_s6 + $0x10] sm:$0xff] }
 0x54d   : > { %v3512_v5 = vsel %vm3480_vm14, %v8960_v21, 0.0  ;;  %v3394_v8 = vmul.f32 %v3181_v22, %v8964_v26  ;;  %v3426_v7 = vmul.f32 %v3181_v22, %v8965_v62  ;;  %v3490_v36 = vmul.f32 %v3181_v22, %v8122_v25  ;;  %v4037_v22 = vld [vmem:[%s8320_s4 + $0x8] sm:$0xff] }
 0x54e   : > { %v3528_v35 = vadd.f32 %v3512_v5, %v8961_v1  ;;  %v3492_v16 = vmul.f32 %v3211_v27, %v8043_v4  ;;  %v3460_v25 = vadd.f32 %v3444_v18, %v3412_v3  ;;  %v3539_v32 = vpack.c.bf16 %v8181_v31, %v3525_v48 }
 0x54f   : > { %v3410_v46 = vsel %vm8969_vm9, %v3394_v8, 0.0  ;;  %v3442_v24 = vsel %vm2322_vm11, %v3426_v7, 0.0  ;;  %v2445_v4 = vcvt.f32.s32 %v8030_v55  ;;  %v4038_v55 = vld [vmem:[%s8321_s5] sm:$0xff]  ;;  %vm3605_vm12 = vcmask 48128  }
 0x550   : > { %v2473_v52 = vpop.xlane.xlu0 %2472  ;;  %v3540_v47 = vpack.c.bf16 %v3528_v35, %v8119_v63  ;;  %v3458_v40 = vadd.f32 %v3442_v24, %v3410_v46  ;;  %v3555_v19 = vsel %vm752_vm3, %v3539_v32, 0  ;;  %v2460_v61 = vcvt.f32.s32 %v8107_v59  ;;  %v494_v59 = vld [vmem:[%s442_s13] sm:$0xf]  ;;  %v3674_v35 = vld [vmem:[%s8322_s6 + $0x8] sm:$0xff]  ;;  %s4034_s13 = sshll.u32 %s8977_s30, 5 }
 0x551   : > { %v2488_v54 = vpop.xlane.xlu1 %2487  ;;  %v2474_v23 = vcvt.f32.s32 %v2473_v52  ;;  %v2446_v43 = vshll.u32 %v2445_v4, 16  ;;  %v4328_v1 = vmov 0   ;;  %vm3650_vm14 = vcmask 1043456   ;;  %v3676_v52 = vld [vmem:[%s8322_s6 + $0x18] sm:$0xff]  ;;  %s466_s17 = scalar_lea.vmem %s8324_s8, %s4034_s13  ;;  %s475_s20 = scalar_lea.vmem %s8325_s9, %s4034_s13 }
 0x552   : > { %v2489_v49 = vcvt.f32.s32 %v2488_v54  ;;  %v3558_v41 = vsel %vm752_vm3, %v3540_v47, 0  ;;  %v2461_v17 = vshll.u32 %v2460_v61, 16  ;;  %4077 = vset.pattern.permute.xlu1 %v4328_v1  ;;  %4079 = vset.pattern.permute.xlu0 %v4328_v1  ;;  %vm3712_vm7 = vcmp.lt.s32.totalorder %v4563_v39, 16 }
 0x553   : > { %v2477_v58 = vadd.s32 %v2476_v51, %v2474_v23  ;;  %3576 = vmatpush.bf16.xpose.msra.mxu1 %v3558_v41  ;;  %v3594_v51 = vld [vmem:[%s449_s23] sm:$0x7]  ;;  %3679 = vperm.xlu1 %4077, %v3673_v56  }
 0x554   : > { %v2492_v37 = vadd.s32 %v2491_v30, %v2489_v49  ;;  %v3613_v34 = vsel %vm8971_vm13, %v3594_v51, 0  ;;  %3689 = vperm.xlu0 %4079, %v3675_v13   ;;  %4078 = vset.pattern.permute.xlu2 %v4328_v1 }
 0x555   : > { %vm3475_vm0 = vcmp.eq.s32.totalorder %v4563_v39, %v2477_v58  ;;  %3622 = vmatpush.bf16.msra.mxu3 %v3613_v34  ;;  %3684 = vperm.xlu2 %4078, %v3674_v35  }
 0x556   : > { %vm3476_vm10 = vcmp.eq.s32.totalorder %v4563_v39, %v2492_v37  ;;  %v3507_v44 = vsel %vm3475_vm0, %v7797_v60, 0.0 }
 0x557   : > { %v3508_v38 = vsel %vm3476_vm10, %v3492_v16, 0.0  ;;  %v3523_v45 = vadd.f32 %v3507_v44, %v7816_v12 }
 0x558   : > { %v3524_v2 = vadd.f32 %v3508_v38, %v3460_v25  ;;  %4018 = vmatmul.msk.bf16.vlgmr.msra.gmra.mxu3 %vm3605_vm12, %v4038_v55 }
 0x55a   : > { %v3538_v0 = vpack.c.bf16 %v3524_v2, %v3523_v45 }
 0x55b   : > { %3577 = vmatpush.bf16.xpose.msra.mxu1 %v3555_v19 }
 0x55c   : > { %v3552_v42 = vsel %vm752_vm3, %v3538_v0, 0 }
 0x55d   : > { %3694 = vperm.xlu2 %4078, %v3676_v52  }
 0x563   : > { %3578 = vmatpush.bf16.xpose.msra.mxu1 %v3552_v42 }
 0x597   : > { %v2443_v27 = vpop.xlane.xlu2 %2442 }
 0x598   : > { %v2444_v14 = vcvt.f32.s32 %v2443_v27 }
 0x59a   : > { %v2447_v60 = vadd.s32 %v2446_v43, %v2444_v14 }
 0x59c   : > { %vm3473_vm11 = vcmp.eq.s32.totalorder %v4563_v39, %v2447_v60 }
 0x59d   : > { %v3505_v12 = vsel %vm3473_vm11, %v8154_v28, 0.0  ;;  %v4039_v28 = vld [vmem:[%s8321_s5 + $0x8] sm:$0xff] }
 0x59e   : > { %v3521_v31 = vadd.f32 %v3505_v12, %v8177_v6  ;;  %4019 = vmatmul.msk.bf16.gmra.mxu3 %vm3605_vm12, %v4039_v28 }
 0x5ad   : > { %v2458_v11 = vpop.xlane.xlu0 %2457 }
 0x5ae   : > { %v2459_v53 = vcvt.f32.s32 %v2458_v11 }
 0x5b0   : > { %v2462_v50 = vadd.s32 %v2461_v17, %v2459_v53 }
 0x5b2   : > { %vm3474_vm8 = vcmp.eq.s32.totalorder %v4563_v39, %v2462_v50 }
 0x5b3   : > { %v3506_v6 = vsel %vm3474_vm8, %v3490_v36, 0.0  ;;  %v3685_v36 = vpop.permute.xlu2 %3684 }
 0x5b4   : > { %v3522_v30 = vadd.f32 %v3506_v6, %v3458_v40 }
 0x5b6   : > { %v3537_v21 = vpack.c.bf16 %v3522_v30, %v3521_v31 }
 0x5b8   : > { %v3549_v5 = vsel %vm752_vm3, %v3537_v21, 0 }
 0x5b9   : > { %3579 = vmatpush.bf16.xpose.msra.mxu1 %v3549_v5 }
 0x5bb   : > { %v3695_v32 = vpop.permute.xlu2 %3694 }
 0x5c0   : > { %4009 = vmatmul.msk.bf16.vlgmr.msra.gmra.mxu1 %vm752_vm3, %v494_v59 }
 0x5c5   : > { %v3680_v62 = vpop.permute.xlu1 %3679 }
 0x5c6   : > { %v3690_v24 = vpop.permute.xlu0 %3689 }
 0x5db   : > { %v3624_v54 = vpop.f32.mrf.mxu3 }
 0x5e3   : > { %v3626_v23 = vpop.f32.mrf.mxu3 }
 0x621   : > { %v3629_v47 = vpop.f32.mrf.mxu3 }
 0x629   : > { %v3631_v26 = vpop.f32.mrf.mxu3 }
 0x63d   : > { %v3581_v33 = vpop.f32.mrf.mxu1 }
 0x63e   : > { %v3589_v20 = vpack.c.bf16 %v3581_v33, %v3581_v33 }
 0x640   : > { %v3652_v29 = vsel %vm3650_vm14, %v3589_v20, 0 }
 0x641   : > { %3661 = vmatpush.bf16.msrb.mxu3 %v3652_v29 }
 0x644   : > { %4028 = vmatmul.msk.bf16.vlgmr.msrb.gmra.mxu3 %vm752_vm3, %v4036_v15 }
 0x645   : > { %v3583_v3 = vpop.f32.mrf.mxu1 }
 0x654   : > { %4029 = vmatmul.msk.bf16.gmra.mxu3 %vm752_vm3, %v4037_v22  ;;  %vm3739_vm3 = vcmask 7168  }
 0x6c7   : > { %v3663_v8 = vpop.f32.mrf.mxu3 }
 0x6c8   : > { %v3664_v7 = vadd.f32 %v3663_v8, %v3624_v54 }
 0x6ca   : > { %v3697_v49 = vadd.f32 %v3680_v62, %v3664_v7 }
 0x6cc   : > { %v3715_v10 = vsel %vm3712_vm7, %v3697_v49, 0.0 }
 0x6cd   : > { %3719 = vadd.xlane.f32.xlu1 %v3715_v10  ;;  %v3727_v48 = vmul.f32 %v3715_v10, %v3715_v10 }
 0x6cf   : > { %v3665_v57 = vpop.f32.mrf.mxu3 }
 0x6d0   : > { %v3666_v18 = vadd.f32 %v3665_v57, %v3626_v23 }
 0x6d2   : > { %v3698_v58 = vadd.f32 %v3685_v36, %v3666_v18 }
 0x6d4   : > { %v4043_v41 = vpack.c.bf16 %v3698_v58, %v3697_v49  ;;  %v3716_v9 = vsel %vm3712_vm7, %v3698_v58, 0.0 }
 0x6d5   : > { %3721 = vadd.xlane.f32.xlu2 %v3716_v9  ;;  %v3728_v46 = vmul.f32 %v3716_v9, %v3716_v9 }
 0x6d6   : > { %4044 = vst [vmem:[%s457_s29] sm:$0xff] %v4043_v41  }
 0x6d7   : > { %v3668_v63 = vpop.f32.mrf.mxu3  ;;  %3733 = vadd.xlane.f32.xlu1 %v3728_v46 }
 0x6d8   : > { %v3669_v37 = vadd.f32 %v3668_v63, %v3629_v47 }
 0x6da   : > { %v3699_v40 = vadd.f32 %v3690_v24, %v3669_v37 }
 0x6dc   : > { %v3717_v16 = vsel %vm3712_vm7, %v3699_v40, 0.0 }
 0x6dd   : > { %3731 = vadd.xlane.f32.xlu2 %v3727_v48  ;;  %3723 = vadd.xlane.f32.xlu0 %v3717_v16  ;;  %v3729_v45 = vmul.f32 %v3717_v16, %v3717_v16 }
 0x6df   : > { %v3670_v25 = vpop.f32.mrf.mxu3 }
 0x6e0   : > { %v3671_v44 = vadd.f32 %v3670_v25, %v3631_v26 }
 0x6e2   : > { %v3700_v38 = vadd.f32 %v3695_v32, %v3671_v44 }
 0x6e4   : > { %v4048_v2 = vpack.c.bf16 %v3700_v38, %v3699_v40  ;;  %v3718_v0 = vsel %vm3712_vm7, %v3700_v38, 0.0 }
 0x6e5   : > { %3725 = vadd.xlane.f32.xlu1 %v3718_v0  ;;  %3735 = vadd.xlane.f32.xlu2 %v3729_v45  ;;  %v3730_v19 = vmul.f32 %v3718_v0, %v3718_v0 }
 0x6e6   : > { %4050 = vst [vmem:[%s457_s29 + $0x8] sm:$0xff] %v4048_v2  }
 0x6ed   : > { %3737 = vadd.xlane.f32.xlu1 %v3730_v19 }
 0x740   : > { %v3720_v42 = vpop.xlane.xlu1 %3719 }
 0x741   : > { %3740 = vst.msk [vmem:[%s466_s17] sm:$0xff] %vm3739_vm3, %v3720_v42 }
 0x748   : > { %v3722_v4 = vpop.xlane.xlu2 %3721 }
 0x749   : > { %3741 = vst.msk [vmem:[%s466_s17 + $0x8] sm:$0xff] %vm3739_vm3, %v3722_v4 }
 0x74a   : > { %v3734_v39 = vpop.xlane.xlu1 %3733 }
 0x74b   : > { %3745 = vst.msk [vmem:[%s475_s20 + $0x8] sm:$0xff] %vm3739_vm3, %v3734_v39 }
 0x750   : > { %v3732_v27 = vpop.xlane.xlu2 %3731  ;;  %v3724_v43 = vpop.xlane.xlu0 %3723 }
 0x751   : > { %3744 = vst.msk [vmem:[%s475_s20] sm:$0xff] %vm3739_vm3, %v3732_v27 }
 0x752   : > { %3742 = vst.msk [vmem:[%s466_s17 + $0x10] sm:$0xff] %vm3739_vm3, %v3724_v43 }
 0x758   : > { %v3726_v14 = vpop.xlane.xlu1 %3725  ;;  %v3736_v60 = vpop.xlane.xlu2 %3735 }
 0x759   : > { %3743 = vst.msk [vmem:[%s466_s17 + $0x18] sm:$0xff] %vm3739_vm3, %v3726_v14 }
 0x75a   : > { %3746 = vst.msk [vmem:[%s475_s20 + $0x10] sm:$0xff] %vm3739_vm3, %v3736_v60 }
 0x760   : > { %v3738_v12 = vpop.xlane.xlu1 %3737 }
 0x761   : > { %3747 = vst.msk [vmem:[%s475_s20 + $0x18] sm:$0xff] %vm3739_vm3, %v3738_v12 }
 0x762 PF: > { %s20_s11 = sadd.s32 1, %s4326_s11   ;;  %s8972_s30 = smov %s4322_s10 }
 0x763   : > { %p17_p5 = scmp.ge.s32.totalorder %s20_s11, 4   ;;  %s8973_s10 = smov %s8975_s12 }
 0x765   :  { %19 = sbr.rel (!%p17_p5) target bundleno = 2 (0x2), region = 111 }

</bundles_post_ra>
